<compile_context>
chip_gen: v7x
topology: tpu7x:2x2x1
jax: 0.10.0
libtpu: 0.0.40
codegen_flags: <defaults>
</compile_context>

<pallas_src>
import functools

import jax
import jax.numpy as jnp
import numpy as np
from jax.experimental import pallas as pl
from jax.experimental.pallas import tpu as pltpu


# ----------------------------- fused kernel ----------------------------------

def _fused_lstm_ae_kernel(x_ref, w0i_ref, w0h_ref, b0_ref,
                          wf1_ref, b1_ref, wf2_ref, b2_ref, wf3_ref, b3_ref,
                          out_ref, *, T, BP):
    """All 4 LSTM layers, all T timesteps, single invocation (no grid).

    x_ref:   (T*BP, I0)  time-major input, batch padded to BP=8 rows per timestep
    w0i_ref: (I0, 4H0)   layer-0 W_ih^T   (gate columns pre-permuted to [i,f,o,g])
    w0h_ref: (H0, 4H0)   layer-0 W_hh^T
    b0_ref:  (1, 4H0)    layer-0 fused bias
    wf{l}:   (I_l+H_l, 4H_l)  fused [W_ih^T; W_hh^T] for layers 1..3
    b{l}:    (1, 4H_l)
    out_ref: (BP, T*H_out)  lane-dense output slab (one unmasked store at the end)
    """
    H = [w0h_ref.shape[0],
         wf1_ref.shape[1] // 4,
         wf2_ref.shape[1] // 4,
         wf3_ref.shape[1] // 4]

    def cell(gates, c, Hl):
        # Gate columns are pre-permuted to [i, f, o, g]:
        # one sigmoid over the contiguous 3H lanes, one tanh over the last H.
        sig = jax.nn.sigmoid(gates[:, 0:3 * Hl])
        i_g = sig[:, 0:Hl]
        f_g = sig[:, Hl:2 * Hl]
        o_g = sig[:, 2 * Hl:3 * Hl]
        g_g = jnp.tanh(gates[:, 3 * Hl:4 * Hl])
        c_new = f_g * c + i_g * g_g
        h_new = o_g * jnp.tanh(c_new)
        return h_new, c_new

    # Layer-0 whole-sequence input projection: one MXU matmul, bias folded in once.
    xg0 = (jnp.dot(x_ref[...], w0i_ref[...], preferred_element_type=jnp.float32)
           + b0_ref[...])

    # Hoist all weight loads out of the unrolled loop.
    w0h = w0h_ref[...]
    wf = [None, wf1_ref[...], wf2_ref[...], wf3_ref[...]]
    bf = [None, b1_ref[...], b2_ref[...], b3_ref[...]]

    h = [jnp.zeros((BP, Hl), jnp.float32) for Hl in H]
    c = [jnp.zeros((BP, Hl), jnp.float32) for Hl in H]
    # xin[l] = input to layer l at its next timestep (output of layer l-1); the
    # zero initializers are never read (layer l first runs one step after layer l-1).
    xin = [None] + [jnp.zeros((BP, Hl), jnp.float32) for Hl in H[:3]]

    outs = []
    # Layer wavefront: step s runs layer l at time t = s - l (when 0 <= t < T).
    # All layer updates within a step read pre-step state (commit-after), so the
    # four chains are independent and can be interleaved by the scheduler.
    for s in range(T + 3):
        nh, nc, nx = list(h), list(c), list(xin)

        if s < T:                                             # layer 0 @ t = s
            gates = xg0[s * BP:(s + 1) * BP, :] + jnp.dot(
                h[0], w0h, preferred_element_type=jnp.float32)
            nh[0], nc[0] = cell(gates, c[0], H[0])
            nx[1] = nh[0]

        for l in (1, 2, 3):                                   # layer l @ t = s - l
            t = s - l
            if 0 <= t < T:
                inp = jnp.concatenate([xin[l], h[l]], axis=1)     # [x_t, h_{t-1}]
                gates = jnp.dot(inp, wf[l],
                                preferred_element_type=jnp.float32) + bf[l]
                nh[l], nc[l] = cell(gates, c[l], H[l])
                if l < 3:
                    nx[l + 1] = nh[l]
                else:
                    outs.append(nh[l])

        h, c, xin = nh, nc, nx

    # Single full-width, unmasked output store: (BP, T*H_out) == (8, 128) at demo sizes.
    out_ref[...] = jnp.concatenate(outs, axis=1).astype(out_ref.dtype)


# ------------------------ one-time parameter prep -----------------------------

def _perm_gate_cols(w_t, H):
    """Permute 4H gate columns from PyTorch [i, f, g, o] to [i, f, o, g]."""
    return jnp.concatenate(
        [w_t[:, 0:H], w_t[:, H:2 * H], w_t[:, 3 * H:4 * H], w_t[:, 2 * H:3 * H]],
        axis=1)


def preprocess_params(params):
    """Transpose weights, fuse biases, permute gate columns, fuse [W_ih^T; W_hh^T].

    Returns (w0i_t, w0h_t, b0, wf1, b1, wf2, b2, wf3, b3); layer 0 stays split so the
    kernel can pre-project the whole input sequence with one matmul."""
    layers = list(params["encoder"]) + list(params["decoder"])
    out = []
    for idx, (w_ih, w_hh, b_ih, b_hh) in enumerate(layers):
        H = w_hh.shape[1]
        wih_t = _perm_gate_cols(jnp.transpose(w_ih), H)           # (I, 4H)
        whh_t = _perm_gate_cols(jnp.transpose(w_hh), H)           # (H, 4H)
        b = _perm_gate_cols((b_ih + b_hh).reshape(1, -1), H)      # (1, 4H)
        if idx == 0:
            out += [wih_t, whh_t, b]
        else:
            out += [jnp.concatenate([wih_t, whh_t], axis=0), b]   # (I+H, 4H)
    return tuple(out)


# ------------------------------- wrapper --------------------------------------

def lstm_autoencoder_pallas(x, prepped):
    """encoder (2-layer LSTM) -> decoder (2-layer LSTM), batch_first semantics.

    x: (B, T, F). prepped: output of preprocess_params."""
    assert len(prepped) == 9, "expected 4 LSTM layers (layer0 split + 3 fused)"
    B, T, I = x.shape
    BP = ((B + 7) // 8) * 8                       # pad batch to the f32 sublane tile

    H_layers = [int(prepped[1].shape[0]),
                int(prepped[3].shape[1]) // 4,
                int(prepped[5].shape[1]) // 4,
                int(prepped[7].shape[1]) // 4]
    H_out = H_layers[-1]

    # Time-major, batch padded to BP rows per timestep (aligned (8, .) in-kernel slices).
    x_tm = jnp.transpose(x, (1, 0, 2))                           # (T, B, I)
    x2d = jnp.pad(x_tm, ((0, 0), (0, BP - B), (0, 0))).reshape(T * BP, I)

    # Advisory cost estimate for the XLA scheduler.
    flops = 2 * (T * BP) * I * 4 * H_layers[0]                   # layer-0 pre-projection
    flops += 2 * T * BP * H_layers[0] * 4 * H_layers[0]          # layer-0 recurrence
    trans = T * BP * 5 * H_layers[0]
    for wf_idx in (3, 5, 7):
        wf = prepped[wf_idx]
        flops += 2 * T * BP * int(wf.shape[0]) * int(wf.shape[1])
        trans += T * BP * 5 * (int(wf.shape[1]) // 4)
    bytes_acc = (x2d.size + BP * T * H_out + sum(int(p.size) for p in prepped)) * 4

    # VMEM request: actual footprint (inputs + output + layer-0 pre-activation slab)
    # plus generous headroom — far below the previous blanket 32 MiB.
    footprint = (x2d.size + sum(int(p.size) for p in prepped)
                 + BP * T * H_out + T * BP * 4 * H_layers[0]) * 4
    vmem_limit = max(4 * 1024 * 1024, 8 * int(footprint))

    kernel = functools.partial(_fused_lstm_ae_kernel, T=T, BP=BP)

    out2d = pl.pallas_call(
        kernel,
        out_shape=jax.ShapeDtypeStruct((BP, T * H_out), x.dtype),
        in_specs=[pl.BlockSpec(memory_space=pltpu.MemorySpace.VMEM)] * (1 + len(prepped)),
        out_specs=pl.BlockSpec(memory_space=pltpu.MemorySpace.VMEM),
        compiler_params=pltpu.CompilerParams(vmem_limit_bytes=int(vmem_limit)),
        cost_estimate=pl.CostEstimate(flops=int(flops),
                                      transcendentals=int(trans),
                                      bytes_accessed=int(bytes_acc)),
    )(x2d, *prepped)

    # (BP, T*H_out) -> drop batch padding -> (B, T, H_out); pure metadata reshape.
    return out2d[:B].reshape(B, T, H_out)


# ------------------------- pure-JAX reference ---------------------------------

def _lstm_layer_ref(x, w_ih, w_hh, b_ih, b_hh):
    B, T, _ = x.shape
    H = w_hh.shape[1]

    def step(carry, x_t):
        h, c = carry
        gates = x_t @ w_ih.T + b_ih + h @ w_hh.T + b_hh
        i, f, g, o = jnp.split(gates, 4, axis=-1)
        i = jax.nn.sigmoid(i)
        f = jax.nn.sigmoid(f)
        g = jnp.tanh(g)
        o = jax.nn.sigmoid(o)
        c = f * c + i * g
        h = o * jnp.tanh(c)
        return (h, c), h

    h0 = jnp.zeros((B, H), x.dtype)
    c0 = jnp.zeros((B, H), x.dtype)
    _, hs = jax.lax.scan(step, (h0, c0), jnp.swapaxes(x, 0, 1))
    return jnp.swapaxes(hs, 0, 1)


def lstm_autoencoder_ref(x, params):
    h = x
    for p in params["encoder"]:
        h = _lstm_layer_ref(h, *p)
    for p in params["decoder"]:
        h = _lstm_layer_ref(h, *p)
    return h


# ------------------------- parameter construction -----------------------------

def make_lstm_params(key, layer_dims, hidden):
    """layer_dims: input size per layer; hidden: LSTM hidden size.
    Matches PyTorch nn.LSTM param shapes: W_ih (4H, in), W_hh (4H, H), b_* (4H,)."""
    k = 1.0 / np.sqrt(hidden)
    layers = []
    for in_dim in layer_dims:
        key, k1, k2, k3, k4 = jax.random.split(key, 5)
        layers.append((
            jax.random.uniform(k1, (4 * hidden, in_dim), jnp.float32, -k, k),
            jax.random.uniform(k2, (4 * hidden, hidden), jnp.float32, -k, k),
            jax.random.uniform(k3, (4 * hidden,), jnp.float32, -k, k),
            jax.random.uniform(k4, (4 * hidden,), jnp.float32, -k, k),
        ))
    return key, layers


if __name__ == "__main__":
    # Small shapes consistent with the module's forward:
    #   x: (batch, seq, input_size); encoder hidden=hidden_size, decoder hidden=input_size
    batch, seq_len = 2, 8
    input_size, hidden_size, num_layers = 16, 32, 2

    key = jax.random.PRNGKey(0)
    key, x_key = jax.random.split(key)
    x = jax.random.normal(x_key, (batch, seq_len, input_size), jnp.float32)

    # encoder: nn.LSTM(input_size, hidden_size, num_layers)
    key, enc = make_lstm_params(key, [input_size, hidden_size], hidden_size)
    # decoder: nn.LSTM(hidden_size, input_size, num_layers)
    key, dec = make_lstm_params(key, [hidden_size, input_size], input_size)
    params = {"encoder": enc, "decoder": dec}

    prepped = preprocess_params(params)   # transpose / fuse / gate-reorder (one-time)

    fwd = jax.jit(lstm_autoencoder_pallas)
    out = jax.block_until_ready(fwd(x, prepped))
    ref = jax.block_until_ready(lstm_autoencoder_ref(x, params))

    assert out.shape == (batch, seq_len, input_size), out.shape
    np.testing.assert_allclose(np.asarray(out), np.asarray(ref), rtol=2e-3, atol=2e-3)

    print("KERNEL_OK")
</pallas_src>

<mosaic_0001>
module attributes {stable_mosaic.version = 11 : i64} {
  func.func @_fused_lstm_ae_kernel(%arg0: memref<64x16xf32, #tpu.memory_space<vmem>>, %arg1: memref<16x128xf32, #tpu.memory_space<vmem>>, %arg2: memref<32x128xf32, #tpu.memory_space<vmem>>, %arg3: memref<1x128xf32, #tpu.memory_space<vmem>>, %arg4: memref<64x128xf32, #tpu.memory_space<vmem>>, %arg5: memref<1x128xf32, #tpu.memory_space<vmem>>, %arg6: memref<48x64xf32, #tpu.memory_space<vmem>>, %arg7: memref<1x64xf32, #tpu.memory_space<vmem>>, %arg8: memref<32x64xf32, #tpu.memory_space<vmem>>, %arg9: memref<1x64xf32, #tpu.memory_space<vmem>>, %arg10: memref<8x128xf32, #tpu.memory_space<vmem>>) attributes {dimension_semantics = [], scalar_prefetch = 0 : i64, scratch_operands = 0 : i64, tpu.core_type = #tpu.core_type<tc>} {
    %c0 = arith.constant 0 : index
    %c0_0 = arith.constant 0 : index
    %0 = vector.load %arg0[%c0, %c0_0] : memref<64x16xf32, #tpu.memory_space<vmem>>, vector<64x16xf32>
    %c0_1 = arith.constant 0 : index
    %c0_2 = arith.constant 0 : index
    %1 = vector.load %arg1[%c0_1, %c0_2] : memref<16x128xf32, #tpu.memory_space<vmem>>, vector<16x128xf32>
    %cst = arith.constant dense<0.000000e+00> : vector<64x128xf32>
    %2 = tpu.matmul %0, %1, %cst {dimension_numbers = #tpu.dot_dimension_numbers<[1], [0], [0], [1], [0, 0, 1, 1], [], []>} : vector<64x16xf32>, vector<16x128xf32>, vector<64x128xf32> -> vector<64x128xf32>
    %c0_3 = arith.constant 0 : index
    %c0_4 = arith.constant 0 : index
    %3 = vector.load %arg3[%c0_3, %c0_4] : memref<1x128xf32, #tpu.memory_space<vmem>>, vector<1x128xf32>
    %4 = vector.broadcast %3 : vector<1x128xf32> to vector<64x128xf32>
    %5 = arith.addf %2, %4 : vector<64x128xf32>
    %c0_5 = arith.constant 0 : index
    %c0_6 = arith.constant 0 : index
    %6 = vector.load %arg2[%c0_5, %c0_6] : memref<32x128xf32, #tpu.memory_space<vmem>>, vector<32x128xf32>
    %c0_7 = arith.constant 0 : index
    %c0_8 = arith.constant 0 : index
    %7 = vector.load %arg4[%c0_7, %c0_8] : memref<64x128xf32, #tpu.memory_space<vmem>>, vector<64x128xf32>
    %c0_9 = arith.constant 0 : index
    %c0_10 = arith.constant 0 : index
    %8 = vector.load %arg6[%c0_9, %c0_10] : memref<48x64xf32, #tpu.memory_space<vmem>>, vector<48x64xf32>
    %c0_11 = arith.constant 0 : index
    %c0_12 = arith.constant 0 : index
    %9 = vector.load %arg8[%c0_11, %c0_12] : memref<32x64xf32, #tpu.memory_space<vmem>>, vector<32x64xf32>
    %c0_13 = arith.constant 0 : index
    %c0_14 = arith.constant 0 : index
    %10 = vector.load %arg5[%c0_13, %c0_14] : memref<1x128xf32, #tpu.memory_space<vmem>>, vector<1x128xf32>
    %c0_15 = arith.constant 0 : index
    %c0_16 = arith.constant 0 : index
    %11 = vector.load %arg7[%c0_15, %c0_16] : memref<1x64xf32, #tpu.memory_space<vmem>>, vector<1x64xf32>
    %c0_17 = arith.constant 0 : index
    %c0_18 = arith.constant 0 : index
    %12 = vector.load %arg9[%c0_17, %c0_18] : memref<1x64xf32, #tpu.memory_space<vmem>>, vector<1x64xf32>
    %cst_19 = arith.constant 0.000000e+00 : f32
    %13 = vector.broadcast %cst_19 : f32 to vector<8x32xf32>
    %cst_20 = arith.constant 0.000000e+00 : f32
    %14 = vector.broadcast %cst_20 : f32 to vector<8x32xf32>
    %cst_21 = arith.constant 0.000000e+00 : f32
    %15 = vector.broadcast %cst_21 : f32 to vector<8x16xf32>
    %cst_22 = arith.constant 0.000000e+00 : f32
    %16 = vector.broadcast %cst_22 : f32 to vector<8x16xf32>
    %cst_23 = arith.constant 0.000000e+00 : f32
    %17 = vector.broadcast %cst_23 : f32 to vector<8x32xf32>
    %cst_24 = arith.constant 0.000000e+00 : f32
    %18 = vector.broadcast %cst_24 : f32 to vector<8x32xf32>
    %cst_25 = arith.constant 0.000000e+00 : f32
    %19 = vector.broadcast %cst_25 : f32 to vector<8x16xf32>
    %cst_26 = arith.constant 0.000000e+00 : f32
    %20 = vector.broadcast %cst_26 : f32 to vector<8x16xf32>
    %21 = vector.extract_strided_slice %5 {offsets = [0, 0], sizes = [8, 128], strides = [1, 1]} : vector<64x128xf32> to vector<8x128xf32>
    %cst_27 = arith.constant dense<0.000000e+00> : vector<8x128xf32>
    %22 = tpu.matmul %13, %6, %cst_27 {dimension_numbers = #tpu.dot_dimension_numbers<[1], [0], [0], [1], [0, 0, 1, 1], [], []>} : vector<8x32xf32>, vector<32x128xf32>, vector<8x128xf32> -> vector<8x128xf32>
    %23 = arith.addf %21, %22 : vector<8x128xf32>
    %24 = vector.extract_strided_slice %23 {offsets = [0, 0], sizes = [8, 96], strides = [1, 1]} : vector<8x128xf32> to vector<8x96xf32>
    %25 = arith.negf %24 : vector<8x96xf32>
    %26 = math.exp %25 : vector<8x96xf32>
    %cst_28 = arith.constant 1.000000e+00 : f32
    %27 = vector.broadcast %cst_28 : f32 to vector<8x96xf32>
    %28 = arith.addf %27, %26 : vector<8x96xf32>
    %29 = arith.divf %27, %28 : vector<8x96xf32>
    %30 = vector.extract_strided_slice %29 {offsets = [0, 0], sizes = [8, 32], strides = [1, 1]} : vector<8x96xf32> to vector<8x32xf32>
    %31 = vector.extract_strided_slice %29 {offsets = [0, 32], sizes = [8, 32], strides = [1, 1]} : vector<8x96xf32> to vector<8x32xf32>
    %32 = vector.extract_strided_slice %29 {offsets = [0, 64], sizes = [8, 32], strides = [1, 1]} : vector<8x96xf32> to vector<8x32xf32>
    %33 = vector.extract_strided_slice %23 {offsets = [0, 96], sizes = [8, 32], strides = [1, 1]} : vector<8x128xf32> to vector<8x32xf32>
    %34 = math.tanh %33 : vector<8x32xf32>
    %35 = arith.mulf %31, %17 : vector<8x32xf32>
    %36 = arith.mulf %30, %34 : vector<8x32xf32>
    %37 = arith.addf %35, %36 : vector<8x32xf32>
    %38 = math.tanh %37 : vector<8x32xf32>
    %39 = arith.mulf %32, %38 : vector<8x32xf32>
    %40 = vector.extract_strided_slice %5 {offsets = [8, 0], sizes = [8, 128], strides = [1, 1]} : vector<64x128xf32> to vector<8x128xf32>
    %cst_29 = arith.constant dense<0.000000e+00> : vector<8x128xf32>
    %41 = tpu.matmul %39, %6, %cst_29 {dimension_numbers = #tpu.dot_dimension_numbers<[1], [0], [0], [1], [0, 0, 1, 1], [], []>} : vector<8x32xf32>, vector<32x128xf32>, vector<8x128xf32> -> vector<8x128xf32>
    %42 = arith.addf %40, %41 : vector<8x128xf32>
    %43 = vector.extract_strided_slice %42 {offsets = [0, 0], sizes = [8, 96], strides = [1, 1]} : vector<8x128xf32> to vector<8x96xf32>
    %44 = arith.negf %43 : vector<8x96xf32>
    %45 = math.exp %44 : vector<8x96xf32>
    %cst_30 = arith.constant 1.000000e+00 : f32
    %46 = vector.broadcast %cst_30 : f32 to vector<8x96xf32>
    %47 = arith.addf %46, %45 : vector<8x96xf32>
    %48 = arith.divf %46, %47 : vector<8x96xf32>
    %49 = vector.extract_strided_slice %48 {offsets = [0, 0], sizes = [8, 32], strides = [1, 1]} : vector<8x96xf32> to vector<8x32xf32>
    %50 = vector.extract_strided_slice %48 {offsets = [0, 32], sizes = [8, 32], strides = [1, 1]} : vector<8x96xf32> to vector<8x32xf32>
    %51 = vector.extract_strided_slice %48 {offsets = [0, 64], sizes = [8, 32], strides = [1, 1]} : vector<8x96xf32> to vector<8x32xf32>
    %52 = vector.extract_strided_slice %42 {offsets = [0, 96], sizes = [8, 32], strides = [1, 1]} : vector<8x128xf32> to vector<8x32xf32>
    %53 = math.tanh %52 : vector<8x32xf32>
    %54 = arith.mulf %50, %37 : vector<8x32xf32>
    %55 = arith.mulf %49, %53 : vector<8x32xf32>
    %56 = arith.addf %54, %55 : vector<8x32xf32>
    %57 = math.tanh %56 : vector<8x32xf32>
    %58 = arith.mulf %51, %57 : vector<8x32xf32>
    %59 = tpu.concatenate %39, %14 in 1 : vector<8x32xf32>, vector<8x32xf32> -> vector<8x64xf32>
    %cst_31 = arith.constant dense<0.000000e+00> : vector<8x128xf32>
    %60 = tpu.matmul %59, %7, %cst_31 {dimension_numbers = #tpu.dot_dimension_numbers<[1], [0], [0], [1], [0, 0, 1, 1], [], []>} : vector<8x64xf32>, vector<64x128xf32>, vector<8x128xf32> -> vector<8x128xf32>
    %61 = vector.broadcast %10 : vector<1x128xf32> to vector<8x128xf32>
    %62 = arith.addf %60, %61 : vector<8x128xf32>
    %63 = vector.extract_strided_slice %62 {offsets = [0, 0], sizes = [8, 96], strides = [1, 1]} : vector<8x128xf32> to vector<8x96xf32>
    %64 = arith.negf %63 : vector<8x96xf32>
    %65 = math.exp %64 : vector<8x96xf32>
    %cst_32 = arith.constant 1.000000e+00 : f32
    %66 = vector.broadcast %cst_32 : f32 to vector<8x96xf32>
    %67 = arith.addf %66, %65 : vector<8x96xf32>
    %68 = arith.divf %66, %67 : vector<8x96xf32>
    %69 = vector.extract_strided_slice %68 {offsets = [0, 0], sizes = [8, 32], strides = [1, 1]} : vector<8x96xf32> to vector<8x32xf32>
    %70 = vector.extract_strided_slice %68 {offsets = [0, 32], sizes = [8, 32], strides = [1, 1]} : vector<8x96xf32> to vector<8x32xf32>
    %71 = vector.extract_strided_slice %68 {offsets = [0, 64], sizes = [8, 32], strides = [1, 1]} : vector<8x96xf32> to vector<8x32xf32>
    %72 = vector.extract_strided_slice %62 {offsets = [0, 96], sizes = [8, 32], strides = [1, 1]} : vector<8x128xf32> to vector<8x32xf32>
    %73 = math.tanh %72 : vector<8x32xf32>
    %74 = arith.mulf %70, %18 : vector<8x32xf32>
    %75 = arith.mulf %69, %73 : vector<8x32xf32>
    %76 = arith.addf %74, %75 : vector<8x32xf32>
    %77 = math.tanh %76 : vector<8x32xf32>
    %78 = arith.mulf %71, %77 : vector<8x32xf32>
    %79 = vector.extract_strided_slice %5 {offsets = [16, 0], sizes = [8, 128], strides = [1, 1]} : vector<64x128xf32> to vector<8x128xf32>
    %cst_33 = arith.constant dense<0.000000e+00> : vector<8x128xf32>
    %80 = tpu.matmul %58, %6, %cst_33 {dimension_numbers = #tpu.dot_dimension_numbers<[1], [0], [0], [1], [0, 0, 1, 1], [], []>} : vector<8x32xf32>, vector<32x128xf32>, vector<8x128xf32> -> vector<8x128xf32>
    %81 = arith.addf %79, %80 : vector<8x128xf32>
    %82 = vector.extract_strided_slice %81 {offsets = [0, 0], sizes = [8, 96], strides = [1, 1]} : vector<8x128xf32> to vector<8x96xf32>
    %83 = arith.negf %82 : vector<8x96xf32>
    %84 = math.exp %83 : vector<8x96xf32>
    %cst_34 = arith.constant 1.000000e+00 : f32
    %85 = vector.broadcast %cst_34 : f32 to vector<8x96xf32>
    %86 = arith.addf %85, %84 : vector<8x96xf32>
    %87 = arith.divf %85, %86 : vector<8x96xf32>
    %88 = vector.extract_strided_slice %87 {offsets = [0, 0], sizes = [8, 32], strides = [1, 1]} : vector<8x96xf32> to vector<8x32xf32>
    %89 = vector.extract_strided_slice %87 {offsets = [0, 32], sizes = [8, 32], strides = [1, 1]} : vector<8x96xf32> to vector<8x32xf32>
    %90 = vector.extract_strided_slice %87 {offsets = [0, 64], sizes = [8, 32], strides = [1, 1]} : vector<8x96xf32> to vector<8x32xf32>
    %91 = vector.extract_strided_slice %81 {offsets = [0, 96], sizes = [8, 32], strides = [1, 1]} : vector<8x128xf32> to vector<8x32xf32>
    %92 = math.tanh %91 : vector<8x32xf32>
    %93 = arith.mulf %89, %56 : vector<8x32xf32>
    %94 = arith.mulf %88, %92 : vector<8x32xf32>
    %95 = arith.addf %93, %94 : vector<8x32xf32>
    %96 = math.tanh %95 : vector<8x32xf32>
    %97 = arith.mulf %90, %96 : vector<8x32xf32>
    %98 = tpu.concatenate %58, %78 in 1 : vector<8x32xf32>, vector<8x32xf32> -> vector<8x64xf32>
    %cst_35 = arith.constant dense<0.000000e+00> : vector<8x128xf32>
    %99 = tpu.matmul %98, %7, %cst_35 {dimension_numbers = #tpu.dot_dimension_numbers<[1], [0], [0], [1], [0, 0, 1, 1], [], []>} : vector<8x64xf32>, vector<64x128xf32>, vector<8x128xf32> -> vector<8x128xf32>
    %100 = vector.broadcast %10 : vector<1x128xf32> to vector<8x128xf32>
    %101 = arith.addf %99, %100 : vector<8x128xf32>
    %102 = vector.extract_strided_slice %101 {offsets = [0, 0], sizes = [8, 96], strides = [1, 1]} : vector<8x128xf32> to vector<8x96xf32>
    %103 = arith.negf %102 : vector<8x96xf32>
    %104 = math.exp %103 : vector<8x96xf32>
    %cst_36 = arith.constant 1.000000e+00 : f32
    %105 = vector.broadcast %cst_36 : f32 to vector<8x96xf32>
    %106 = arith.addf %105, %104 : vector<8x96xf32>
    %107 = arith.divf %105, %106 : vector<8x96xf32>
    %108 = vector.extract_strided_slice %107 {offsets = [0, 0], sizes = [8, 32], strides = [1, 1]} : vector<8x96xf32> to vector<8x32xf32>
    %109 = vector.extract_strided_slice %107 {offsets = [0, 32], sizes = [8, 32], strides = [1, 1]} : vector<8x96xf32> to vector<8x32xf32>
    %110 = vector.extract_strided_slice %107 {offsets = [0, 64], sizes = [8, 32], strides = [1, 1]} : vector<8x96xf32> to vector<8x32xf32>
    %111 = vector.extract_strided_slice %101 {offsets = [0, 96], sizes = [8, 32], strides = [1, 1]} : vector<8x128xf32> to vector<8x32xf32>
    %112 = math.tanh %111 : vector<8x32xf32>
    %113 = arith.mulf %109, %76 : vector<8x32xf32>
    %114 = arith.mulf %108, %112 : vector<8x32xf32>
    %115 = arith.addf %113, %114 : vector<8x32xf32>
    %116 = math.tanh %115 : vector<8x32xf32>
    %117 = arith.mulf %110, %116 : vector<8x32xf32>
    %118 = tpu.concatenate %78, %15 in 1 : vector<8x32xf32>, vector<8x16xf32> -> vector<8x48xf32>
    %cst_37 = arith.constant dense<0.000000e+00> : vector<8x64xf32>
    %119 = tpu.matmul %118, %8, %cst_37 {dimension_numbers = #tpu.dot_dimension_numbers<[1], [0], [0], [1], [0, 0, 1, 1], [], []>} : vector<8x48xf32>, vector<48x64xf32>, vector<8x64xf32> -> vector<8x64xf32>
    %120 = vector.broadcast %11 : vector<1x64xf32> to vector<8x64xf32>
    %121 = arith.addf %119, %120 : vector<8x64xf32>
    %122 = vector.extract_strided_slice %121 {offsets = [0, 0], sizes = [8, 48], strides = [1, 1]} : vector<8x64xf32> to vector<8x48xf32>
    %123 = arith.negf %122 : vector<8x48xf32>
    %124 = math.exp %123 : vector<8x48xf32>
    %cst_38 = arith.constant 1.000000e+00 : f32
    %125 = vector.broadcast %cst_38 : f32 to vector<8x48xf32>
    %126 = arith.addf %125, %124 : vector<8x48xf32>
    %127 = arith.divf %125, %126 : vector<8x48xf32>
    %128 = vector.extract_strided_slice %127 {offsets = [0, 0], sizes = [8, 16], strides = [1, 1]} : vector<8x48xf32> to vector<8x16xf32>
    %129 = vector.extract_strided_slice %127 {offsets = [0, 16], sizes = [8, 16], strides = [1, 1]} : vector<8x48xf32> to vector<8x16xf32>
    %130 = vector.extract_strided_slice %127 {offsets = [0, 32], sizes = [8, 16], strides = [1, 1]} : vector<8x48xf32> to vector<8x16xf32>
    %131 = vector.extract_strided_slice %121 {offsets = [0, 48], sizes = [8, 16], strides = [1, 1]} : vector<8x64xf32> to vector<8x16xf32>
    %132 = math.tanh %131 : vector<8x16xf32>
    %133 = arith.mulf %129, %19 : vector<8x16xf32>
    %134 = arith.mulf %128, %132 : vector<8x16xf32>
    %135 = arith.addf %133, %134 : vector<8x16xf32>
    %136 = math.tanh %135 : vector<8x16xf32>
    %137 = arith.mulf %130, %136 : vector<8x16xf32>
    %138 = vector.extract_strided_slice %5 {offsets = [24, 0], sizes = [8, 128], strides = [1, 1]} : vector<64x128xf32> to vector<8x128xf32>
    %cst_39 = arith.constant dense<0.000000e+00> : vector<8x128xf32>
    %139 = tpu.matmul %97, %6, %cst_39 {dimension_numbers = #tpu.dot_dimension_numbers<[1], [0], [0], [1], [0, 0, 1, 1], [], []>} : vector<8x32xf32>, vector<32x128xf32>, vector<8x128xf32> -> vector<8x128xf32>
    %140 = arith.addf %138, %139 : vector<8x128xf32>
    %141 = vector.extract_strided_slice %140 {offsets = [0, 0], sizes = [8, 96], strides = [1, 1]} : vector<8x128xf32> to vector<8x96xf32>
    %142 = arith.negf %141 : vector<8x96xf32>
    %143 = math.exp %142 : vector<8x96xf32>
    %cst_40 = arith.constant 1.000000e+00 : f32
    %144 = vector.broadcast %cst_40 : f32 to vector<8x96xf32>
    %145 = arith.addf %144, %143 : vector<8x96xf32>
    %146 = arith.divf %144, %145 : vector<8x96xf32>
    %147 = vector.extract_strided_slice %146 {offsets = [0, 0], sizes = [8, 32], strides = [1, 1]} : vector<8x96xf32> to vector<8x32xf32>
    %148 = vector.extract_strided_slice %146 {offsets = [0, 32], sizes = [8, 32], strides = [1, 1]} : vector<8x96xf32> to vector<8x32xf32>
    %149 = vector.extract_strided_slice %146 {offsets = [0, 64], sizes = [8, 32], strides = [1, 1]} : vector<8x96xf32> to vector<8x32xf32>
    %150 = vector.extract_strided_slice %140 {offsets = [0, 96], sizes = [8, 32], strides = [1, 1]} : vector<8x128xf32> to vector<8x32xf32>
    %151 = math.tanh %150 : vector<8x32xf32>
    %152 = arith.mulf %148, %95 : vector<8x32xf32>
    %153 = arith.mulf %147, %151 : vector<8x32xf32>
    %154 = arith.addf %152, %153 : vector<8x32xf32>
    %155 = math.tanh %154 : vector<8x32xf32>
    %156 = arith.mulf %149, %155 : vector<8x32xf32>
    %157 = tpu.concatenate %97, %117 in 1 : vector<8x32xf32>, vector<8x32xf32> -> vector<8x64xf32>
    %cst_41 = arith.constant dense<0.000000e+00> : vector<8x128xf32>
    %158 = tpu.matmul %157, %7, %cst_41 {dimension_numbers = #tpu.dot_dimension_numbers<[1], [0], [0], [1], [0, 0, 1, 1], [], []>} : vector<8x64xf32>, vector<64x128xf32>, vector<8x128xf32> -> vector<8x128xf32>
    %159 = vector.broadcast %10 : vector<1x128xf32> to vector<8x128xf32>
    %160 = arith.addf %158, %159 : vector<8x128xf32>
    %161 = vector.extract_strided_slice %160 {offsets = [0, 0], sizes = [8, 96], strides = [1, 1]} : vector<8x128xf32> to vector<8x96xf32>
    %162 = arith.negf %161 : vector<8x96xf32>
    %163 = math.exp %162 : vector<8x96xf32>
    %cst_42 = arith.constant 1.000000e+00 : f32
    %164 = vector.broadcast %cst_42 : f32 to vector<8x96xf32>
    %165 = arith.addf %164, %163 : vector<8x96xf32>
    %166 = arith.divf %164, %165 : vector<8x96xf32>
    %167 = vector.extract_strided_slice %166 {offsets = [0, 0], sizes = [8, 32], strides = [1, 1]} : vector<8x96xf32> to vector<8x32xf32>
    %168 = vector.extract_strided_slice %166 {offsets = [0, 32], sizes = [8, 32], strides = [1, 1]} : vector<8x96xf32> to vector<8x32xf32>
    %169 = vector.extract_strided_slice %166 {offsets = [0, 64], sizes = [8, 32], strides = [1, 1]} : vector<8x96xf32> to vector<8x32xf32>
    %170 = vector.extract_strided_slice %160 {offsets = [0, 96], sizes = [8, 32], strides = [1, 1]} : vector<8x128xf32> to vector<8x32xf32>
    %171 = math.tanh %170 : vector<8x32xf32>
    %172 = arith.mulf %168, %115 : vector<8x32xf32>
    %173 = arith.mulf %167, %171 : vector<8x32xf32>
    %174 = arith.addf %172, %173 : vector<8x32xf32>
    %175 = math.tanh %174 : vector<8x32xf32>
    %176 = arith.mulf %169, %175 : vector<8x32xf32>
    %177 = tpu.concatenate %117, %137 in 1 : vector<8x32xf32>, vector<8x16xf32> -> vector<8x48xf32>
    %cst_43 = arith.constant dense<0.000000e+00> : vector<8x64xf32>
    %178 = tpu.matmul %177, %8, %cst_43 {dimension_numbers = #tpu.dot_dimension_numbers<[1], [0], [0], [1], [0, 0, 1, 1], [], []>} : vector<8x48xf32>, vector<48x64xf32>, vector<8x64xf32> -> vector<8x64xf32>
    %179 = vector.broadcast %11 : vector<1x64xf32> to vector<8x64xf32>
    %180 = arith.addf %178, %179 : vector<8x64xf32>
    %181 = vector.extract_strided_slice %180 {offsets = [0, 0], sizes = [8, 48], strides = [1, 1]} : vector<8x64xf32> to vector<8x48xf32>
    %182 = arith.negf %181 : vector<8x48xf32>
    %183 = math.exp %182 : vector<8x48xf32>
    %cst_44 = arith.constant 1.000000e+00 : f32
    %184 = vector.broadcast %cst_44 : f32 to vector<8x48xf32>
    %185 = arith.addf %184, %183 : vector<8x48xf32>
    %186 = arith.divf %184, %185 : vector<8x48xf32>
    %187 = vector.extract_strided_slice %186 {offsets = [0, 0], sizes = [8, 16], strides = [1, 1]} : vector<8x48xf32> to vector<8x16xf32>
    %188 = vector.extract_strided_slice %186 {offsets = [0, 16], sizes = [8, 16], strides = [1, 1]} : vector<8x48xf32> to vector<8x16xf32>
    %189 = vector.extract_strided_slice %186 {offsets = [0, 32], sizes = [8, 16], strides = [1, 1]} : vector<8x48xf32> to vector<8x16xf32>
    %190 = vector.extract_strided_slice %180 {offsets = [0, 48], sizes = [8, 16], strides = [1, 1]} : vector<8x64xf32> to vector<8x16xf32>
    %191 = math.tanh %190 : vector<8x16xf32>
    %192 = arith.mulf %188, %135 : vector<8x16xf32>
    %193 = arith.mulf %187, %191 : vector<8x16xf32>
    %194 = arith.addf %192, %193 : vector<8x16xf32>
    %195 = math.tanh %194 : vector<8x16xf32>
    %196 = arith.mulf %189, %195 : vector<8x16xf32>
    %197 = tpu.concatenate %137, %16 in 1 : vector<8x16xf32>, vector<8x16xf32> -> vector<8x32xf32>
    %cst_45 = arith.constant dense<0.000000e+00> : vector<8x64xf32>
    %198 = tpu.matmul %197, %9, %cst_45 {dimension_numbers = #tpu.dot_dimension_numbers<[1], [0], [0], [1], [0, 0, 1, 1], [], []>} : vector<8x32xf32>, vector<32x64xf32>, vector<8x64xf32> -> vector<8x64xf32>
    %199 = vector.broadcast %12 : vector<1x64xf32> to vector<8x64xf32>
    %200 = arith.addf %198, %199 : vector<8x64xf32>
    %201 = vector.extract_strided_slice %200 {offsets = [0, 0], sizes = [8, 48], strides = [1, 1]} : vector<8x64xf32> to vector<8x48xf32>
    %202 = arith.negf %201 : vector<8x48xf32>
    %203 = math.exp %202 : vector<8x48xf32>
    %cst_46 = arith.constant 1.000000e+00 : f32
    %204 = vector.broadcast %cst_46 : f32 to vector<8x48xf32>
    %205 = arith.addf %204, %203 : vector<8x48xf32>
    %206 = arith.divf %204, %205 : vector<8x48xf32>
    %207 = vector.extract_strided_slice %206 {offsets = [0, 0], sizes = [8, 16], strides = [1, 1]} : vector<8x48xf32> to vector<8x16xf32>
    %208 = vector.extract_strided_slice %206 {offsets = [0, 16], sizes = [8, 16], strides = [1, 1]} : vector<8x48xf32> to vector<8x16xf32>
    %209 = vector.extract_strided_slice %206 {offsets = [0, 32], sizes = [8, 16], strides = [1, 1]} : vector<8x48xf32> to vector<8x16xf32>
    %210 = vector.extract_strided_slice %200 {offsets = [0, 48], sizes = [8, 16], strides = [1, 1]} : vector<8x64xf32> to vector<8x16xf32>
    %211 = math.tanh %210 : vector<8x16xf32>
    %212 = arith.mulf %208, %20 : vector<8x16xf32>
    %213 = arith.mulf %207, %211 : vector<8x16xf32>
    %214 = arith.addf %212, %213 : vector<8x16xf32>
    %215 = math.tanh %214 : vector<8x16xf32>
    %216 = arith.mulf %209, %215 : vector<8x16xf32>
    %217 = vector.extract_strided_slice %5 {offsets = [32, 0], sizes = [8, 128], strides = [1, 1]} : vector<64x128xf32> to vector<8x128xf32>
    %cst_47 = arith.constant dense<0.000000e+00> : vector<8x128xf32>
    %218 = tpu.matmul %156, %6, %cst_47 {dimension_numbers = #tpu.dot_dimension_numbers<[1], [0], [0], [1], [0, 0, 1, 1], [], []>} : vector<8x32xf32>, vector<32x128xf32>, vector<8x128xf32> -> vector<8x128xf32>
    %219 = arith.addf %217, %218 : vector<8x128xf32>
    %220 = vector.extract_strided_slice %219 {offsets = [0, 0], sizes = [8, 96], strides = [1, 1]} : vector<8x128xf32> to vector<8x96xf32>
    %221 = arith.negf %220 : vector<8x96xf32>
    %222 = math.exp %221 : vector<8x96xf32>
    %cst_48 = arith.constant 1.000000e+00 : f32
    %223 = vector.broadcast %cst_48 : f32 to vector<8x96xf32>
    %224 = arith.addf %223, %222 : vector<8x96xf32>
    %225 = arith.divf %223, %224 : vector<8x96xf32>
    %226 = vector.extract_strided_slice %225 {offsets = [0, 0], sizes = [8, 32], strides = [1, 1]} : vector<8x96xf32> to vector<8x32xf32>
    %227 = vector.extract_strided_slice %225 {offsets = [0, 32], sizes = [8, 32], strides = [1, 1]} : vector<8x96xf32> to vector<8x32xf32>
    %228 = vector.extract_strided_slice %225 {offsets = [0, 64], sizes = [8, 32], strides = [1, 1]} : vector<8x96xf32> to vector<8x32xf32>
    %229 = vector.extract_strided_slice %219 {offsets = [0, 96], sizes = [8, 32], strides = [1, 1]} : vector<8x128xf32> to vector<8x32xf32>
    %230 = math.tanh %229 : vector<8x32xf32>
    %231 = arith.mulf %227, %154 : vector<8x32xf32>
    %232 = arith.mulf %226, %230 : vector<8x32xf32>
    %233 = arith.addf %231, %232 : vector<8x32xf32>
    %234 = math.tanh %233 : vector<8x32xf32>
    %235 = arith.mulf %228, %234 : vector<8x32xf32>
    %236 = tpu.concatenate %156, %176 in 1 : vector<8x32xf32>, vector<8x32xf32> -> vector<8x64xf32>
    %cst_49 = arith.constant dense<0.000000e+00> : vector<8x128xf32>
    %237 = tpu.matmul %236, %7, %cst_49 {dimension_numbers = #tpu.dot_dimension_numbers<[1], [0], [0], [1], [0, 0, 1, 1], [], []>} : vector<8x64xf32>, vector<64x128xf32>, vector<8x128xf32> -> vector<8x128xf32>
    %238 = vector.broadcast %10 : vector<1x128xf32> to vector<8x128xf32>
    %239 = arith.addf %237, %238 : vector<8x128xf32>
    %240 = vector.extract_strided_slice %239 {offsets = [0, 0], sizes = [8, 96], strides = [1, 1]} : vector<8x128xf32> to vector<8x96xf32>
    %241 = arith.negf %240 : vector<8x96xf32>
    %242 = math.exp %241 : vector<8x96xf32>
    %cst_50 = arith.constant 1.000000e+00 : f32
    %243 = vector.broadcast %cst_50 : f32 to vector<8x96xf32>
    %244 = arith.addf %243, %242 : vector<8x96xf32>
    %245 = arith.divf %243, %244 : vector<8x96xf32>
    %246 = vector.extract_strided_slice %245 {offsets = [0, 0], sizes = [8, 32], strides = [1, 1]} : vector<8x96xf32> to vector<8x32xf32>
    %247 = vector.extract_strided_slice %245 {offsets = [0, 32], sizes = [8, 32], strides = [1, 1]} : vector<8x96xf32> to vector<8x32xf32>
    %248 = vector.extract_strided_slice %245 {offsets = [0, 64], sizes = [8, 32], strides = [1, 1]} : vector<8x96xf32> to vector<8x32xf32>
    %249 = vector.extract_strided_slice %239 {offsets = [0, 96], sizes = [8, 32], strides = [1, 1]} : vector<8x128xf32> to vector<8x32xf32>
    %250 = math.tanh %249 : vector<8x32xf32>
    %251 = arith.mulf %247, %174 : vector<8x32xf32>
    %252 = arith.mulf %246, %250 : vector<8x32xf32>
    %253 = arith.addf %251, %252 : vector<8x32xf32>
    %254 = math.tanh %253 : vector<8x32xf32>
    %255 = arith.mulf %248, %254 : vector<8x32xf32>
    %256 = tpu.concatenate %176, %196 in 1 : vector<8x32xf32>, vector<8x16xf32> -> vector<8x48xf32>
    %cst_51 = arith.constant dense<0.000000e+00> : vector<8x64xf32>
    %257 = tpu.matmul %256, %8, %cst_51 {dimension_numbers = #tpu.dot_dimension_numbers<[1], [0], [0], [1], [0, 0, 1, 1], [], []>} : vector<8x48xf32>, vector<48x64xf32>, vector<8x64xf32> -> vector<8x64xf32>
    %258 = vector.broadcast %11 : vector<1x64xf32> to vector<8x64xf32>
    %259 = arith.addf %257, %258 : vector<8x64xf32>
    %260 = vector.extract_strided_slice %259 {offsets = [0, 0], sizes = [8, 48], strides = [1, 1]} : vector<8x64xf32> to vector<8x48xf32>
    %261 = arith.negf %260 : vector<8x48xf32>
    %262 = math.exp %261 : vector<8x48xf32>
    %cst_52 = arith.constant 1.000000e+00 : f32
    %263 = vector.broadcast %cst_52 : f32 to vector<8x48xf32>
    %264 = arith.addf %263, %262 : vector<8x48xf32>
    %265 = arith.divf %263, %264 : vector<8x48xf32>
    %266 = vector.extract_strided_slice %265 {offsets = [0, 0], sizes = [8, 16], strides = [1, 1]} : vector<8x48xf32> to vector<8x16xf32>
    %267 = vector.extract_strided_slice %265 {offsets = [0, 16], sizes = [8, 16], strides = [1, 1]} : vector<8x48xf32> to vector<8x16xf32>
    %268 = vector.extract_strided_slice %265 {offsets = [0, 32], sizes = [8, 16], strides = [1, 1]} : vector<8x48xf32> to vector<8x16xf32>
    %269 = vector.extract_strided_slice %259 {offsets = [0, 48], sizes = [8, 16], strides = [1, 1]} : vector<8x64xf32> to vector<8x16xf32>
    %270 = math.tanh %269 : vector<8x16xf32>
    %271 = arith.mulf %267, %194 : vector<8x16xf32>
    %272 = arith.mulf %266, %270 : vector<8x16xf32>
    %273 = arith.addf %271, %272 : vector<8x16xf32>
    %274 = math.tanh %273 : vector<8x16xf32>
    %275 = arith.mulf %268, %274 : vector<8x16xf32>
    %276 = tpu.concatenate %196, %216 in 1 : vector<8x16xf32>, vector<8x16xf32> -> vector<8x32xf32>
    %cst_53 = arith.constant dense<0.000000e+00> : vector<8x64xf32>
    %277 = tpu.matmul %276, %9, %cst_53 {dimension_numbers = #tpu.dot_dimension_numbers<[1], [0], [0], [1], [0, 0, 1, 1], [], []>} : vector<8x32xf32>, vector<32x64xf32>, vector<8x64xf32> -> vector<8x64xf32>
    %278 = vector.broadcast %12 : vector<1x64xf32> to vector<8x64xf32>
    %279 = arith.addf %277, %278 : vector<8x64xf32>
    %280 = vector.extract_strided_slice %279 {offsets = [0, 0], sizes = [8, 48], strides = [1, 1]} : vector<8x64xf32> to vector<8x48xf32>
    %281 = arith.negf %280 : vector<8x48xf32>
    %282 = math.exp %281 : vector<8x48xf32>
    %cst_54 = arith.constant 1.000000e+00 : f32
    %283 = vector.broadcast %cst_54 : f32 to vector<8x48xf32>
    %284 = arith.addf %283, %282 : vector<8x48xf32>
    %285 = arith.divf %283, %284 : vector<8x48xf32>
    %286 = vector.extract_strided_slice %285 {offsets = [0, 0], sizes = [8, 16], strides = [1, 1]} : vector<8x48xf32> to vector<8x16xf32>
    %287 = vector.extract_strided_slice %285 {offsets = [0, 16], sizes = [8, 16], strides = [1, 1]} : vector<8x48xf32> to vector<8x16xf32>
    %288 = vector.extract_strided_slice %285 {offsets = [0, 32], sizes = [8, 16], strides = [1, 1]} : vector<8x48xf32> to vector<8x16xf32>
    %289 = vector.extract_strided_slice %279 {offsets = [0, 48], sizes = [8, 16], strides = [1, 1]} : vector<8x64xf32> to vector<8x16xf32>
    %290 = math.tanh %289 : vector<8x16xf32>
    %291 = arith.mulf %287, %214 : vector<8x16xf32>
    %292 = arith.mulf %286, %290 : vector<8x16xf32>
    %293 = arith.addf %291, %292 : vector<8x16xf32>
    %294 = math.tanh %293 : vector<8x16xf32>
    %295 = arith.mulf %288, %294 : vector<8x16xf32>
    %296 = vector.extract_strided_slice %5 {offsets = [40, 0], sizes = [8, 128], strides = [1, 1]} : vector<64x128xf32> to vector<8x128xf32>
    %cst_55 = arith.constant dense<0.000000e+00> : vector<8x128xf32>
    %297 = tpu.matmul %235, %6, %cst_55 {dimension_numbers = #tpu.dot_dimension_numbers<[1], [0], [0], [1], [0, 0, 1, 1], [], []>} : vector<8x32xf32>, vector<32x128xf32>, vector<8x128xf32> -> vector<8x128xf32>
    %298 = arith.addf %296, %297 : vector<8x128xf32>
    %299 = vector.extract_strided_slice %298 {offsets = [0, 0], sizes = [8, 96], strides = [1, 1]} : vector<8x128xf32> to vector<8x96xf32>
    %300 = arith.negf %299 : vector<8x96xf32>
    %301 = math.exp %300 : vector<8x96xf32>
    %cst_56 = arith.constant 1.000000e+00 : f32
    %302 = vector.broadcast %cst_56 : f32 to vector<8x96xf32>
    %303 = arith.addf %302, %301 : vector<8x96xf32>
    %304 = arith.divf %302, %303 : vector<8x96xf32>
    %305 = vector.extract_strided_slice %304 {offsets = [0, 0], sizes = [8, 32], strides = [1, 1]} : vector<8x96xf32> to vector<8x32xf32>
    %306 = vector.extract_strided_slice %304 {offsets = [0, 32], sizes = [8, 32], strides = [1, 1]} : vector<8x96xf32> to vector<8x32xf32>
    %307 = vector.extract_strided_slice %304 {offsets = [0, 64], sizes = [8, 32], strides = [1, 1]} : vector<8x96xf32> to vector<8x32xf32>
    %308 = vector.extract_strided_slice %298 {offsets = [0, 96], sizes = [8, 32], strides = [1, 1]} : vector<8x128xf32> to vector<8x32xf32>
    %309 = math.tanh %308 : vector<8x32xf32>
    %310 = arith.mulf %306, %233 : vector<8x32xf32>
    %311 = arith.mulf %305, %309 : vector<8x32xf32>
    %312 = arith.addf %310, %311 : vector<8x32xf32>
    %313 = math.tanh %312 : vector<8x32xf32>
    %314 = arith.mulf %307, %313 : vector<8x32xf32>
    %315 = tpu.concatenate %235, %255 in 1 : vector<8x32xf32>, vector<8x32xf32> -> vector<8x64xf32>
    %cst_57 = arith.constant dense<0.000000e+00> : vector<8x128xf32>
    %316 = tpu.matmul %315, %7, %cst_57 {dimension_numbers = #tpu.dot_dimension_numbers<[1], [0], [0], [1], [0, 0, 1, 1], [], []>} : vector<8x64xf32>, vector<64x128xf32>, vector<8x128xf32> -> vector<8x128xf32>
    %317 = vector.broadcast %10 : vector<1x128xf32> to vector<8x128xf32>
    %318 = arith.addf %316, %317 : vector<8x128xf32>
    %319 = vector.extract_strided_slice %318 {offsets = [0, 0], sizes = [8, 96], strides = [1, 1]} : vector<8x128xf32> to vector<8x96xf32>
    %320 = arith.negf %319 : vector<8x96xf32>
    %321 = math.exp %320 : vector<8x96xf32>
    %cst_58 = arith.constant 1.000000e+00 : f32
    %322 = vector.broadcast %cst_58 : f32 to vector<8x96xf32>
    %323 = arith.addf %322, %321 : vector<8x96xf32>
    %324 = arith.divf %322, %323 : vector<8x96xf32>
    %325 = vector.extract_strided_slice %324 {offsets = [0, 0], sizes = [8, 32], strides = [1, 1]} : vector<8x96xf32> to vector<8x32xf32>
    %326 = vector.extract_strided_slice %324 {offsets = [0, 32], sizes = [8, 32], strides = [1, 1]} : vector<8x96xf32> to vector<8x32xf32>
    %327 = vector.extract_strided_slice %324 {offsets = [0, 64], sizes = [8, 32], strides = [1, 1]} : vector<8x96xf32> to vector<8x32xf32>
    %328 = vector.extract_strided_slice %318 {offsets = [0, 96], sizes = [8, 32], strides = [1, 1]} : vector<8x128xf32> to vector<8x32xf32>
    %329 = math.tanh %328 : vector<8x32xf32>
    %330 = arith.mulf %326, %253 : vector<8x32xf32>
    %331 = arith.mulf %325, %329 : vector<8x32xf32>
    %332 = arith.addf %330, %331 : vector<8x32xf32>
    %333 = math.tanh %332 : vector<8x32xf32>
    %334 = arith.mulf %327, %333 : vector<8x32xf32>
    %335 = tpu.concatenate %255, %275 in 1 : vector<8x32xf32>, vector<8x16xf32> -> vector<8x48xf32>
    %cst_59 = arith.constant dense<0.000000e+00> : vector<8x64xf32>
    %336 = tpu.matmul %335, %8, %cst_59 {dimension_numbers = #tpu.dot_dimension_numbers<[1], [0], [0], [1], [0, 0, 1, 1], [], []>} : vector<8x48xf32>, vector<48x64xf32>, vector<8x64xf32> -> vector<8x64xf32>
    %337 = vector.broadcast %11 : vector<1x64xf32> to vector<8x64xf32>
    %338 = arith.addf %336, %337 : vector<8x64xf32>
    %339 = vector.extract_strided_slice %338 {offsets = [0, 0], sizes = [8, 48], strides = [1, 1]} : vector<8x64xf32> to vector<8x48xf32>
    %340 = arith.negf %339 : vector<8x48xf32>
    %341 = math.exp %340 : vector<8x48xf32>
    %cst_60 = arith.constant 1.000000e+00 : f32
    %342 = vector.broadcast %cst_60 : f32 to vector<8x48xf32>
    %343 = arith.addf %342, %341 : vector<8x48xf32>
    %344 = arith.divf %342, %343 : vector<8x48xf32>
    %345 = vector.extract_strided_slice %344 {offsets = [0, 0], sizes = [8, 16], strides = [1, 1]} : vector<8x48xf32> to vector<8x16xf32>
    %346 = vector.extract_strided_slice %344 {offsets = [0, 16], sizes = [8, 16], strides = [1, 1]} : vector<8x48xf32> to vector<8x16xf32>
    %347 = vector.extract_strided_slice %344 {offsets = [0, 32], sizes = [8, 16], strides = [1, 1]} : vector<8x48xf32> to vector<8x16xf32>
    %348 = vector.extract_strided_slice %338 {offsets = [0, 48], sizes = [8, 16], strides = [1, 1]} : vector<8x64xf32> to vector<8x16xf32>
    %349 = math.tanh %348 : vector<8x16xf32>
    %350 = arith.mulf %346, %273 : vector<8x16xf32>
    %351 = arith.mulf %345, %349 : vector<8x16xf32>
    %352 = arith.addf %350, %351 : vector<8x16xf32>
    %353 = math.tanh %352 : vector<8x16xf32>
    %354 = arith.mulf %347, %353 : vector<8x16xf32>
    %355 = tpu.concatenate %275, %295 in 1 : vector<8x16xf32>, vector<8x16xf32> -> vector<8x32xf32>
    %cst_61 = arith.constant dense<0.000000e+00> : vector<8x64xf32>
    %356 = tpu.matmul %355, %9, %cst_61 {dimension_numbers = #tpu.dot_dimension_numbers<[1], [0], [0], [1], [0, 0, 1, 1], [], []>} : vector<8x32xf32>, vector<32x64xf32>, vector<8x64xf32> -> vector<8x64xf32>
    %357 = vector.broadcast %12 : vector<1x64xf32> to vector<8x64xf32>
    %358 = arith.addf %356, %357 : vector<8x64xf32>
    %359 = vector.extract_strided_slice %358 {offsets = [0, 0], sizes = [8, 48], strides = [1, 1]} : vector<8x64xf32> to vector<8x48xf32>
    %360 = arith.negf %359 : vector<8x48xf32>
    %361 = math.exp %360 : vector<8x48xf32>
    %cst_62 = arith.constant 1.000000e+00 : f32
    %362 = vector.broadcast %cst_62 : f32 to vector<8x48xf32>
    %363 = arith.addf %362, %361 : vector<8x48xf32>
    %364 = arith.divf %362, %363 : vector<8x48xf32>
    %365 = vector.extract_strided_slice %364 {offsets = [0, 0], sizes = [8, 16], strides = [1, 1]} : vector<8x48xf32> to vector<8x16xf32>
    %366 = vector.extract_strided_slice %364 {offsets = [0, 16], sizes = [8, 16], strides = [1, 1]} : vector<8x48xf32> to vector<8x16xf32>
    %367 = vector.extract_strided_slice %364 {offsets = [0, 32], sizes = [8, 16], strides = [1, 1]} : vector<8x48xf32> to vector<8x16xf32>
    %368 = vector.extract_strided_slice %358 {offsets = [0, 48], sizes = [8, 16], strides = [1, 1]} : vector<8x64xf32> to vector<8x16xf32>
    %369 = math.tanh %368 : vector<8x16xf32>
    %370 = arith.mulf %366, %293 : vector<8x16xf32>
    %371 = arith.mulf %365, %369 : vector<8x16xf32>
    %372 = arith.addf %370, %371 : vector<8x16xf32>
    %373 = math.tanh %372 : vector<8x16xf32>
    %374 = arith.mulf %367, %373 : vector<8x16xf32>
    %375 = vector.extract_strided_slice %5 {offsets = [48, 0], sizes = [8, 128], strides = [1, 1]} : vector<64x128xf32> to vector<8x128xf32>
    %cst_63 = arith.constant dense<0.000000e+00> : vector<8x128xf32>
    %376 = tpu.matmul %314, %6, %cst_63 {dimension_numbers = #tpu.dot_dimension_numbers<[1], [0], [0], [1], [0, 0, 1, 1], [], []>} : vector<8x32xf32>, vector<32x128xf32>, vector<8x128xf32> -> vector<8x128xf32>
    %377 = arith.addf %375, %376 : vector<8x128xf32>
    %378 = vector.extract_strided_slice %377 {offsets = [0, 0], sizes = [8, 96], strides = [1, 1]} : vector<8x128xf32> to vector<8x96xf32>
    %379 = arith.negf %378 : vector<8x96xf32>
    %380 = math.exp %379 : vector<8x96xf32>
    %cst_64 = arith.constant 1.000000e+00 : f32
    %381 = vector.broadcast %cst_64 : f32 to vector<8x96xf32>
    %382 = arith.addf %381, %380 : vector<8x96xf32>
    %383 = arith.divf %381, %382 : vector<8x96xf32>
    %384 = vector.extract_strided_slice %383 {offsets = [0, 0], sizes = [8, 32], strides = [1, 1]} : vector<8x96xf32> to vector<8x32xf32>
    %385 = vector.extract_strided_slice %383 {offsets = [0, 32], sizes = [8, 32], strides = [1, 1]} : vector<8x96xf32> to vector<8x32xf32>
    %386 = vector.extract_strided_slice %383 {offsets = [0, 64], sizes = [8, 32], strides = [1, 1]} : vector<8x96xf32> to vector<8x32xf32>
    %387 = vector.extract_strided_slice %377 {offsets = [0, 96], sizes = [8, 32], strides = [1, 1]} : vector<8x128xf32> to vector<8x32xf32>
    %388 = math.tanh %387 : vector<8x32xf32>
    %389 = arith.mulf %385, %312 : vector<8x32xf32>
    %390 = arith.mulf %384, %388 : vector<8x32xf32>
    %391 = arith.addf %389, %390 : vector<8x32xf32>
    %392 = math.tanh %391 : vector<8x32xf32>
    %393 = arith.mulf %386, %392 : vector<8x32xf32>
    %394 = tpu.concatenate %314, %334 in 1 : vector<8x32xf32>, vector<8x32xf32> -> vector<8x64xf32>
    %cst_65 = arith.constant dense<0.000000e+00> : vector<8x128xf32>
    %395 = tpu.matmul %394, %7, %cst_65 {dimension_numbers = #tpu.dot_dimension_numbers<[1], [0], [0], [1], [0, 0, 1, 1], [], []>} : vector<8x64xf32>, vector<64x128xf32>, vector<8x128xf32> -> vector<8x128xf32>
    %396 = vector.broadcast %10 : vector<1x128xf32> to vector<8x128xf32>
    %397 = arith.addf %395, %396 : vector<8x128xf32>
    %398 = vector.extract_strided_slice %397 {offsets = [0, 0], sizes = [8, 96], strides = [1, 1]} : vector<8x128xf32> to vector<8x96xf32>
    %399 = arith.negf %398 : vector<8x96xf32>
    %400 = math.exp %399 : vector<8x96xf32>
    %cst_66 = arith.constant 1.000000e+00 : f32
    %401 = vector.broadcast %cst_66 : f32 to vector<8x96xf32>
    %402 = arith.addf %401, %400 : vector<8x96xf32>
    %403 = arith.divf %401, %402 : vector<8x96xf32>
    %404 = vector.extract_strided_slice %403 {offsets = [0, 0], sizes = [8, 32], strides = [1, 1]} : vector<8x96xf32> to vector<8x32xf32>
    %405 = vector.extract_strided_slice %403 {offsets = [0, 32], sizes = [8, 32], strides = [1, 1]} : vector<8x96xf32> to vector<8x32xf32>
    %406 = vector.extract_strided_slice %403 {offsets = [0, 64], sizes = [8, 32], strides = [1, 1]} : vector<8x96xf32> to vector<8x32xf32>
    %407 = vector.extract_strided_slice %397 {offsets = [0, 96], sizes = [8, 32], strides = [1, 1]} : vector<8x128xf32> to vector<8x32xf32>
    %408 = math.tanh %407 : vector<8x32xf32>
    %409 = arith.mulf %405, %332 : vector<8x32xf32>
    %410 = arith.mulf %404, %408 : vector<8x32xf32>
    %411 = arith.addf %409, %410 : vector<8x32xf32>
    %412 = math.tanh %411 : vector<8x32xf32>
    %413 = arith.mulf %406, %412 : vector<8x32xf32>
    %414 = tpu.concatenate %334, %354 in 1 : vector<8x32xf32>, vector<8x16xf32> -> vector<8x48xf32>
    %cst_67 = arith.constant dense<0.000000e+00> : vector<8x64xf32>
    %415 = tpu.matmul %414, %8, %cst_67 {dimension_numbers = #tpu.dot_dimension_numbers<[1], [0], [0], [1], [0, 0, 1, 1], [], []>} : vector<8x48xf32>, vector<48x64xf32>, vector<8x64xf32> -> vector<8x64xf32>
    %416 = vector.broadcast %11 : vector<1x64xf32> to vector<8x64xf32>
    %417 = arith.addf %415, %416 : vector<8x64xf32>
    %418 = vector.extract_strided_slice %417 {offsets = [0, 0], sizes = [8, 48], strides = [1, 1]} : vector<8x64xf32> to vector<8x48xf32>
    %419 = arith.negf %418 : vector<8x48xf32>
    %420 = math.exp %419 : vector<8x48xf32>
    %cst_68 = arith.constant 1.000000e+00 : f32
    %421 = vector.broadcast %cst_68 : f32 to vector<8x48xf32>
    %422 = arith.addf %421, %420 : vector<8x48xf32>
    %423 = arith.divf %421, %422 : vector<8x48xf32>
    %424 = vector.extract_strided_slice %423 {offsets = [0, 0], sizes = [8, 16], strides = [1, 1]} : vector<8x48xf32> to vector<8x16xf32>
    %425 = vector.extract_strided_slice %423 {offsets = [0, 16], sizes = [8, 16], strides = [1, 1]} : vector<8x48xf32> to vector<8x16xf32>
    %426 = vector.extract_strided_slice %423 {offsets = [0, 32], sizes = [8, 16], strides = [1, 1]} : vector<8x48xf32> to vector<8x16xf32>
    %427 = vector.extract_strided_slice %417 {offsets = [0, 48], sizes = [8, 16], strides = [1, 1]} : vector<8x64xf32> to vector<8x16xf32>
    %428 = math.tanh %427 : vector<8x16xf32>
    %429 = arith.mulf %425, %352 : vector<8x16xf32>
    %430 = arith.mulf %424, %428 : vector<8x16xf32>
    %431 = arith.addf %429, %430 : vector<8x16xf32>
    %432 = math.tanh %431 : vector<8x16xf32>
    %433 = arith.mulf %426, %432 : vector<8x16xf32>
    %434 = tpu.concatenate %354, %374 in 1 : vector<8x16xf32>, vector<8x16xf32> -> vector<8x32xf32>
    %cst_69 = arith.constant dense<0.000000e+00> : vector<8x64xf32>
    %435 = tpu.matmul %434, %9, %cst_69 {dimension_numbers = #tpu.dot_dimension_numbers<[1], [0], [0], [1], [0, 0, 1, 1], [], []>} : vector<8x32xf32>, vector<32x64xf32>, vector<8x64xf32> -> vector<8x64xf32>
    %436 = vector.broadcast %12 : vector<1x64xf32> to vector<8x64xf32>
    %437 = arith.addf %435, %436 : vector<8x64xf32>
    %438 = vector.extract_strided_slice %437 {offsets = [0, 0], sizes = [8, 48], strides = [1, 1]} : vector<8x64xf32> to vector<8x48xf32>
    %439 = arith.negf %438 : vector<8x48xf32>
    %440 = math.exp %439 : vector<8x48xf32>
    %cst_70 = arith.constant 1.000000e+00 : f32
    %441 = vector.broadcast %cst_70 : f32 to vector<8x48xf32>
    %442 = arith.addf %441, %440 : vector<8x48xf32>
    %443 = arith.divf %441, %442 : vector<8x48xf32>
    %444 = vector.extract_strided_slice %443 {offsets = [0, 0], sizes = [8, 16], strides = [1, 1]} : vector<8x48xf32> to vector<8x16xf32>
    %445 = vector.extract_strided_slice %443 {offsets = [0, 16], sizes = [8, 16], strides = [1, 1]} : vector<8x48xf32> to vector<8x16xf32>
    %446 = vector.extract_strided_slice %443 {offsets = [0, 32], sizes = [8, 16], strides = [1, 1]} : vector<8x48xf32> to vector<8x16xf32>
    %447 = vector.extract_strided_slice %437 {offsets = [0, 48], sizes = [8, 16], strides = [1, 1]} : vector<8x64xf32> to vector<8x16xf32>
    %448 = math.tanh %447 : vector<8x16xf32>
    %449 = arith.mulf %445, %372 : vector<8x16xf32>
    %450 = arith.mulf %444, %448 : vector<8x16xf32>
    %451 = arith.addf %449, %450 : vector<8x16xf32>
    %452 = math.tanh %451 : vector<8x16xf32>
    %453 = arith.mulf %446, %452 : vector<8x16xf32>
    %454 = vector.extract_strided_slice %5 {offsets = [56, 0], sizes = [8, 128], strides = [1, 1]} : vector<64x128xf32> to vector<8x128xf32>
    %cst_71 = arith.constant dense<0.000000e+00> : vector<8x128xf32>
    %455 = tpu.matmul %393, %6, %cst_71 {dimension_numbers = #tpu.dot_dimension_numbers<[1], [0], [0], [1], [0, 0, 1, 1], [], []>} : vector<8x32xf32>, vector<32x128xf32>, vector<8x128xf32> -> vector<8x128xf32>
    %456 = arith.addf %454, %455 : vector<8x128xf32>
    %457 = vector.extract_strided_slice %456 {offsets = [0, 0], sizes = [8, 96], strides = [1, 1]} : vector<8x128xf32> to vector<8x96xf32>
    %458 = arith.negf %457 : vector<8x96xf32>
    %459 = math.exp %458 : vector<8x96xf32>
    %cst_72 = arith.constant 1.000000e+00 : f32
    %460 = vector.broadcast %cst_72 : f32 to vector<8x96xf32>
    %461 = arith.addf %460, %459 : vector<8x96xf32>
    %462 = arith.divf %460, %461 : vector<8x96xf32>
    %463 = vector.extract_strided_slice %462 {offsets = [0, 0], sizes = [8, 32], strides = [1, 1]} : vector<8x96xf32> to vector<8x32xf32>
    %464 = vector.extract_strided_slice %462 {offsets = [0, 32], sizes = [8, 32], strides = [1, 1]} : vector<8x96xf32> to vector<8x32xf32>
    %465 = vector.extract_strided_slice %462 {offsets = [0, 64], sizes = [8, 32], strides = [1, 1]} : vector<8x96xf32> to vector<8x32xf32>
    %466 = vector.extract_strided_slice %456 {offsets = [0, 96], sizes = [8, 32], strides = [1, 1]} : vector<8x128xf32> to vector<8x32xf32>
    %467 = math.tanh %466 : vector<8x32xf32>
    %468 = arith.mulf %464, %391 : vector<8x32xf32>
    %469 = arith.mulf %463, %467 : vector<8x32xf32>
    %470 = arith.addf %468, %469 : vector<8x32xf32>
    %471 = math.tanh %470 : vector<8x32xf32>
    %472 = arith.mulf %465, %471 : vector<8x32xf32>
    %473 = tpu.concatenate %393, %413 in 1 : vector<8x32xf32>, vector<8x32xf32> -> vector<8x64xf32>
    %cst_73 = arith.constant dense<0.000000e+00> : vector<8x128xf32>
    %474 = tpu.matmul %473, %7, %cst_73 {dimension_numbers = #tpu.dot_dimension_numbers<[1], [0], [0], [1], [0, 0, 1, 1], [], []>} : vector<8x64xf32>, vector<64x128xf32>, vector<8x128xf32> -> vector<8x128xf32>
    %475 = vector.broadcast %10 : vector<1x128xf32> to vector<8x128xf32>
    %476 = arith.addf %474, %475 : vector<8x128xf32>
    %477 = vector.extract_strided_slice %476 {offsets = [0, 0], sizes = [8, 96], strides = [1, 1]} : vector<8x128xf32> to vector<8x96xf32>
    %478 = arith.negf %477 : vector<8x96xf32>
    %479 = math.exp %478 : vector<8x96xf32>
    %cst_74 = arith.constant 1.000000e+00 : f32
    %480 = vector.broadcast %cst_74 : f32 to vector<8x96xf32>
    %481 = arith.addf %480, %479 : vector<8x96xf32>
    %482 = arith.divf %480, %481 : vector<8x96xf32>
    %483 = vector.extract_strided_slice %482 {offsets = [0, 0], sizes = [8, 32], strides = [1, 1]} : vector<8x96xf32> to vector<8x32xf32>
    %484 = vector.extract_strided_slice %482 {offsets = [0, 32], sizes = [8, 32], strides = [1, 1]} : vector<8x96xf32> to vector<8x32xf32>
    %485 = vector.extract_strided_slice %482 {offsets = [0, 64], sizes = [8, 32], strides = [1, 1]} : vector<8x96xf32> to vector<8x32xf32>
    %486 = vector.extract_strided_slice %476 {offsets = [0, 96], sizes = [8, 32], strides = [1, 1]} : vector<8x128xf32> to vector<8x32xf32>
    %487 = math.tanh %486 : vector<8x32xf32>
    %488 = arith.mulf %484, %411 : vector<8x32xf32>
    %489 = arith.mulf %483, %487 : vector<8x32xf32>
    %490 = arith.addf %488, %489 : vector<8x32xf32>
    %491 = math.tanh %490 : vector<8x32xf32>
    %492 = arith.mulf %485, %491 : vector<8x32xf32>
    %493 = tpu.concatenate %413, %433 in 1 : vector<8x32xf32>, vector<8x16xf32> -> vector<8x48xf32>
    %cst_75 = arith.constant dense<0.000000e+00> : vector<8x64xf32>
    %494 = tpu.matmul %493, %8, %cst_75 {dimension_numbers = #tpu.dot_dimension_numbers<[1], [0], [0], [1], [0, 0, 1, 1], [], []>} : vector<8x48xf32>, vector<48x64xf32>, vector<8x64xf32> -> vector<8x64xf32>
    %495 = vector.broadcast %11 : vector<1x64xf32> to vector<8x64xf32>
    %496 = arith.addf %494, %495 : vector<8x64xf32>
    %497 = vector.extract_strided_slice %496 {offsets = [0, 0], sizes = [8, 48], strides = [1, 1]} : vector<8x64xf32> to vector<8x48xf32>
    %498 = arith.negf %497 : vector<8x48xf32>
    %499 = math.exp %498 : vector<8x48xf32>
    %cst_76 = arith.constant 1.000000e+00 : f32
    %500 = vector.broadcast %cst_76 : f32 to vector<8x48xf32>
    %501 = arith.addf %500, %499 : vector<8x48xf32>
    %502 = arith.divf %500, %501 : vector<8x48xf32>
    %503 = vector.extract_strided_slice %502 {offsets = [0, 0], sizes = [8, 16], strides = [1, 1]} : vector<8x48xf32> to vector<8x16xf32>
    %504 = vector.extract_strided_slice %502 {offsets = [0, 16], sizes = [8, 16], strides = [1, 1]} : vector<8x48xf32> to vector<8x16xf32>
    %505 = vector.extract_strided_slice %502 {offsets = [0, 32], sizes = [8, 16], strides = [1, 1]} : vector<8x48xf32> to vector<8x16xf32>
    %506 = vector.extract_strided_slice %496 {offsets = [0, 48], sizes = [8, 16], strides = [1, 1]} : vector<8x64xf32> to vector<8x16xf32>
    %507 = math.tanh %506 : vector<8x16xf32>
    %508 = arith.mulf %504, %431 : vector<8x16xf32>
    %509 = arith.mulf %503, %507 : vector<8x16xf32>
    %510 = arith.addf %508, %509 : vector<8x16xf32>
    %511 = math.tanh %510 : vector<8x16xf32>
    %512 = arith.mulf %505, %511 : vector<8x16xf32>
    %513 = tpu.concatenate %433, %453 in 1 : vector<8x16xf32>, vector<8x16xf32> -> vector<8x32xf32>
    %cst_77 = arith.constant dense<0.000000e+00> : vector<8x64xf32>
    %514 = tpu.matmul %513, %9, %cst_77 {dimension_numbers = #tpu.dot_dimension_numbers<[1], [0], [0], [1], [0, 0, 1, 1], [], []>} : vector<8x32xf32>, vector<32x64xf32>, vector<8x64xf32> -> vector<8x64xf32>
    %515 = vector.broadcast %12 : vector<1x64xf32> to vector<8x64xf32>
    %516 = arith.addf %514, %515 : vector<8x64xf32>
    %517 = vector.extract_strided_slice %516 {offsets = [0, 0], sizes = [8, 48], strides = [1, 1]} : vector<8x64xf32> to vector<8x48xf32>
    %518 = arith.negf %517 : vector<8x48xf32>
    %519 = math.exp %518 : vector<8x48xf32>
    %cst_78 = arith.constant 1.000000e+00 : f32
    %520 = vector.broadcast %cst_78 : f32 to vector<8x48xf32>
    %521 = arith.addf %520, %519 : vector<8x48xf32>
    %522 = arith.divf %520, %521 : vector<8x48xf32>
    %523 = vector.extract_strided_slice %522 {offsets = [0, 0], sizes = [8, 16], strides = [1, 1]} : vector<8x48xf32> to vector<8x16xf32>
    %524 = vector.extract_strided_slice %522 {offsets = [0, 16], sizes = [8, 16], strides = [1, 1]} : vector<8x48xf32> to vector<8x16xf32>
    %525 = vector.extract_strided_slice %522 {offsets = [0, 32], sizes = [8, 16], strides = [1, 1]} : vector<8x48xf32> to vector<8x16xf32>
    %526 = vector.extract_strided_slice %516 {offsets = [0, 48], sizes = [8, 16], strides = [1, 1]} : vector<8x64xf32> to vector<8x16xf32>
    %527 = math.tanh %526 : vector<8x16xf32>
    %528 = arith.mulf %524, %451 : vector<8x16xf32>
    %529 = arith.mulf %523, %527 : vector<8x16xf32>
    %530 = arith.addf %528, %529 : vector<8x16xf32>
    %531 = math.tanh %530 : vector<8x16xf32>
    %532 = arith.mulf %525, %531 : vector<8x16xf32>
    %533 = tpu.concatenate %472, %492 in 1 : vector<8x32xf32>, vector<8x32xf32> -> vector<8x64xf32>
    %cst_79 = arith.constant dense<0.000000e+00> : vector<8x128xf32>
    %534 = tpu.matmul %533, %7, %cst_79 {dimension_numbers = #tpu.dot_dimension_numbers<[1], [0], [0], [1], [0, 0, 1, 1], [], []>} : vector<8x64xf32>, vector<64x128xf32>, vector<8x128xf32> -> vector<8x128xf32>
    %535 = vector.broadcast %10 : vector<1x128xf32> to vector<8x128xf32>
    %536 = arith.addf %534, %535 : vector<8x128xf32>
    %537 = vector.extract_strided_slice %536 {offsets = [0, 0], sizes = [8, 96], strides = [1, 1]} : vector<8x128xf32> to vector<8x96xf32>
    %538 = arith.negf %537 : vector<8x96xf32>
    %539 = math.exp %538 : vector<8x96xf32>
    %cst_80 = arith.constant 1.000000e+00 : f32
    %540 = vector.broadcast %cst_80 : f32 to vector<8x96xf32>
    %541 = arith.addf %540, %539 : vector<8x96xf32>
    %542 = arith.divf %540, %541 : vector<8x96xf32>
    %543 = vector.extract_strided_slice %542 {offsets = [0, 0], sizes = [8, 32], strides = [1, 1]} : vector<8x96xf32> to vector<8x32xf32>
    %544 = vector.extract_strided_slice %542 {offsets = [0, 32], sizes = [8, 32], strides = [1, 1]} : vector<8x96xf32> to vector<8x32xf32>
    %545 = vector.extract_strided_slice %542 {offsets = [0, 64], sizes = [8, 32], strides = [1, 1]} : vector<8x96xf32> to vector<8x32xf32>
    %546 = vector.extract_strided_slice %536 {offsets = [0, 96], sizes = [8, 32], strides = [1, 1]} : vector<8x128xf32> to vector<8x32xf32>
    %547 = math.tanh %546 : vector<8x32xf32>
    %548 = arith.mulf %544, %490 : vector<8x32xf32>
    %549 = arith.mulf %543, %547 : vector<8x32xf32>
    %550 = arith.addf %548, %549 : vector<8x32xf32>
    %551 = math.tanh %550 : vector<8x32xf32>
    %552 = arith.mulf %545, %551 : vector<8x32xf32>
    %553 = tpu.concatenate %492, %512 in 1 : vector<8x32xf32>, vector<8x16xf32> -> vector<8x48xf32>
    %cst_81 = arith.constant dense<0.000000e+00> : vector<8x64xf32>
    %554 = tpu.matmul %553, %8, %cst_81 {dimension_numbers = #tpu.dot_dimension_numbers<[1], [0], [0], [1], [0, 0, 1, 1], [], []>} : vector<8x48xf32>, vector<48x64xf32>, vector<8x64xf32> -> vector<8x64xf32>
    %555 = vector.broadcast %11 : vector<1x64xf32> to vector<8x64xf32>
    %556 = arith.addf %554, %555 : vector<8x64xf32>
    %557 = vector.extract_strided_slice %556 {offsets = [0, 0], sizes = [8, 48], strides = [1, 1]} : vector<8x64xf32> to vector<8x48xf32>
    %558 = arith.negf %557 : vector<8x48xf32>
    %559 = math.exp %558 : vector<8x48xf32>
    %cst_82 = arith.constant 1.000000e+00 : f32
    %560 = vector.broadcast %cst_82 : f32 to vector<8x48xf32>
    %561 = arith.addf %560, %559 : vector<8x48xf32>
    %562 = arith.divf %560, %561 : vector<8x48xf32>
    %563 = vector.extract_strided_slice %562 {offsets = [0, 0], sizes = [8, 16], strides = [1, 1]} : vector<8x48xf32> to vector<8x16xf32>
    %564 = vector.extract_strided_slice %562 {offsets = [0, 16], sizes = [8, 16], strides = [1, 1]} : vector<8x48xf32> to vector<8x16xf32>
    %565 = vector.extract_strided_slice %562 {offsets = [0, 32], sizes = [8, 16], strides = [1, 1]} : vector<8x48xf32> to vector<8x16xf32>
    %566 = vector.extract_strided_slice %556 {offsets = [0, 48], sizes = [8, 16], strides = [1, 1]} : vector<8x64xf32> to vector<8x16xf32>
    %567 = math.tanh %566 : vector<8x16xf32>
    %568 = arith.mulf %564, %510 : vector<8x16xf32>
    %569 = arith.mulf %563, %567 : vector<8x16xf32>
    %570 = arith.addf %568, %569 : vector<8x16xf32>
    %571 = math.tanh %570 : vector<8x16xf32>
    %572 = arith.mulf %565, %571 : vector<8x16xf32>
    %573 = tpu.concatenate %512, %532 in 1 : vector<8x16xf32>, vector<8x16xf32> -> vector<8x32xf32>
    %cst_83 = arith.constant dense<0.000000e+00> : vector<8x64xf32>
    %574 = tpu.matmul %573, %9, %cst_83 {dimension_numbers = #tpu.dot_dimension_numbers<[1], [0], [0], [1], [0, 0, 1, 1], [], []>} : vector<8x32xf32>, vector<32x64xf32>, vector<8x64xf32> -> vector<8x64xf32>
    %575 = vector.broadcast %12 : vector<1x64xf32> to vector<8x64xf32>
    %576 = arith.addf %574, %575 : vector<8x64xf32>
    %577 = vector.extract_strided_slice %576 {offsets = [0, 0], sizes = [8, 48], strides = [1, 1]} : vector<8x64xf32> to vector<8x48xf32>
    %578 = arith.negf %577 : vector<8x48xf32>
    %579 = math.exp %578 : vector<8x48xf32>
    %cst_84 = arith.constant 1.000000e+00 : f32
    %580 = vector.broadcast %cst_84 : f32 to vector<8x48xf32>
    %581 = arith.addf %580, %579 : vector<8x48xf32>
    %582 = arith.divf %580, %581 : vector<8x48xf32>
    %583 = vector.extract_strided_slice %582 {offsets = [0, 0], sizes = [8, 16], strides = [1, 1]} : vector<8x48xf32> to vector<8x16xf32>
    %584 = vector.extract_strided_slice %582 {offsets = [0, 16], sizes = [8, 16], strides = [1, 1]} : vector<8x48xf32> to vector<8x16xf32>
    %585 = vector.extract_strided_slice %582 {offsets = [0, 32], sizes = [8, 16], strides = [1, 1]} : vector<8x48xf32> to vector<8x16xf32>
    %586 = vector.extract_strided_slice %576 {offsets = [0, 48], sizes = [8, 16], strides = [1, 1]} : vector<8x64xf32> to vector<8x16xf32>
    %587 = math.tanh %586 : vector<8x16xf32>
    %588 = arith.mulf %584, %530 : vector<8x16xf32>
    %589 = arith.mulf %583, %587 : vector<8x16xf32>
    %590 = arith.addf %588, %589 : vector<8x16xf32>
    %591 = math.tanh %590 : vector<8x16xf32>
    %592 = arith.mulf %585, %591 : vector<8x16xf32>
    %593 = tpu.concatenate %552, %572 in 1 : vector<8x32xf32>, vector<8x16xf32> -> vector<8x48xf32>
    %cst_85 = arith.constant dense<0.000000e+00> : vector<8x64xf32>
    %594 = tpu.matmul %593, %8, %cst_85 {dimension_numbers = #tpu.dot_dimension_numbers<[1], [0], [0], [1], [0, 0, 1, 1], [], []>} : vector<8x48xf32>, vector<48x64xf32>, vector<8x64xf32> -> vector<8x64xf32>
    %595 = vector.broadcast %11 : vector<1x64xf32> to vector<8x64xf32>
    %596 = arith.addf %594, %595 : vector<8x64xf32>
    %597 = vector.extract_strided_slice %596 {offsets = [0, 0], sizes = [8, 48], strides = [1, 1]} : vector<8x64xf32> to vector<8x48xf32>
    %598 = arith.negf %597 : vector<8x48xf32>
    %599 = math.exp %598 : vector<8x48xf32>
    %cst_86 = arith.constant 1.000000e+00 : f32
    %600 = vector.broadcast %cst_86 : f32 to vector<8x48xf32>
    %601 = arith.addf %600, %599 : vector<8x48xf32>
    %602 = arith.divf %600, %601 : vector<8x48xf32>
    %603 = vector.extract_strided_slice %602 {offsets = [0, 0], sizes = [8, 16], strides = [1, 1]} : vector<8x48xf32> to vector<8x16xf32>
    %604 = vector.extract_strided_slice %602 {offsets = [0, 16], sizes = [8, 16], strides = [1, 1]} : vector<8x48xf32> to vector<8x16xf32>
    %605 = vector.extract_strided_slice %602 {offsets = [0, 32], sizes = [8, 16], strides = [1, 1]} : vector<8x48xf32> to vector<8x16xf32>
    %606 = vector.extract_strided_slice %596 {offsets = [0, 48], sizes = [8, 16], strides = [1, 1]} : vector<8x64xf32> to vector<8x16xf32>
    %607 = math.tanh %606 : vector<8x16xf32>
    %608 = arith.mulf %604, %570 : vector<8x16xf32>
    %609 = arith.mulf %603, %607 : vector<8x16xf32>
    %610 = arith.addf %608, %609 : vector<8x16xf32>
    %611 = math.tanh %610 : vector<8x16xf32>
    %612 = arith.mulf %605, %611 : vector<8x16xf32>
    %613 = tpu.concatenate %572, %592 in 1 : vector<8x16xf32>, vector<8x16xf32> -> vector<8x32xf32>
    %cst_87 = arith.constant dense<0.000000e+00> : vector<8x64xf32>
    %614 = tpu.matmul %613, %9, %cst_87 {dimension_numbers = #tpu.dot_dimension_numbers<[1], [0], [0], [1], [0, 0, 1, 1], [], []>} : vector<8x32xf32>, vector<32x64xf32>, vector<8x64xf32> -> vector<8x64xf32>
    %615 = vector.broadcast %12 : vector<1x64xf32> to vector<8x64xf32>
    %616 = arith.addf %614, %615 : vector<8x64xf32>
    %617 = vector.extract_strided_slice %616 {offsets = [0, 0], sizes = [8, 48], strides = [1, 1]} : vector<8x64xf32> to vector<8x48xf32>
    %618 = arith.negf %617 : vector<8x48xf32>
    %619 = math.exp %618 : vector<8x48xf32>
    %cst_88 = arith.constant 1.000000e+00 : f32
    %620 = vector.broadcast %cst_88 : f32 to vector<8x48xf32>
    %621 = arith.addf %620, %619 : vector<8x48xf32>
    %622 = arith.divf %620, %621 : vector<8x48xf32>
    %623 = vector.extract_strided_slice %622 {offsets = [0, 0], sizes = [8, 16], strides = [1, 1]} : vector<8x48xf32> to vector<8x16xf32>
    %624 = vector.extract_strided_slice %622 {offsets = [0, 16], sizes = [8, 16], strides = [1, 1]} : vector<8x48xf32> to vector<8x16xf32>
    %625 = vector.extract_strided_slice %622 {offsets = [0, 32], sizes = [8, 16], strides = [1, 1]} : vector<8x48xf32> to vector<8x16xf32>
    %626 = vector.extract_strided_slice %616 {offsets = [0, 48], sizes = [8, 16], strides = [1, 1]} : vector<8x64xf32> to vector<8x16xf32>
    %627 = math.tanh %626 : vector<8x16xf32>
    %628 = arith.mulf %624, %590 : vector<8x16xf32>
    %629 = arith.mulf %623, %627 : vector<8x16xf32>
    %630 = arith.addf %628, %629 : vector<8x16xf32>
    %631 = math.tanh %630 : vector<8x16xf32>
    %632 = arith.mulf %625, %631 : vector<8x16xf32>
    %633 = tpu.concatenate %612, %632 in 1 : vector<8x16xf32>, vector<8x16xf32> -> vector<8x32xf32>
    %cst_89 = arith.constant dense<0.000000e+00> : vector<8x64xf32>
    %634 = tpu.matmul %633, %9, %cst_89 {dimension_numbers = #tpu.dot_dimension_numbers<[1], [0], [0], [1], [0, 0, 1, 1], [], []>} : vector<8x32xf32>, vector<32x64xf32>, vector<8x64xf32> -> vector<8x64xf32>
    %635 = vector.broadcast %12 : vector<1x64xf32> to vector<8x64xf32>
    %636 = arith.addf %634, %635 : vector<8x64xf32>
    %637 = vector.extract_strided_slice %636 {offsets = [0, 0], sizes = [8, 48], strides = [1, 1]} : vector<8x64xf32> to vector<8x48xf32>
    %638 = arith.negf %637 : vector<8x48xf32>
    %639 = math.exp %638 : vector<8x48xf32>
    %cst_90 = arith.constant 1.000000e+00 : f32
    %640 = vector.broadcast %cst_90 : f32 to vector<8x48xf32>
    %641 = arith.addf %640, %639 : vector<8x48xf32>
    %642 = arith.divf %640, %641 : vector<8x48xf32>
    %643 = vector.extract_strided_slice %642 {offsets = [0, 0], sizes = [8, 16], strides = [1, 1]} : vector<8x48xf32> to vector<8x16xf32>
    %644 = vector.extract_strided_slice %642 {offsets = [0, 16], sizes = [8, 16], strides = [1, 1]} : vector<8x48xf32> to vector<8x16xf32>
    %645 = vector.extract_strided_slice %642 {offsets = [0, 32], sizes = [8, 16], strides = [1, 1]} : vector<8x48xf32> to vector<8x16xf32>
    %646 = vector.extract_strided_slice %636 {offsets = [0, 48], sizes = [8, 16], strides = [1, 1]} : vector<8x64xf32> to vector<8x16xf32>
    %647 = math.tanh %646 : vector<8x16xf32>
    %648 = arith.mulf %644, %630 : vector<8x16xf32>
    %649 = arith.mulf %643, %647 : vector<8x16xf32>
    %650 = arith.addf %648, %649 : vector<8x16xf32>
    %651 = math.tanh %650 : vector<8x16xf32>
    %652 = arith.mulf %645, %651 : vector<8x16xf32>
    %653 = tpu.concatenate %216, %295, %374, %453, %532, %592, %632, %652 in 1 : vector<8x16xf32>, vector<8x16xf32>, vector<8x16xf32>, vector<8x16xf32>, vector<8x16xf32>, vector<8x16xf32>, vector<8x16xf32>, vector<8x16xf32> -> vector<8x128xf32>
    %c0_91 = arith.constant 0 : index
    %c0_92 = arith.constant 0 : index
    %654 = vector.load %arg10[%c0_91, %c0_92] : memref<8x128xf32, #tpu.memory_space<vmem>>, vector<8x128xf32>
    tpu.vector_store %arg10[%c0_91, %c0_92], %653 {strides = array<i32>} : memref<8x128xf32, #tpu.memory_space<vmem>>, vector<8x128xf32>,
    return
  }
}

</mosaic_0001>

<bundles_post_ra>
// kernel: lstm_autoencoder_pallas.1
= control target key start
LH: loop header
LB: loop body
LE: loop exit
PB: predicated region body
PF: predicated region fallthrough
CT: control target
= control target key end

     0   :  { %15 = vsyncpa [#allocation3], 0  ;;  %s5825_s0 = inlined_call_operand.vmem [shape: f32[64,16], index: 0, kind: input, shape index: {}]   ;;  %s5826_s1 = inlined_call_operand.hbm [shape: f32[16,128], index: 1, kind: input, shape index: {}]   ;;  %s5827_s2 = inlined_call_operand.hbm [shape: f32[32,128], index: 2, kind: input, shape index: {}]   ;;  %s5828_s3 = inlined_call_operand.vmem [shape: f32[1,128], index: 3, kind: input, shape index: {}]   ;;  %s5829_s4 = inlined_call_operand.vmem [shape: f32[64,128], index: 4, kind: input, shape index: {}]   ;;  %s5830_s5 = inlined_call_operand.vmem [shape: f32[1,128], index: 5, kind: input, shape index: {}]   ;;  %s5831_s6 = inlined_call_operand.vmem [shape: f32[48,64], index: 6, kind: input, shape index: {}]   ;;  %s5832_s7 = inlined_call_operand.hbm [shape: f32[1,64], index: 7, kind: input, shape index: {}]   ;;  %s5833_s8 = inlined_call_operand.vmem [shape: f32[32,64], index: 8, kind: input, shape index: {}]   ;;  %s5834_s9 = inlined_call_operand.vmem [shape: f32[1,64], index: 9, kind: input, shape index: {}]   ;;  %s5835_s10 = inlined_call_operand.vmem [shape: f32[8,128], index: 10, kind: output, shape index: {}]  }
   0x1   :  { %16 = vsyncpa [#allocation5], 0  ;;  %s4947_s13 = smov [#allocation4]   ;;  %s4948_s15 = smov [#allocation2]  }
   0x2   :  { %s36_s14 = sshll.u32 %s4947_s13, 4  ;;  %s24_s16 = sshll.u32 %s4948_s15, 4  ;;  %s37_s14 = int_to_ptr.vmem [resolvable:$true] %s36_s14  ;;  %s5017_s16 = int_to_ptr.vmem [resolvable:$true] %s24_s16 }
   0x3   :  { %s4877_s19 = scalar_lea.hbm %s5827_s2, 512 }
   0x4   :  { %p4878_p0 = scmp.ne.s32.totalorder %s5827_s2, %s4877_s19  ;;  %p4881_p1 = scmp.lt.u32.totalorder %s4877_s19, %s5827_s2 }
   0x6   :  { %p4883_p2 = pnand %p4881_p1, %p4878_p0 }
   0x8   :  { %4886 = shalt.err (!%p4883_p2)
}
   0x9   :  { %s4887_s24 = scalar_lea.vmem %s37_s14, 512  ;;  %p4892_p4 = scmp.lt.s32.totalorder %s37_s14, %s37_s14 }
   0xa   :  { %p4888_p3 = scmp.ne.s32.totalorder %s37_s14, %s4887_s24  ;;  %p4893_p5 = scmp.lt.s32.totalorder %s4887_s24, %s4887_s24 }
   0xc   :  { %p4894_p6 = por %p4893_p5, %p4892_p4 }
   0xe   :  { %p4895_p7 = pnand %p4894_p6, %p4888_p3 }
  0x10   :  { %4898 = shalt.err (!%p4895_p7)
}
  0x11   :  { %s4949_s25 = smov 128   ;;  %s4950_s26 = smov 8  }
  0x12   :  { %42 = dma.hbm_to_vmem [thread:$0]  %s5827_s2, 512, %s37_s14, [#allocation5], %s4949_s25, %s4949_s25, %s4950_s26  }
  0x13   :  { %s4899_s11 = scalar_lea.hbm %s5826_s1, 256 }
  0x14   :  { %p4900_p8 = scmp.ne.s32.totalorder %s5826_s1, %s4899_s11  ;;  %p4903_p9 = scmp.lt.u32.totalorder %s4899_s11, %s5826_s1 }
  0x16   :  { %p4905_p10 = pnand %p4903_p9, %p4900_p8 }
  0x18   :  { %4908 = shalt.err (!%p4905_p10)
}
  0x19   :  { %s4909_s18 = scalar_lea.vmem %s5017_s16, 256  ;;  %p4914_p12 = scmp.lt.s32.totalorder %s5017_s16, %s5017_s16 }
  0x1a   :  { %p4910_p11 = scmp.ne.s32.totalorder %s5017_s16, %s4909_s18  ;;  %p4915_p13 = scmp.lt.s32.totalorder %s4909_s18, %s4909_s18 }
  0x1c   :  { %p4916_p0 = por %p4915_p13, %p4914_p12 }
  0x1e   :  { %p4917_p1 = pnand %p4916_p0, %p4910_p11 }
  0x20   :  { %4920 = shalt.err (!%p4917_p1)
}
  0x21   :  { %30 = dma.hbm_to_vmem [thread:$0]  %s5826_s1, 256, %s5017_s16, [#allocation3], %s4949_s25, %s4949_s25, %s4950_s26  }
  0x22   :  { %s4951_s19 = smov [#allocation6]   ;;  %s4921_s23 = scalar_lea.hbm %s5832_s7, 16 }
  0x23   :  { %s57_s20 = sshll.u32 %s4951_s19, 4  ;;  %p4922_p2 = scmp.ne.s32.totalorder %s5832_s7, %s4921_s23  ;;  %s58_s20 = int_to_ptr.vmem [resolvable:$true] %s57_s20 }
  0x24   :  { %p4925_p3 = scmp.lt.u32.totalorder %s4921_s23, %s5832_s7 }
  0x26   :  { %p4927_p4 = pnand %p4925_p3, %p4922_p2 }
  0x28   :  { %4930 = shalt.err (!%p4927_p4)
}
  0x29   :  { %s4931_s30 = scalar_lea.vmem %s58_s20, 16  ;;  %s4935_s1 = scalar_lea.vmem %s58_s20, 32 }
  0x2a   :  { %p4932_p5 = scmp.ne.s32.totalorder %s58_s20, %s4931_s30  ;;  %p4936_p6 = scmp.lt.s32.totalorder %s58_s20, %s58_s20 }
  0x2b   :  { %p4937_p7 = scmp.lt.s32.totalorder %s4935_s1, %s4931_s30 }
  0x2d   :  { %p4938_p8 = por %p4937_p7, %p4936_p6 }
  0x2f   :  { %p4939_p9 = pnand %p4938_p8, %p4932_p5 }
  0x31   :  { %4942 = shalt.err (!%p4939_p9)
}
  0x32   :  { %60 = dma.hbm_to_vmem [thread:$0]  %s5832_s7, 16, %s58_s20, [#allocation5]  }
  0x33   :  { %4943 = dma.done.wait [#allocation3], 256  }
  0x34   :  { %4944 = vsyncadd [#allocation3], 4294967040 }
  0x35   :  { %4945 = dma.done.wait [#allocation5], 528  }
  0x36   :  { %4946 = vsyncadd [#allocation5], 4294966768  ;;  %v4952_v0 = vmov 0.0|0.0   ;;  %vm4953_vm0 = vmmov 0   ;;  %v4954_v1 = vmov 0.0   ;;  %vm91_vm1 = vcmask 130048  }
  0x37   :  { %4338 = vmatprep.subr.bf16.mxu1 %v4952_v0  ;;  %3894 = vmatprep.mubr.msk.f32.mxu1 %vm4953_vm0, %v4954_v1  ;;  %v82_v2 = vld [vmem:[#allocation2] sm:$0xff]  ;;  %v83_v3 = vld [vmem:[#allocation2 + $0x8] sm:$0xff]  ;;  %v221_v4 = vld [vmem:[#allocation4] sm:$0xff]  ;;  %s4955_s17 = smov 32   ;;  %vm246_vm2 = vcmask 261120   ;;  %vm453_vm3 = vcmask 523264  }
  0x38   :  { %v4334_v5 = vpack.c.bf16 %v83_v3, %v82_v2  ;;  %v222_v6 = vld [vmem:[#allocation4 + $0x8] sm:$0xff]  ;;  %v74_v7 = vld [vmem:[%s5825_s0] sm:$0xff]  ;;  %v224_v10 = vld [vmem:[#allocation4 + $0x18] sm:$0xff]  ;;  %s4957_s23 = smov 96   ;;  %vm764_vm4 = vcmask 392192   ;;  %s4959_s13 = smov 16  }
  0x39   :  { %v5066_v8 = vpack.c.bf16 %v222_v6, %v221_v4  ;;  %3874 = vmatprep.mubr.msk.f32.mxu0 %vm91_vm1, %v74_v7  ;;  %v223_v9 = vld [vmem:[#allocation4 + $0x10] sm:$0xff]  ;;  %v75_v11 = vld [vmem:[%s5825_s0 + $0x8] sm:$0xff]  ;;  %v76_v32 = vld [vmem:[%s5825_s0 + $0x10] sm:$0xff]  ;;  %s4960_s24 = smov 112   ;;  %vm3564_vm5 = vcmask 654336   ;;  %vm3566_vm6 = vcmask 785408  }
  0x3a   :  { %4335 = vmatprep.subr.bf16.mxu0 %v4334_v5  ;;  %v5073_v12 = vpack.c.bf16 %v224_v10, %v223_v9  ;;  %v5090_v13 = vld [vmem:[%s5828_s3] ss:$0 sm:$0xff]  ;;  %v226_v31 = vld [vmem:[%s5829_s4 + $0x8] sm:$0xff]  ;;  %v77_v34 = vld [vmem:[%s5825_s0 + $0x18] sm:$0xff]  ;;  %vm3568_vm7 = vcmask 916480  }
  0x3b   :  { %4340 = vmatpush3.bf16.msra.mxu1 %v5066_v8  ;;  %4337 = vmatpush3.bf16.msra.mxu0 %v4334_v5  ;;  %v225_v30 = vld [vmem:[%s5829_s4] sm:$0xff]  ;;  %v227_v35 = vld [vmem:[%s5829_s4 + $0x10] sm:$0xff]  ;;  %v228_v36 = vld [vmem:[%s5829_s4 + $0x18] sm:$0xff] }
  0x3c   :  { %4341 = vmatprep.subr.bf16.mxu1 %v4952_v0  ;;  %4350 = vmatprep.subr.bf16.mxu0 %v4952_v0  ;;  %v5109_v33 = vpack.c.bf16 %v226_v31, %v225_v30  ;;  %v78_v37 = vld [vmem:[%s5825_s0 + $0x20] sm:$0xff]  ;;  %v5126_v38 = vpack.c.bf16 %v228_v36, %v227_v35  ;;  %v79_v39 = vld [vmem:[%s5825_s0 + $0x28] sm:$0xff]  ;;  %v80_v42 = vld [vmem:[%s5825_s0 + $0x30] sm:$0xff] }
  0x3d   :  { %v229_v40 = vld [vmem:[%s5829_s4 + $0x20] sm:$0xff]  ;;  %v230_v41 = vld [vmem:[%s5829_s4 + $0x28] sm:$0xff]  ;;  %v81_v44 = vld [vmem:[%s5825_s0 + $0x38] sm:$0xff]  ;;  %s4956_s0 = smov 64  }
  0x3e   :  { %3875 = vmatmul.mubr.msk.f32.vlgmr.msra.gmra.mrb[0].mxu0 %vm91_vm1, %v75_v11  ;;  %v5144_v43 = vpack.c.bf16 %v230_v41, %v229_v40  ;;  %v231_v45 = vld [vmem:[%s5829_s4 + $0x30] sm:$0xff]  ;;  %v232_v46 = vld [vmem:[%s5829_s4 + $0x38] sm:$0xff]  ;;  %v5204_v60 = vld [vmem:[%s5830_s5] ss:$0 sm:$0xff] }
  0x3f   :  { %4343 = vmatpush3.bf16.msra.mxu1 %v5073_v12  ;;  %3877 = vmatprep.mubr.msk.f32.mxu0 %vm91_vm1, %v76_v32  ;;  %v5160_v48 = vpack.c.bf16 %v232_v46, %v231_v45  ;;  %v233_v35 = vld [vmem:[%s5831_s6] sm:$0xff]  ;;  %v234_v36 = vld [vmem:[%s5831_s6 + $0x8] sm:$0xff]  ;;  %v236_v40 = vld [vmem:[%s5831_s6 + $0x18] sm:$0xff] }
  0x40   :  { %4344 = vmatprep.subr.bf16.mxu1 %v4952_v0  ;;  %4352 = vmatpush3.bf16.msra.mxu0 %v5109_v33  ;;  %v237_v46 = vld [vmem:[%s5831_s6 + $0x20] sm:$0xff] }
  0x41   :  { %4353 = vmatprep.subr.bf16.mxu0 %v4952_v0 }
  0x42   :  { %3895 = vmatmul.mubr.f32.vlgmr.msra.gmra.mrb[0].mxu1 %v4954_v1  ;;  %3878 = vmatmul.mubr.msk.f32.gmra.mrb[2].mxu0 %vm91_vm1, %v77_v34 }
  0x43   :  { %4346 = vmatpush3.bf16.msra.mxu1 %v5066_v8  ;;  %3905 = vmatprep.mubr.msk.f32.mxu1 %vm4953_vm0, %v4954_v1 }
  0x44   :  { %4347 = vmatprep.subr.bf16.mxu1 %v4952_v0  ;;  %3880 = vmatprep.mubr.msk.f32.mxu0 %vm91_vm1, %v78_v37  ;;  %v5229_v37 = vpack.c.bf16 %v234_v36, %v233_v35 }
  0x45   :  { %4355 = vmatpush3.bf16.msra.mxu0 %v5126_v38 }
  0x46   :  { %3881 = vmatmul.mubr.msk.f32.gmra.mrb[4].mxu0 %vm91_vm1, %v79_v39  ;;  %4356 = vmatprep.subr.bf16.mxu0 %v4952_v0  ;;  %v235_v39 = vld [vmem:[%s5831_s6 + $0x10] sm:$0xff] }
  0x47   :  { %4349 = vmatpush3.bf16.msra.mxu1 %v5073_v12  ;;  %3883 = vmatprep.mubr.msk.f32.mxu0 %vm91_vm1, %v80_v42  ;;  %v5240_v45 = vpack.c.bf16 %v236_v40, %v235_v39 }
  0x48   :  { %4362 = vmatprep.subr.bf16.mxu1 %v4952_v0 }
  0x49   :  { %4358 = vmatpush3.bf16.msra.mxu0 %v5144_v43 }
  0x4a   :  { %3884 = vmatmul.mubr.msk.f32.gmra.mrb[6].mxu0 %vm91_vm1, %v81_v44  ;;  %4359 = vmatprep.subr.bf16.mxu0 %v4952_v0 }
  0x4b   :  { %3924 = vmatprep.mubr.msk.f32.mxu0 %vm4953_vm0, %v4954_v1 }
  0x4d   :  { %4361 = vmatpush3.bf16.msra.mxu0 %v5160_v48 }
  0x4e   :  { %4368 = vmatprep.subr.bf16.mxu0 %v4952_v0 }
 0x111   :  { %v5092_v14 = vpop.f32.mrb[0].mxu0 }
 0x112   :  { %v182_v15 = vpop.f32.mrb[1].mxu0  ;;  %v188_v59 = vadd.f32 %v5092_v14, %v5090_v13 }
 0x113   :  { %v183_v16 = vadd.f32 %v5090_v13, %v182_v15 }
 0x115   :  { %v316_v17 = vpop.f32.mrb[0].mxu1  ;;  %v5168_v51 = vpop.f32.mrb[2].mxu0 }
 0x116   :  { %v320_v18 = vadd.f32 %v316_v17, %v183_v16  ;;  %v3896_v19 = vpop.f32.mrb[1].mxu1  ;;  %v5170_v52 = vpop.f32.mrb[3].mxu0 }
 0x118   :  { %4617 = vtanh.f32 %v320_v18  ;;  %v3586_v21 = vmul.f32 -1.442695, %v320_v18 }
 0x119   :  { %v5172_v53 = vpop.f32.mrb[4].mxu0 }
 0x11a   :  { %4619 = vpow2.f32 %v3586_v21  ;;  %v5174_v54 = vpop.f32.mrb[5].mxu0 }
 0x11d   :  { %v5176_v55 = vpop.f32.mrb[6].mxu0 }
 0x11e   :  { %v5178_v56 = vpop.f32.mrb[7].mxu0 }
 0x122   :  { %v4618_v20 = vpop.eup %4617 }
 0x123   :  { %330 = vrot.lane.b32.xlu0 %v4618_v20, %s4955_s17 }
 0x124   :  { %v4620_v22 = vpop.eup %4619 }
 0x125   :  { %v324_v23 = vadd.f32 1.0, %v4620_v22 }
 0x127   :  { %4621 = vrcp.f32 %v324_v23 }
 0x131   :  { %v4622_v24 = vpop.eup %4621 }
 0x132   :  { %v328_v27 = vmul.f32 0.0, %v4622_v24 }
 0x195   :  { %v331_v25 = vpop.permute.xlu0 %330 }
 0x196   :  { %v333_v26 = vmul.f32 %v4622_v24, %v331_v25 }
 0x198   :  { %335 = vrot.lane.b32.xlu0 %v333_v26, %s4955_s17 }
 0x20a   :  { %v336_v28 = vpop.permute.xlu0 %335 }
 0x20b   :  { %v5097_v29 = vadd.f32 %v336_v28, %v328_v27 }
 0x20d   :  { %4623 = vtanh.f32 %v5097_v29 }
 0x217   :  { %v4624_v47 = vpop.eup %4623 }
 0x218   :  { %341 = vrot.lane.b32.xlu1 %v4624_v47, %s4955_s17  ;;  %v238_v47 = vld [vmem:[%s5831_s6 + $0x28] sm:$0xff]  ;;  %s4958_s6 = smov 80  }
 0x28a   :  { %v342_v49 = vpop.permute.xlu1 %341 }
 0x28b   :  { %v344_v50 = vmul.f32 %v4622_v24, %v342_v49  ;;  %v5257_v49 = vpack.c.bf16 %v238_v47, %v237_v46 }
 0x28d   :  { %346 = vrot.lane.b32.xlu1 %v344_v50, %s4956_s0 }
 0x2ff   :  { %v347_v57 = vpop.permute.xlu1 %346 }
 0x300   :  { %v446_v58 = vsel %vm246_vm2, %v347_v57, 0.0  ;;  %3906 = vmatmul.mubr.msk.f32.vlgmr.msra.gmra.mrb[2].mxu1 %vm246_vm2, %v347_v57 }
 0x301   :  { %3925 = vmatmul.mubr.msk.f32.vlgmr.msra.gmra.mrb[8].mxu0 %vm453_vm3, %v446_v58  ;;  %4364 = vmatpush3.bf16.msra.mxu1 %v5066_v8  ;;  %v193_v58 = vadd.f32 %v5090_v13, %v5170_v52 }
 0x302   :  { %4370 = vmatpush3.bf16.msra.mxu0 %v5109_v33  ;;  %4365 = vmatprep.subr.bf16.mxu1 %v4952_v0 }
 0x303   :  { %4371 = vmatprep.subr.bf16.mxu0 %v4952_v0  ;;  %3935 = vmatprep.mubr.msk.f32.mxu1 %vm4953_vm0, %v4954_v1 }
 0x304   :  { %3954 = vmatprep.mubr.msk.f32.mxu0 %vm4953_vm0, %v4954_v1 }
 0x305   :  { %4367 = vmatpush3.bf16.msra.mxu1 %v5073_v12 }
 0x306   :  { %4373 = vmatpush3.bf16.msra.mxu0 %v5126_v38  ;;  %4380 = vmatprep.subr.bf16.mxu1 %v4952_v0 }
 0x307   :  { %4374 = vmatprep.subr.bf16.mxu0 %v4952_v0 }
 0x30a   :  { %4376 = vmatpush3.bf16.msra.mxu0 %v5144_v43 }
 0x30b   :  { %4377 = vmatprep.subr.bf16.mxu0 %v4952_v0 }
 0x30e   :  { %4379 = vmatpush3.bf16.msra.mxu0 %v5160_v48 }
 0x30f   :  { %4389 = vmatprep.subr.bf16.mxu0 %v4952_v0 }
 0x3d3   :  { %v416_v61 = vpop.f32.mrb[2].mxu1 }
 0x3d4   :  { %v420_v62 = vadd.f32 %v416_v61, %v188_v59  ;;  %v3907_v63 = vpop.f32.mrb[3].mxu1  ;;  %v523_v2 = vpop.f32.mrb[8].mxu0 }
 0x3d5   :  { %v524_v3 = vadd.f32 %v5204_v60, %v523_v2  ;;  %v3926_v4 = vpop.f32.mrb[9].mxu0 }
 0x3d6   :  { %4625 = vtanh.f32 %v420_v62  ;;  %v3588_v7 = vmul.f32 -1.442695, %v420_v62  ;;  %v5279_v4 = vld [vmem:[#allocation6] ss:$0 sm:$0xff] }
 0x3d7   :  { %4627 = vtanh.f32 %v524_v3  ;;  %v3591_v9 = vmul.f32 -1.442695, %v524_v3 }
 0x3d8   :  { %4629 = vpow2.f32 %v3588_v7 }
 0x3d9   :  { %4631 = vpow2.f32 %v3591_v9 }
 0x3e0   :  { %v4626_v5 = vpop.eup %4625 }
 0x3e1   :  { %v4628_v6 = vpop.eup %4627  ;;  %430 = vrot.lane.b32.xlu0 %v4626_v5, %s4955_s17 }
 0x3e2   :  { %536 = vrot.lane.b32.xlu1 %v4628_v6, %s4955_s17  ;;  %v4630_v10 = vpop.eup %4629 }
 0x3e3   :  { %v4632_v11 = vpop.eup %4631  ;;  %v424_v14 = vadd.f32 1.0, %v4630_v10 }
 0x3e4   :  { %v530_v15 = vadd.f32 1.0, %v4632_v11 }
 0x3e5   :  { %4633 = vrcp.f32 %v424_v14 }
 0x3e6   :  { %4635 = vrcp.f32 %v530_v15 }
 0x3ef   :  { %v4634_v16 = vpop.eup %4633 }
 0x3f0   :  { %v4636_v18 = vpop.eup %4635  ;;  %v428_v22 = vmul.f32 %v4634_v16, %v5097_v29 }
 0x3f1   :  { %v534_v24 = vmul.f32 0.0, %v4636_v18 }
 0x453   :  { %v431_v17 = vpop.permute.xlu0 %430 }
 0x454   :  { %v433_v19 = vmul.f32 %v4634_v16, %v431_v17  ;;  %v537_v20 = vpop.permute.xlu1 %536 }
 0x455   :  { %v539_v21 = vmul.f32 %v4636_v18, %v537_v20 }
 0x456   :  { %435 = vrot.lane.b32.xlu0 %v433_v19, %s4955_s17 }
 0x457   :  { %541 = vrot.lane.b32.xlu1 %v539_v21, %s4955_s17 }
 0x4c8   :  { %v436_v23 = vpop.permute.xlu0 %435 }
 0x4c9   :  { %v5212_v25 = vadd.f32 %v436_v23, %v428_v22  ;;  %v542_v26 = vpop.permute.xlu1 %541 }
 0x4ca   :  { %v5214_v27 = vadd.f32 %v542_v26, %v534_v24 }
 0x4cb   :  { %4637 = vtanh.f32 %v5212_v25 }
 0x4cc   :  { %4639 = vtanh.f32 %v5214_v27 }
 0x4d5   :  { %v4638_v28 = vpop.eup %4637 }
 0x4d6   :  { %v4640_v30 = vpop.eup %4639  ;;  %441 = vrot.lane.b32.xlu0 %v4638_v28, %s4955_s17 }
 0x4d7   :  { %547 = vrot.lane.b32.xlu1 %v4640_v30, %s4955_s17 }
 0x548   :  { %v442_v31 = vpop.permute.xlu0 %441 }
 0x549   :  { %v444_v32 = vmul.f32 %v4634_v16, %v442_v31  ;;  %v548_v29 = vpop.permute.xlu1 %547 }
 0x54a   :  { %v550_v34 = vmul.f32 %v4636_v18, %v548_v29 }
 0x54b   :  { %552 = vrot.lane.b32.xlu0 %v444_v32, %s4956_s0 }
 0x54c   :  { %653 = vrot.lane.b32.xlu1 %v550_v34, %s4957_s23 }
 0x54f   :  { %754 = vrot.lane.b32.xlu0 %v550_v34, %s4956_s0 }
 0x5bd   :  { %v553_v41 = vpop.permute.xlu0 %552 }
 0x5be   :  { %3936 = vmatmul.mubr.msk.f32.vlgmr.msra.gmra.mrb[4].mxu1 %vm246_vm2, %v553_v41  ;;  %v654_v42 = vpop.permute.xlu1 %653 }
 0x5bf   :  { %4382 = vmatpush3.bf16.msra.mxu1 %v5229_v37  ;;  %v656_v44 = vsel %vm246_vm2, %v553_v41, %v654_v42  ;;  %3969 = vmatprep.mubr.msk.f32.mxu1 %vm4953_vm0, %v4954_v1 }
 0x5c0   :  { %3955 = vmatmul.mubr.msk.f32.vlgmr.msra.gmra.mrb[10].mxu0 %vm453_vm3, %v656_v44  ;;  %4383 = vmatprep.subr.bf16.mxu1 %v4952_v0 }
 0x5c1   :  { %4391 = vmatpush3.bf16.msra.mxu0 %v5066_v8  ;;  %3980 = vmatprep.mubr.msk.f32.mxu0 %vm4953_vm0, %v4954_v1  ;;  %v755_v50 = vpop.permute.xlu0 %754 }
 0x5c2   :  { %4392 = vmatprep.subr.bf16.mxu0 %v4952_v0  ;;  %v757_v57 = vsel %vm246_vm2, %v755_v50, 0.0 }
 0x5c3   :  { %4385 = vmatpush3.bf16.msra.mxu1 %v5240_v45 }
 0x5c4   :  { %4386 = vmatprep.subr.bf16.mxu1 %v4952_v0 }
 0x5c5   :  { %4394 = vmatpush3.bf16.msra.mxu0 %v5073_v12 }
 0x5c6   :  { %4407 = vmatprep.subr.bf16.mxu0 %v4952_v0 }
 0x5c7   :  { %4388 = vmatpush3.bf16.msra.mxu1 %v5257_v49 }
 0x5c8   :  { %4395 = vmatprep.subr.bf16.mxu1 %v4952_v0 }
 0x5ca   :  { %3970 = vmatmul.mubr.msk.f32.vlgmr.msra.gmra.mrb[6].mxu1 %vm764_vm4, %v757_v57 }
 0x5cb   :  { %4397 = vmatpush3.bf16.msra.mxu1 %v5109_v33  ;;  %3999 = vmatprep.mubr.msk.f32.mxu1 %vm4953_vm0, %v4954_v1 }
 0x5cc   :  { %4398 = vmatprep.subr.bf16.mxu1 %v4952_v0 }
 0x5cf   :  { %4400 = vmatpush3.bf16.msra.mxu1 %v5126_v38 }
 0x5d0   :  { %4401 = vmatprep.subr.bf16.mxu1 %v4952_v0 }
 0x5d3   :  { %4403 = vmatpush3.bf16.msra.mxu1 %v5144_v43 }
 0x5d4   :  { %4404 = vmatprep.subr.bf16.mxu1 %v4952_v0 }
 0x5d7   :  { %4406 = vmatpush3.bf16.msra.mxu1 %v5160_v48 }
 0x5d8   :  { %4416 = vmatprep.subr.bf16.mxu1 %v4952_v0 }
 0x691   :  { %v622_v59 = vpop.f32.mrb[4].mxu1 }
 0x692   :  { %v626_v61 = vadd.f32 %v622_v59, %v193_v58  ;;  %v3937_v62 = vpop.f32.mrb[5].mxu1 }
 0x693   :  { %v726_v63 = vpop.f32.mrb[10].mxu0 }
 0x694   :  { %4641 = vtanh.f32 %v626_v61  ;;  %v727_v2 = vadd.f32 %v5204_v60, %v726_v63  ;;  %v3956_v3 = vpop.f32.mrb[11].mxu0  ;;  %v3593_v11 = vmul.f32 -1.442695, %v626_v61  ;;  %v239_v63 = vld [vmem:[%s5833_s8] sm:$0xff] }
 0x696   :  { %4643 = vtanh.f32 %v727_v2  ;;  %v3595_v14 = vmul.f32 -1.442695, %v727_v2  ;;  %v240_v2 = vld [vmem:[%s5833_s8 + $0x8] sm:$0xff] }
 0x69d   :  { %v834_v5 = vpop.f32.mrb[6].mxu1 }
 0x69e   :  { %v4642_v6 = vpop.eup %4641  ;;  %v835_v7 = vadd.f32 %v5279_v4, %v834_v5  ;;  %v3971_v9 = vpop.f32.mrb[7].mxu1  ;;  %v5314_v5 = vpack.c.bf16 %v240_v2, %v239_v63 }
 0x69f   :  { %636 = vrot.lane.b32.xlu1 %v4642_v6, %s4955_s17  ;;  %v242_v9 = vld [vmem:[%s5833_s8 + $0x18] sm:$0xff] }
 0x6a0   :  { %4645 = vtanh.f32 %v835_v7  ;;  %v4644_v52 = vpop.eup %4643  ;;  %v3598_v15 = vmul.f32 -1.442695, %v835_v7  ;;  %v241_v7 = vld [vmem:[%s5833_s8 + $0x10] sm:$0xff] }
 0x6a1   :  { %739 = vrot.lane.b32.xlu0 %v4644_v52, %s4955_s17  ;;  %4647 = vpow2.f32 %v3593_v11 }
 0x6a2   :  { %4649 = vpow2.f32 %v3595_v14 }
 0x6a3   :  { %4651 = vpow2.f32 %v3598_v15 }
 0x6aa   :  { %v4646_v10 = vpop.eup %4645 }
 0x6ab   :  { %847 = vrot.lane.b32.xlu1 %v4646_v10, %s4958_s6  ;;  %v4648_v16 = vpop.eup %4647  ;;  %v5329_v10 = vpack.c.bf16 %v242_v9, %v241_v7 }
 0x6ac   :  { %v4650_v17 = vpop.eup %4649  ;;  %v630_v18 = vadd.f32 1.0, %v4648_v16 }
 0x6ad   :  { %v733_v19 = vadd.f32 1.0, %v4650_v17  ;;  %v4652_v20 = vpop.eup %4651  ;;  %v198_v17 = vadd.f32 %v5168_v51, %v5090_v13 }
 0x6ae   :  { %4653 = vrcp.f32 %v630_v18  ;;  %v841_v21 = vadd.f32 1.0, %v4652_v20 }
 0x6af   :  { %4655 = vrcp.f32 %v733_v19 }
 0x6b0   :  { %4657 = vrcp.f32 %v841_v21 }
 0x6b8   :  { %v4654_v22 = vpop.eup %4653 }
 0x6b9   :  { %v4656_v26 = vpop.eup %4655  ;;  %v634_v34 = vmul.f32 %v4654_v22, %v5212_v25 }
 0x6ba   :  { %v4658_v31 = vpop.eup %4657  ;;  %v737_v39 = vmul.f32 %v4656_v26, %v5214_v27 }
 0x6bb   :  { %v845_v42 = vmul.f32 0.0, %v4658_v31 }
 0x711   :  { %v637_v23 = vpop.permute.xlu1 %636 }
 0x712   :  { %v639_v24 = vmul.f32 %v4654_v22, %v637_v23 }
 0x713   :  { %v740_v28 = vpop.permute.xlu0 %739 }
 0x714   :  { %641 = vrot.lane.b32.xlu0 %v639_v24, %s4955_s17  ;;  %v742_v30 = vmul.f32 %v4656_v26, %v740_v28  ;;  %v5365_v24 = vld [vmem:[%s5834_s9] ss:$0 sm:$0xff] }
 0x716   :  { %744 = vrot.lane.b32.xlu1 %v742_v30, %s4955_s17 }
 0x71d   :  { %v848_v32 = vpop.permute.xlu1 %847 }
 0x71e   :  { %v850_v29 = vmul.f32 %v4658_v31, %v848_v32 }
 0x720   :  { %852 = vrot.lane.b32.xlu0 %v850_v29, %s4959_s13 }
 0x786   :  { %v642_v35 = vpop.permute.xlu0 %641 }
 0x787   :  { %v5289_v36 = vadd.f32 %v642_v35, %v634_v34 }
 0x788   :  { %v745_v40 = vpop.permute.xlu1 %744 }
 0x789   :  { %4659 = vtanh.f32 %v5289_v36  ;;  %v5293_v41 = vadd.f32 %v745_v40, %v737_v39 }
 0x78b   :  { %4661 = vtanh.f32 %v5293_v41 }
 0x792   :  { %v853_v44 = vpop.permute.xlu0 %852 }
 0x793   :  { %v4660_v46 = vpop.eup %4659  ;;  %v5296_v47 = vadd.f32 %v853_v44, %v845_v42 }
 0x794   :  { %647 = vrot.lane.b32.xlu1 %v4660_v46, %s4955_s17 }
 0x795   :  { %4663 = vtanh.f32 %v5296_v47  ;;  %v4662_v25 = vpop.eup %4661 }
 0x796   :  { %750 = vrot.lane.b32.xlu0 %v4662_v25, %s4955_s17 }
 0x79f   :  { %v4664_v27 = vpop.eup %4663 }
 0x7a0   :  { %858 = vrot.lane.b32.xlu1 %v4664_v27, %s4959_s13 }
 0x806   :  { %v648_v50 = vpop.permute.xlu1 %647 }
 0x807   :  { %v650_v57 = vmul.f32 %v4654_v22, %v648_v50 }
 0x808   :  { %v751_v58 = vpop.permute.xlu0 %750 }
 0x809   :  { %863 = vrot.lane.b32.xlu0 %v650_v57, %s4956_s0  ;;  %v753_v59 = vmul.f32 %v4656_v26, %v751_v58 }
 0x80b   :  { %964 = vrot.lane.b32.xlu1 %v753_v59, %s4957_s23 }
 0x80d   :  { %1065 = vrot.lane.b32.xlu0 %v753_v59, %s4956_s0 }
 0x812   :  { %v859_v61 = vpop.permute.xlu1 %858 }
 0x813   :  { %v861_v62 = vmul.f32 %v4658_v31, %v859_v61 }
 0x815   :  { %1167 = vrot.lane.b32.xlu1 %v861_v62, %s4957_s23 }
 0x87b   :  { %v864_v3 = vpop.permute.xlu0 %863 }
 0x87c   :  { %3981 = vmatmul.mubr.msk.f32.vlgmr.msra.gmra.mrb[12].mxu0 %vm246_vm2, %v864_v3 }
 0x87d   :  { %4409 = vmatpush3.bf16.msra.mxu0 %v5229_v37  ;;  %4014 = vmatprep.mubr.msk.f32.mxu0 %vm4953_vm0, %v4954_v1  ;;  %v965_v6 = vpop.permute.xlu1 %964 }
 0x87e   :  { %4410 = vmatprep.subr.bf16.mxu0 %v4952_v0  ;;  %v967_v52 = vsel %vm246_vm2, %v864_v3, %v965_v6 }
 0x87f   :  { %4000 = vmatmul.mubr.msk.f32.vlgmr.msra.gmra.mrb[8].mxu1 %vm453_vm3, %v967_v52  ;;  %v1066_v11 = vpop.permute.xlu0 %1065 }
 0x880   :  { %4418 = vmatpush3.bf16.msra.mxu1 %v5314_v5  ;;  %4025 = vmatprep.mubr.msk.f32.mxu1 %vm4953_vm0, %v4954_v1  ;;  %v1068_v14 = vsel %vm246_vm2, %v1066_v11, %v861_v62 }
 0x881   :  { %4412 = vmatpush3.bf16.msra.mxu0 %v5240_v45  ;;  %4419 = vmatprep.subr.bf16.mxu1 %v4952_v0 }
 0x882   :  { %4413 = vmatprep.subr.bf16.mxu0 %v4952_v0 }
 0x884   :  { %4421 = vmatpush3.bf16.msra.mxu1 %v5329_v10 }
 0x885   :  { %4415 = vmatpush3.bf16.msra.mxu0 %v5257_v49  ;;  %4428 = vmatprep.subr.bf16.mxu1 %v4952_v0 }
 0x886   :  { %4422 = vmatprep.subr.bf16.mxu0 %v4952_v0 }
 0x887   :  { %v1168_v15 = vpop.permute.xlu1 %1167 }
 0x888   :  { %v1170_v16 = vsel %vm91_vm1, %v1168_v15, 0.0  ;;  %4015 = vmatmul.mubr.msk.f32.vlgmr.msra.gmra.mrb[14].mxu0 %vm764_vm4, %v1068_v14 }
 0x889   :  { %4026 = vmatmul.mubr.msk.f32.vlgmr.msra.gmra.mrb[10].mxu1 %vm246_vm2, %v1170_v16  ;;  %4424 = vmatpush3.bf16.msra.mxu0 %v5066_v8 }
 0x88a   :  { %4430 = vmatpush3.bf16.msra.mxu1 %v5109_v33  ;;  %4425 = vmatprep.subr.bf16.mxu0 %v4952_v0 }
 0x88b   :  { %4431 = vmatprep.subr.bf16.mxu1 %v4952_v0  ;;  %4036 = vmatprep.mubr.msk.f32.mxu0 %vm4953_vm0, %v4954_v1 }
 0x88c   :  { %4055 = vmatprep.mubr.msk.f32.mxu1 %vm4953_vm0, %v4954_v1 }
 0x88d   :  { %4427 = vmatpush3.bf16.msra.mxu0 %v5073_v12 }
 0x88e   :  { %4433 = vmatpush3.bf16.msra.mxu1 %v5126_v38  ;;  %4440 = vmatprep.subr.bf16.mxu0 %v4952_v0 }
 0x88f   :  { %4434 = vmatprep.subr.bf16.mxu1 %v4952_v0 }
 0x892   :  { %4436 = vmatpush3.bf16.msra.mxu1 %v5144_v43 }
 0x893   :  { %4437 = vmatprep.subr.bf16.mxu1 %v4952_v0 }
 0x896   :  { %4439 = vmatpush3.bf16.msra.mxu1 %v5160_v48 }
 0x897   :  { %4455 = vmatprep.subr.bf16.mxu1 %v4952_v0 }
 0x94f   :  { %v933_v18 = vpop.f32.mrb[12].mxu0 }
 0x950   :  { %v937_v19 = vadd.f32 %v933_v18, %v198_v17  ;;  %v3982_v20 = vpop.f32.mrb[13].mxu0 }
 0x952   :  { %4665 = vtanh.f32 %v937_v19  ;;  %v1037_v21 = vpop.f32.mrb[8].mxu1  ;;  %v3600_v40 = vmul.f32 -1.442695, %v937_v19 }
 0x953   :  { %v1038_v22 = vadd.f32 %v5204_v60, %v1037_v21  ;;  %v4001_v23 = vpop.f32.mrb[9].mxu1 }
 0x955   :  { %4667 = vtanh.f32 %v1038_v22  ;;  %v3602_v42 = vmul.f32 -1.442695, %v1038_v22 }
 0x95b   :  { %v1138_v26 = vpop.f32.mrb[14].mxu0 }
 0x95c   :  { %v4666_v28 = vpop.eup %4665  ;;  %v1139_v30 = vadd.f32 %v5279_v4, %v1138_v26  ;;  %v4016_v31 = vpop.f32.mrb[15].mxu0 }
 0x95d   :  { %v1246_v51 = vpop.f32.mrb[10].mxu1  ;;  %947 = vrot.lane.b32.xlu0 %v4666_v28, %s4955_s17 }
 0x95e   :  { %v1247_v32 = vadd.f32 %v5365_v24, %v1246_v51  ;;  %v4027_v29 = vpop.f32.mrb[11].mxu1  ;;  %4669 = vtanh.f32 %v1139_v30  ;;  %v3604_v44 = vmul.f32 -1.442695, %v1139_v30 }
 0x95f   :  { %v4668_v34 = vpop.eup %4667 }
 0x960   :  { %4671 = vtanh.f32 %v1247_v32  ;;  %1050 = vrot.lane.b32.xlu1 %v4668_v34, %s4955_s17  ;;  %v3607_v46 = vmul.f32 -1.442695, %v1247_v32 }
 0x961   :  { %4673 = vpow2.f32 %v3600_v40 }
 0x962   :  { %4675 = vpow2.f32 %v3602_v42 }
 0x963   :  { %4677 = vpow2.f32 %v3604_v44 }
 0x964   :  { %4679 = vpow2.f32 %v3607_v46 }
 0x968   :  { %v4670_v35 = vpop.eup %4669 }
 0x969   :  { %1151 = vrot.lane.b32.xlu0 %v4670_v35, %s4958_s6 }
 0x96a   :  { %v4672_v39 = vpop.eup %4671 }
 0x96b   :  { %1259 = vrot.lane.b32.xlu1 %v4672_v39, %s4958_s6  ;;  %v4674_v25 = vpop.eup %4673 }
 0x96c   :  { %v941_v27 = vadd.f32 1.0, %v4674_v25  ;;  %v4676_v50 = vpop.eup %4675 }
 0x96d   :  { %v1044_v57 = vadd.f32 1.0, %v4676_v50  ;;  %v4678_v58 = vpop.eup %4677 }
 0x96e   :  { %4681 = vrcp.f32 %v941_v27  ;;  %v4680_v59 = vpop.eup %4679  ;;  %v1145_v61 = vadd.f32 1.0, %v4678_v58 }
 0x96f   :  { %4683 = vrcp.f32 %v1044_v57  ;;  %v1253_v62 = vadd.f32 1.0, %v4680_v59 }
 0x970   :  { %4685 = vrcp.f32 %v1145_v61 }
 0x971   :  { %4687 = vrcp.f32 %v1253_v62 }
 0x978   :  { %v4682_v63 = vpop.eup %4681 }
 0x979   :  { %v4684_v6 = vpop.eup %4683  ;;  %v945_v18 = vmul.f32 %v4682_v63, %v5289_v36 }
 0x97a   :  { %v4686_v52 = vpop.eup %4685  ;;  %v1048_v21 = vmul.f32 %v4684_v6, %v5293_v41 }
 0x97b   :  { %v4688_v14 = vpop.eup %4687  ;;  %v1149_v26 = vmul.f32 %v4686_v52, %v5296_v47 }
 0x97c   :  { %v1257_v30 = vmul.f32 0.0, %v4688_v14 }
 0x9cf   :  { %v948_v2 = vpop.permute.xlu0 %947 }
 0x9d0   :  { %v950_v3 = vmul.f32 %v4682_v63, %v948_v2  ;;  %v203_v2 = vadd.f32 %v5090_v13, %v5174_v54 }
 0x9d2   :  { %952 = vrot.lane.b32.xlu0 %v950_v3, %s4955_s17  ;;  %v1051_v7 = vpop.permute.xlu1 %1050 }
 0x9d3   :  { %v1053_v9 = vmul.f32 %v4684_v6, %v1051_v7 }
 0x9d5   :  { %1055 = vrot.lane.b32.xlu1 %v1053_v9, %s4955_s17 }
 0x9db   :  { %v1152_v11 = vpop.permute.xlu0 %1151 }
 0x9dc   :  { %v1154_v15 = vmul.f32 %v4686_v52, %v1152_v11 }
 0x9dd   :  { %v1260_v16 = vpop.permute.xlu1 %1259 }
 0x9de   :  { %v1262_v17 = vmul.f32 %v4688_v14, %v1260_v16  ;;  %1156 = vrot.lane.b32.xlu0 %v1154_v15, %s4959_s13 }
 0x9e0   :  { %1264 = vrot.lane.b32.xlu1 %v1262_v17, %s4959_s13 }
 0xa44   :  { %v953_v19 = vpop.permute.xlu0 %952 }
 0xa45   :  { %v5378_v20 = vadd.f32 %v953_v19, %v945_v18 }
 0xa47   :  { %4689 = vtanh.f32 %v5378_v20  ;;  %v1056_v22 = vpop.permute.xlu1 %1055 }
 0xa48   :  { %v5382_v23 = vadd.f32 %v1056_v22, %v1048_v21 }
 0xa4a   :  { %4691 = vtanh.f32 %v5382_v23 }
 0xa50   :  { %v1157_v28 = vpop.permute.xlu0 %1156 }
 0xa51   :  { %v4690_v31 = vpop.eup %4689  ;;  %v5386_v51 = vadd.f32 %v1157_v28, %v1149_v26 }
 0xa52   :  { %v1265_v36 = vpop.permute.xlu1 %1264  ;;  %958 = vrot.lane.b32.xlu0 %v4690_v31, %s4955_s17 }
 0xa53   :  { %v5388_v32 = vadd.f32 %v1265_v36, %v1257_v30  ;;  %4693 = vtanh.f32 %v5386_v51 }
 0xa54   :  { %v4692_v41 = vpop.eup %4691 }
 0xa55   :  { %4695 = vtanh.f32 %v5388_v32  ;;  %1061 = vrot.lane.b32.xlu1 %v4692_v41, %s4955_s17 }
 0xa5d   :  { %v4694_v29 = vpop.eup %4693 }
 0xa5e   :  { %1162 = vrot.lane.b32.xlu0 %v4694_v29, %s4959_s13 }
 0xa5f   :  { %v4696_v34 = vpop.eup %4695 }
 0xa60   :  { %1270 = vrot.lane.b32.xlu1 %v4696_v34, %s4959_s13 }
 0xac4   :  { %v959_v47 = vpop.permute.xlu0 %958 }
 0xac5   :  { %v961_v35 = vmul.f32 %v4682_v63, %v959_v47 }
 0xac7   :  { %1275 = vrot.lane.b32.xlu0 %v961_v35, %s4956_s0  ;;  %v1062_v39 = vpop.permute.xlu1 %1061 }
 0xac8   :  { %v1064_v40 = vmul.f32 %v4684_v6, %v1062_v39 }
 0xaca   :  { %1376 = vrot.lane.b32.xlu1 %v1064_v40, %s4957_s23 }
 0xacb   :  { %1477 = vrot.lane.b32.xlu0 %v1064_v40, %s4956_s0 }
 0xad0   :  { %v1163_v42 = vpop.permute.xlu0 %1162 }
 0xad1   :  { %v1165_v44 = vmul.f32 %v4686_v52, %v1163_v42 }
 0xad2   :  { %v1271_v46 = vpop.permute.xlu1 %1270 }
 0xad3   :  { %v5399_v25 = vmul.f32 %v4688_v14, %v1271_v46  ;;  %1579 = vrot.lane.b32.xlu1 %v1165_v44, %s4957_s23 }
 0xad5   :  { %1583 = vrot.lane.b32.xlu0 %v5399_v25, %s4960_s24 }
 0xb39   :  { %v1276_v27 = vpop.permute.xlu0 %1275 }
 0xb3a   :  { %4037 = vmatmul.mubr.msk.f32.vlgmr.msra.gmra.mrb[16].mxu0 %vm246_vm2, %v1276_v27 }
 0xb3b   :  { %4442 = vmatpush3.bf16.msra.mxu0 %v5229_v37  ;;  %4070 = vmatprep.mubr.msk.f32.mxu0 %vm4953_vm0, %v4954_v1 }
 0xb3c   :  { %4443 = vmatprep.subr.bf16.mxu0 %v4952_v0  ;;  %v1377_v50 = vpop.permute.xlu1 %1376 }
 0xb3d   :  { %v1379_v57 = vsel %vm246_vm2, %v1276_v27, %v1377_v50  ;;  %v1478_v58 = vpop.permute.xlu0 %1477 }
 0xb3e   :  { %4056 = vmatmul.mubr.msk.f32.vlgmr.msra.gmra.mrb[12].mxu1 %vm453_vm3, %v1379_v57  ;;  %v1480_v59 = vsel %vm246_vm2, %v1478_v58, %v1165_v44 }
 0xb3f   :  { %4445 = vmatpush3.bf16.msra.mxu0 %v5240_v45  ;;  %4457 = vmatpush3.bf16.msra.mxu1 %v5066_v8 }
 0xb40   :  { %4446 = vmatprep.subr.bf16.mxu0 %v4952_v0  ;;  %4458 = vmatprep.subr.bf16.mxu1 %v4952_v0 }
 0xb41   :  { %4092 = vmatprep.mubr.msk.f32.mxu1 %vm4953_vm0, %v4954_v1 }
 0xb43   :  { %4448 = vmatpush3.bf16.msra.mxu0 %v5257_v49  ;;  %4460 = vmatpush3.bf16.msra.mxu1 %v5073_v12 }
 0xb44   :  { %4449 = vmatprep.subr.bf16.mxu0 %v4952_v0  ;;  %4473 = vmatprep.subr.bf16.mxu1 %v4952_v0 }
 0xb45   :  { %v1580_v61 = vpop.permute.xlu1 %1579 }
 0xb46   :  { %4071 = vmatmul.mubr.msk.f32.vlgmr.msra.gmra.mrb[18].mxu0 %vm764_vm4, %v1480_v59 }
 0xb47   :  { %4451 = vmatpush3.bf16.msra.mxu0 %v5314_v5  ;;  %4081 = vmatprep.mubr.msk.f32.mxu0 %vm4953_vm0, %v4954_v1  ;;  %v1584_v62 = vpop.permute.xlu0 %1583 }
 0xb48   :  { %4452 = vmatprep.subr.bf16.mxu0 %v4952_v0  ;;  %v1586_v63 = vsel %vm91_vm1, %v1580_v61, %v1584_v62 }
 0xb4b   :  { %4454 = vmatpush3.bf16.msra.mxu0 %v5329_v10 }
 0xb4c   :  { %4461 = vmatprep.subr.bf16.mxu0 %v4952_v0 }
 0xb4e   :  { %4082 = vmatmul.mubr.msk.f32.vlgmr.msra.gmra.mrb[20].mxu0 %vm246_vm2, %v1586_v63 }
 0xb4f   :  { %4463 = vmatpush3.bf16.msra.mxu0 %v5109_v33  ;;  %4111 = vmatprep.mubr.msk.f32.mxu0 %vm4953_vm0, %v4954_v1 }
 0xb50   :  { %4464 = vmatprep.subr.bf16.mxu0 %v4952_v0 }
 0xb53   :  { %4466 = vmatpush3.bf16.msra.mxu0 %v5126_v38 }
 0xb54   :  { %4467 = vmatprep.subr.bf16.mxu0 %v4952_v0 }
 0xb57   :  { %4469 = vmatpush3.bf16.msra.mxu0 %v5144_v43 }
 0xb58   :  { %4470 = vmatprep.subr.bf16.mxu0 %v4952_v0 }
 0xb5b   :  { %4472 = vmatpush3.bf16.msra.mxu0 %v5160_v48 }
 0xb5c   :  { %4488 = vmatprep.subr.bf16.mxu0 %v4952_v0 }
 0xc0d   :  { %v1345_v3 = vpop.f32.mrb[16].mxu0 }
 0xc0e   :  { %v1349_v6 = vadd.f32 %v1345_v3, %v203_v2  ;;  %v4038_v7 = vpop.f32.mrb[17].mxu0 }
 0xc10   :  { %4697 = vtanh.f32 %v1349_v6  ;;  %v3609_v26 = vmul.f32 -1.442695, %v1349_v6 }
 0xc11   :  { %v1449_v9 = vpop.f32.mrb[12].mxu1 }
 0xc12   :  { %v1450_v52 = vadd.f32 %v5204_v60, %v1449_v9  ;;  %v4057_v11 = vpop.f32.mrb[13].mxu1 }
 0xc14   :  { %4699 = vtanh.f32 %v1450_v52  ;;  %v3611_v28 = vmul.f32 -1.442695, %v1450_v52 }
 0xc19   :  { %v1550_v14 = vpop.f32.mrb[18].mxu0 }
 0xc1a   :  { %v4698_v15 = vpop.eup %4697  ;;  %v1551_v16 = vadd.f32 %v5279_v4, %v1550_v14  ;;  %v4072_v17 = vpop.f32.mrb[19].mxu0 }
 0xc1b   :  { %1359 = vrot.lane.b32.xlu1 %v4698_v15, %s4955_s17 }
 0xc1c   :  { %4701 = vtanh.f32 %v1551_v16  ;;  %v3613_v30 = vmul.f32 -1.442695, %v1551_v16 }
 0xc1e   :  { %v4700_v18 = vpop.eup %4699 }
 0xc1f   :  { %1462 = vrot.lane.b32.xlu0 %v4700_v18, %s4955_s17 }
 0xc21   :  { %v1656_v13 = vpop.f32.mrb[20].mxu0 }
 0xc22   :  { %v1657_v54 = vadd.f32 %v5365_v24, %v1656_v13  ;;  %v4083_v19 = vpop.f32.mrb[21].mxu0 }
 0xc24   :  { %4703 = vtanh.f32 %v1657_v54  ;;  %v3615_v29 = vmul.f32 -1.442695, %v1657_v54 }
 0xc25   :  { %4705 = vpow2.f32 %v3609_v26 }
 0xc26   :  { %v4702_v21 = vpop.eup %4701  ;;  %4707 = vpow2.f32 %v3611_v28 }
 0xc27   :  { %1563 = vrot.lane.b32.xlu1 %v4702_v21, %s4958_s6  ;;  %4709 = vpow2.f32 %v3613_v30 }
 0xc2e   :  { %v4704_v22 = vpop.eup %4703 }
 0xc2f   :  { %1669 = vrot.lane.b32.xlu0 %v4704_v22, %s4958_s6  ;;  %v4706_v31 = vpop.eup %4705 }
 0xc30   :  { %v1353_v36 = vadd.f32 1.0, %v4706_v31  ;;  %v4708_v41 = vpop.eup %4707 }
 0xc31   :  { %v1456_v34 = vadd.f32 1.0, %v4708_v41  ;;  %v4710_v47 = vpop.eup %4709 }
 0xc32   :  { %4711 = vrcp.f32 %v1353_v36  ;;  %v1557_v35 = vadd.f32 1.0, %v4710_v47 }
 0xc33   :  { %4713 = vpow2.f32 %v3615_v29 }
 0xc34   :  { %4715 = vrcp.f32 %v1456_v34 }
 0xc35   :  { %4717 = vrcp.f32 %v1557_v35 }
 0xc3c   :  { %v4712_v39 = vpop.eup %4711 }
 0xc3d   :  { %v4714_v44 = vpop.eup %4713  ;;  %v1357_v3 = vmul.f32 %v4712_v39, %v5378_v20 }
 0xc3e   :  { %v4716_v46 = vpop.eup %4715  ;;  %v1663_v57 = vadd.f32 1.0, %v4714_v44 }
 0xc3f   :  { %v4718_v58 = vpop.eup %4717  ;;  %v1460_v9 = vmul.f32 %v4716_v46, %v5382_v23 }
 0xc40   :  { %4719 = vrcp.f32 %v1663_v57  ;;  %v1561_v14 = vmul.f32 %v4718_v58, %v5386_v51 }
 0xc4a   :  { %v4720_v62 = vpop.eup %4719 }
 0xc4b   :  { %v1667_v23 = vmul.f32 %v4720_v62, %v5388_v32 }
 0xc8d   :  { %v1360_v40 = vpop.permute.xlu1 %1359 }
 0xc8e   :  { %v1362_v42 = vmul.f32 %v4712_v39, %v1360_v40 }
 0xc90   :  { %1364 = vrot.lane.b32.xlu1 %v1362_v42, %s4955_s17  ;;  %v5522_v42 = vld [vmem:[%s5828_s3] ss:$0 sm:$0xff] }
 0xc91   :  { %v1463_v27 = vpop.permute.xlu0 %1462  ;;  %v208_v44 = vadd.f32 %v5522_v42, %v5172_v53 }
 0xc92   :  { %v1465_v50 = vmul.f32 %v4716_v46, %v1463_v27 }
 0xc94   :  { %1467 = vrot.lane.b32.xlu0 %v1465_v50, %s4955_s17 }
 0xc99   :  { %v1564_v59 = vpop.permute.xlu1 %1563 }
 0xc9a   :  { %v1566_v61 = vmul.f32 %v4718_v58, %v1564_v59 }
 0xc9c   :  { %1568 = vrot.lane.b32.xlu1 %v1566_v61, %s4959_s13 }
 0xca1   :  { %v1670_v63 = vpop.permute.xlu0 %1669 }
 0xca2   :  { %v1672_v2 = vmul.f32 %v4720_v62, %v1670_v63 }
 0xca4   :  { %1674 = vrot.lane.b32.xlu0 %v1672_v2, %s4959_s13 }
 0xd02   :  { %v1365_v6 = vpop.permute.xlu1 %1364 }
 0xd03   :  { %v5455_v7 = vadd.f32 %v1365_v6, %v1357_v3 }
 0xd05   :  { %4721 = vtanh.f32 %v5455_v7 }
 0xd06   :  { %v1468_v52 = vpop.permute.xlu0 %1467 }
 0xd07   :  { %v5459_v11 = vadd.f32 %v1468_v52, %v1460_v9 }
 0xd09   :  { %4723 = vtanh.f32 %v5459_v11 }
 0xd0e   :  { %v1569_v15 = vpop.permute.xlu1 %1568 }
 0xd0f   :  { %v4722_v16 = vpop.eup %4721  ;;  %v5463_v17 = vadd.f32 %v1569_v15, %v1561_v14 }
 0xd10   :  { %1370 = vrot.lane.b32.xlu1 %v4722_v16, %s4955_s17 }
 0xd11   :  { %4725 = vtanh.f32 %v5463_v17 }
 0xd13   :  { %v4724_v20 = vpop.eup %4723 }
 0xd14   :  { %1473 = vrot.lane.b32.xlu0 %v4724_v20, %s4955_s17 }
 0xd16   :  { %v1675_v18 = vpop.permute.xlu0 %1674 }
 0xd17   :  { %v5469_v13 = vadd.f32 %v1675_v18, %v1667_v23 }
 0xd19   :  { %4727 = vtanh.f32 %v5469_v13 }
 0xd1b   :  { %v4726_v54 = vpop.eup %4725 }
 0xd1c   :  { %1574 = vrot.lane.b32.xlu1 %v4726_v54, %s4959_s13 }
 0xd23   :  { %v4728_v51 = vpop.eup %4727 }
 0xd24   :  { %1680 = vrot.lane.b32.xlu0 %v4728_v51, %s4959_s13 }
 0xd82   :  { %v1371_v19 = vpop.permute.xlu1 %1370 }
 0xd83   :  { %v1373_v21 = vmul.f32 %v4712_v39, %v1371_v19 }
 0xd85   :  { %1685 = vrot.lane.b32.xlu1 %v1373_v21, %s4956_s0 }
 0xd86   :  { %v1474_v22 = vpop.permute.xlu0 %1473 }
 0xd87   :  { %v1476_v26 = vmul.f32 %v4716_v46, %v1474_v22 }
 0xd89   :  { %1887 = vrot.lane.b32.xlu1 %v1476_v26, %s4956_s0  ;;  %1786 = vrot.lane.b32.xlu0 %v1476_v26, %s4957_s23 }
 0xd8e   :  { %v1575_v32 = vpop.permute.xlu1 %1574 }
 0xd8f   :  { %v1577_v28 = vmul.f32 %v4718_v58, %v1575_v32 }
 0xd91   :  { %1989 = vrot.lane.b32.xlu0 %v1577_v28, %s4957_s23 }
 0xd96   :  { %v1681_v30 = vpop.permute.xlu0 %1680 }
 0xd97   :  { %v1683_v31 = vmul.f32 %v4720_v62, %v1681_v30 }
 0xd99   :  { %1993 = vrot.lane.b32.xlu1 %v1683_v31, %s4960_s24 }
 0xdf7   :  { %v1686_v36 = vpop.permute.xlu1 %1685 }
 0xdf8   :  { %4093 = vmatmul.mubr.msk.f32.vlgmr.msra.gmra.mrb[14].mxu1 %vm246_vm2, %v1686_v36 }
 0xdf9   :  { %4475 = vmatpush3.bf16.msra.mxu1 %v5229_v37  ;;  %4126 = vmatprep.mubr.msk.f32.mxu1 %vm4953_vm0, %v4954_v1 }
 0xdfa   :  { %4476 = vmatprep.subr.bf16.mxu1 %v4952_v0 }
 0xdfb   :  { %v1787_v41 = vpop.permute.xlu0 %1786  ;;  %v1888_v34 = vpop.permute.xlu1 %1887 }
 0xdfc   :  { %v1789_v29 = vsel %vm246_vm2, %v1686_v36, %v1787_v41  ;;  %v1890_v47 = vsel %vm246_vm2, %v1888_v34, %v1577_v28 }
 0xdfd   :  { %4478 = vmatpush3.bf16.msra.mxu1 %v5240_v45  ;;  %4112 = vmatmul.mubr.msk.f32.vlgmr.msra.gmra.mrb[22].mxu0 %vm453_vm3, %v1789_v29 }
 0xdfe   :  { %4479 = vmatprep.subr.bf16.mxu1 %v4952_v0  ;;  %4490 = vmatpush3.bf16.msra.mxu0 %v5066_v8 }
 0xdff   :  { %4148 = vmatprep.mubr.msk.f32.mxu0 %vm4953_vm0, %v4954_v1  ;;  %4491 = vmatprep.subr.bf16.mxu0 %v4952_v0 }
 0xe01   :  { %4481 = vmatpush3.bf16.msra.mxu1 %v5257_v49 }
 0xe02   :  { %4482 = vmatprep.subr.bf16.mxu1 %v4952_v0  ;;  %4493 = vmatpush3.bf16.msra.mxu0 %v5073_v12 }
 0xe03   :  { %4506 = vmatprep.subr.bf16.mxu0 %v4952_v0  ;;  %v1990_v35 = vpop.permute.xlu0 %1989 }
 0xe04   :  { %4127 = vmatmul.mubr.msk.f32.vlgmr.msra.gmra.mrb[16].mxu1 %vm764_vm4, %v1890_v47 }
 0xe05   :  { %4484 = vmatpush3.bf16.msra.mxu1 %v5314_v5  ;;  %4137 = vmatprep.mubr.msk.f32.mxu1 %vm4953_vm0, %v4954_v1 }
 0xe06   :  { %4485 = vmatprep.subr.bf16.mxu1 %v4952_v0 }
 0xe09   :  { %4487 = vmatpush3.bf16.msra.mxu1 %v5329_v10 }
 0xe0a   :  { %4494 = vmatprep.subr.bf16.mxu1 %v4952_v0 }
 0xe0b   :  { %v5504_v39 = vpop.permute.xlu1 %1993 }
 0xe0c   :  { %v1996_v40 = vsel %vm91_vm1, %v1990_v35, %v5504_v39 }
 0xe0d   :  { %4138 = vmatmul.mubr.msk.f32.vlgmr.msra.gmra.mrb[18].mxu1 %vm246_vm2, %v1996_v40 }
 0xe0e   :  { %4496 = vmatpush3.bf16.msra.mxu1 %v5109_v33  ;;  %4167 = vmatprep.mubr.msk.f32.mxu1 %vm4953_vm0, %v4954_v1 }
 0xe0f   :  { %4497 = vmatprep.subr.bf16.mxu1 %v4952_v0 }
 0xe12   :  { %4499 = vmatpush3.bf16.msra.mxu1 %v5126_v38 }
 0xe13   :  { %4500 = vmatprep.subr.bf16.mxu1 %v4952_v0 }
 0xe16   :  { %4502 = vmatpush3.bf16.msra.mxu1 %v5144_v43 }
 0xe17   :  { %4503 = vmatprep.subr.bf16.mxu1 %v4952_v0 }
 0xe1a   :  { %4505 = vmatpush3.bf16.msra.mxu1 %v5160_v48 }
 0xe1b   :  { %4521 = vmatprep.subr.bf16.mxu1 %v4952_v0 }
 0xecb   :  { %v1755_v46 = vpop.f32.mrb[14].mxu1 }
 0xecc   :  { %v1759_v27 = vadd.f32 %v1755_v46, %v208_v44  ;;  %v4094_v50 = vpop.f32.mrb[15].mxu1 }
 0xece   :  { %4729 = vtanh.f32 %v1759_v27  ;;  %v3617_v14 = vmul.f32 -1.442695, %v1759_v27 }
 0xed0   :  { %v1859_v57 = vpop.f32.mrb[22].mxu0 }
 0xed1   :  { %v1860_v58 = vadd.f32 %v5204_v60, %v1859_v57  ;;  %v4113_v59 = vpop.f32.mrb[23].mxu0 }
 0xed3   :  { %4731 = vtanh.f32 %v1860_v58 }
 0xed7   :  { %v1960_v61 = vpop.f32.mrb[16].mxu1 }
 0xed8   :  { %v4730_v62 = vpop.eup %4729  ;;  %v1961_v63 = vadd.f32 %v5279_v4, %v1960_v61  ;;  %v4128_v2 = vpop.f32.mrb[17].mxu1  ;;  %v3619_v4 = vmul.f32 -1.442695, %v1860_v58 }
 0xed9   :  { %1769 = vrot.lane.b32.xlu0 %v4730_v62, %s4955_s17 }
 0xeda   :  { %4733 = vtanh.f32 %v1961_v63  ;;  %v3621_v15 = vmul.f32 -1.442695, %v1961_v63 }
 0xedd   :  { %v4732_v3 = vpop.eup %4731 }
 0xede   :  { %1872 = vrot.lane.b32.xlu1 %v4732_v3, %s4955_s17 }
 0xee0   :  { %v2066_v53 = vpop.f32.mrb[18].mxu1 }
 0xee1   :  { %v2067_v6 = vadd.f32 %v5365_v24, %v2066_v53  ;;  %v4139_v9 = vpop.f32.mrb[19].mxu1 }
 0xee3   :  { %4735 = vtanh.f32 %v2067_v6  ;;  %v3623_v18 = vmul.f32 -1.442695, %v2067_v6 }
 0xee4   :  { %v4734_v52 = vpop.eup %4733  ;;  %4737 = vpow2.f32 %v3617_v14 }
 0xee5   :  { %1973 = vrot.lane.b32.xlu0 %v4734_v52, %s4958_s6  ;;  %4739 = vpow2.f32 %v3619_v4 }
 0xee6   :  { %4741 = vpow2.f32 %v3621_v15 }
 0xeed   :  { %v4736_v60 = vpop.eup %4735 }
 0xeee   :  { %2079 = vrot.lane.b32.xlu1 %v4736_v60, %s4958_s6  ;;  %v4738_v16 = vpop.eup %4737 }
 0xeef   :  { %v1763_v20 = vadd.f32 1.0, %v4738_v16  ;;  %v4740_v23 = vpop.eup %4739 }
 0xef0   :  { %v1866_v54 = vadd.f32 1.0, %v4740_v23  ;;  %v4742_v51 = vpop.eup %4741 }
 0xef1   :  { %4743 = vrcp.f32 %v1763_v20  ;;  %v1967_v19 = vadd.f32 1.0, %v4742_v51 }
 0xef2   :  { %4745 = vpow2.f32 %v3623_v18 }
 0xef3   :  { %4747 = vrcp.f32 %v1866_v54 }
 0xef4   :  { %4749 = vrcp.f32 %v1967_v19 }
 0xefb   :  { %v4744_v21 = vpop.eup %4743 }
 0xefc   :  { %v4746_v32 = vpop.eup %4745  ;;  %v1767_v44 = vmul.f32 %v4744_v21, %v5455_v7 }
 0xefd   :  { %v4748_v28 = vpop.eup %4747  ;;  %v2073_v36 = vadd.f32 1.0, %v4746_v32 }
 0xefe   :  { %v4750_v41 = vpop.eup %4749  ;;  %v1870_v50 = vmul.f32 %v4748_v28, %v5459_v11 }
 0xeff   :  { %4751 = vrcp.f32 %v2073_v36  ;;  %v1971_v59 = vmul.f32 %v4750_v41, %v5463_v17 }
 0xf09   :  { %v4752_v47 = vpop.eup %4751 }
 0xf0a   :  { %v2077_v11 = vmul.f32 %v4752_v47, %v5469_v13 }
 0xf4b   :  { %v1770_v22 = vpop.permute.xlu0 %1769 }
 0xf4c   :  { %v1772_v26 = vmul.f32 %v4744_v21, %v1770_v22 }
 0xf4e   :  { %1774 = vrot.lane.b32.xlu0 %v1772_v26, %s4955_s17 }
 0xf50   :  { %v1873_v30 = vpop.permute.xlu1 %1872 }
 0xf51   :  { %v1875_v31 = vmul.f32 %v4748_v28, %v1873_v30 }
 0xf53   :  { %1877 = vrot.lane.b32.xlu1 %v1875_v31, %s4955_s17 }
 0xf57   :  { %v1974_v29 = vpop.permute.xlu0 %1973 }
 0xf58   :  { %v1976_v34 = vmul.f32 %v4750_v41, %v1974_v29  ;;  %v5610_v29 = vld [vmem:[#allocation6] ss:$0 sm:$0xff] }
 0xf5a   :  { %1978 = vrot.lane.b32.xlu0 %v1976_v34, %s4959_s13 }
 0xf60   :  { %v2080_v35 = vpop.permute.xlu1 %2079 }
 0xf61   :  { %v2082_v40 = vmul.f32 %v4752_v47, %v2080_v35 }
 0xf63   :  { %2084 = vrot.lane.b32.xlu1 %v2082_v40, %s4959_s13 }
 0xfc0   :  { %v1775_v46 = vpop.permute.xlu0 %1774 }
 0xfc1   :  { %v5538_v27 = vadd.f32 %v1775_v46, %v1767_v44 }
 0xfc3   :  { %4753 = vtanh.f32 %v5538_v27 }
 0xfc5   :  { %v1878_v57 = vpop.permute.xlu1 %1877 }
 0xfc6   :  { %v5542_v58 = vadd.f32 %v1878_v57, %v1870_v50 }
 0xfc8   :  { %4755 = vtanh.f32 %v5542_v58 }
 0xfcc   :  { %v1979_v61 = vpop.permute.xlu0 %1978 }
 0xfcd   :  { %v4754_v62 = vpop.eup %4753  ;;  %v5546_v63 = vadd.f32 %v1979_v61, %v1971_v59 }
 0xfce   :  { %1780 = vrot.lane.b32.xlu0 %v4754_v62, %s4955_s17 }
 0xfcf   :  { %4757 = vtanh.f32 %v5546_v63 }
 0xfd2   :  { %v4756_v7 = vpop.eup %4755 }
 0xfd3   :  { %1883 = vrot.lane.b32.xlu1 %v4756_v7, %s4955_s17 }
 0xfd5   :  { %v2085_v2 = vpop.permute.xlu1 %2084 }
 0xfd6   :  { %v5552_v3 = vadd.f32 %v2085_v2, %v2077_v11 }
 0xfd8   :  { %4759 = vtanh.f32 %v5552_v3 }
 0xfd9   :  { %v4758_v53 = vpop.eup %4757 }
 0xfda   :  { %1984 = vrot.lane.b32.xlu0 %v4758_v53, %s4959_s13 }
 0xfe2   :  { %v4760_v17 = vpop.eup %4759 }
 0xfe3   :  { %2090 = vrot.lane.b32.xlu1 %v4760_v17, %s4959_s13 }
0x1040   :  { %v1781_v6 = vpop.permute.xlu0 %1780 }
0x1041   :  { %v1783_v9 = vmul.f32 %v4744_v21, %v1781_v6 }
0x1043   :  { %2095 = vrot.lane.b32.xlu0 %v1783_v9, %s4956_s0 }
0x1045   :  { %v1884_v52 = vpop.permute.xlu1 %1883 }
0x1046   :  { %v1886_v60 = vmul.f32 %v4748_v28, %v1884_v52  ;;  %v5607_v28 = vld [vmem:[%s5830_s5] ss:$0 sm:$0xff] }
0x1048   :  { %2297 = vrot.lane.b32.xlu0 %v1886_v60, %s4956_s0  ;;  %2196 = vrot.lane.b32.xlu1 %v1886_v60, %s4957_s23 }
0x104c   :  { %v1985_v13 = vpop.permute.xlu0 %1984 }
0x104d   :  { %v1987_v14 = vmul.f32 %v4750_v41, %v1985_v13 }
0x104f   :  { %2399 = vrot.lane.b32.xlu1 %v1987_v14, %s4957_s23 }
0x1055   :  { %v2091_v4 = vpop.permute.xlu1 %2090 }
0x1056   :  { %v5561_v15 = vmul.f32 %v4752_v47, %v2091_v4 }
0x1058   :  { %2403 = vrot.lane.b32.xlu0 %v5561_v15, %s4960_s24 }
0x10b5   :  { %v2096_v16 = vpop.permute.xlu0 %2095 }
0x10b6   :  { %4149 = vmatmul.mubr.msk.f32.vlgmr.msra.gmra.mrb[24].mxu0 %vm246_vm2, %v2096_v16 }
0x10b7   :  { %4508 = vmatpush3.bf16.msra.mxu0 %v5229_v37  ;;  %4182 = vmatprep.mubr.msk.f32.mxu0 %vm4953_vm0, %v4954_v1 }
0x10b8   :  { %4509 = vmatprep.subr.bf16.mxu0 %v4952_v0 }
0x10ba   :  { %v2197_v20 = vpop.permute.xlu1 %2196  ;;  %v2298_v18 = vpop.permute.xlu0 %2297 }
0x10bb   :  { %4511 = vmatpush3.bf16.msra.mxu0 %v5240_v45  ;;  %v2199_v23 = vsel %vm246_vm2, %v2096_v16, %v2197_v20  ;;  %v2300_v54 = vsel %vm246_vm2, %v2298_v18, %v1987_v14 }
0x10bc   :  { %4512 = vmatprep.subr.bf16.mxu0 %v4952_v0  ;;  %4168 = vmatmul.mubr.msk.f32.vlgmr.msra.gmra.mrb[20].mxu1 %vm453_vm3, %v2199_v23 }
0x10bd   :  { %4523 = vmatpush3.bf16.msra.mxu1 %v5066_v8  ;;  %4204 = vmatprep.mubr.msk.f32.mxu1 %vm4953_vm0, %v4954_v1 }
0x10be   :  { %4524 = vmatprep.subr.bf16.mxu1 %v4952_v0 }
0x10bf   :  { %4514 = vmatpush3.bf16.msra.mxu0 %v5257_v49 }
0x10c0   :  { %4515 = vmatprep.subr.bf16.mxu0 %v4952_v0 }
0x10c1   :  { %4526 = vmatpush3.bf16.msra.mxu1 %v5073_v12  ;;  %v2400_v8 = vpop.permute.xlu1 %2399  ;;  %v213_v12 = vadd.f32 %v5522_v42, %v5178_v56 }
0x10c2   :  { %4183 = vmatmul.mubr.msk.f32.vlgmr.msra.gmra.mrb[26].mxu0 %vm764_vm4, %v2300_v54  ;;  %4539 = vmatprep.subr.bf16.mxu1 %v4952_v0 }
0x10c3   :  { %4517 = vmatpush3.bf16.msra.mxu0 %v5314_v5  ;;  %4193 = vmatprep.mubr.msk.f32.mxu0 %vm4953_vm0, %v4954_v1 }
0x10c4   :  { %4518 = vmatprep.subr.bf16.mxu0 %v4952_v0 }
0x10c7   :  { %4520 = vmatpush3.bf16.msra.mxu0 %v5329_v10 }
0x10c8   :  { %4527 = vmatprep.subr.bf16.mxu0 %v4952_v0 }
0x10ca   :  { %v2404_v51 = vpop.permute.xlu0 %2403 }
0x10cb   :  { %v2406_v19 = vsel %vm91_vm1, %v2400_v8, %v2404_v51 }
0x10cc   :  { %4194 = vmatmul.mubr.msk.f32.vlgmr.msra.gmra.mrb[28].mxu0 %vm246_vm2, %v2406_v19 }
0x10cd   :  { %4529 = vmatpush3.bf16.msra.mxu0 %v5109_v33  ;;  %4223 = vmatprep.mubr.msk.f32.mxu0 %vm4953_vm0, %v4954_v1 }
0x10ce   :  { %4530 = vmatprep.subr.bf16.mxu0 %v4952_v0 }
0x10d1   :  { %4532 = vmatpush3.bf16.msra.mxu0 %v5126_v38 }
0x10d2   :  { %4533 = vmatprep.subr.bf16.mxu0 %v4952_v0 }
0x10d5   :  { %4535 = vmatpush3.bf16.msra.mxu0 %v5144_v43 }
0x10d6   :  { %4536 = vmatprep.subr.bf16.mxu0 %v4952_v0 }
0x10d9   :  { %4538 = vmatpush3.bf16.msra.mxu0 %v5160_v48 }
0x10da   :  { %4554 = vmatprep.subr.bf16.mxu0 %v4952_v0 }
0x1189   :  { %v2165_v21 = vpop.f32.mrb[24].mxu0 }
0x118a   :  { %v2169_v22 = vadd.f32 %v2165_v21, %v213_v12  ;;  %v4150_v26 = vpop.f32.mrb[25].mxu0 }
0x118c   :  { %4761 = vtanh.f32 %v2169_v22  ;;  %v3625_v57 = vmul.f32 -1.442695, %v2169_v22 }
0x118f   :  { %v2269_v32 = vpop.f32.mrb[20].mxu1 }
0x1190   :  { %v2270_v30 = vadd.f32 %v5607_v28, %v2269_v32  ;;  %v4169_v31 = vpop.f32.mrb[21].mxu1 }
0x1192   :  { %4763 = vtanh.f32 %v2270_v30  ;;  %v3627_v59 = vmul.f32 -1.442695, %v2270_v30 }
0x1195   :  { %v2370_v36 = vpop.f32.mrb[26].mxu0 }
0x1196   :  { %v4762_v41 = vpop.eup %4761  ;;  %v2371_v56 = vadd.f32 %v5610_v29, %v2370_v36  ;;  %v4184_v34 = vpop.f32.mrb[27].mxu0 }
0x1197   :  { %2179 = vrot.lane.b32.xlu1 %v4762_v41, %s4955_s17 }
0x1198   :  { %4765 = vtanh.f32 %v2371_v56  ;;  %v3629_v61 = vmul.f32 -1.442695, %v2371_v56 }
0x119c   :  { %v4764_v47 = vpop.eup %4763 }
0x119d   :  { %2282 = vrot.lane.b32.xlu0 %v4764_v47, %s4955_s17 }
0x119f   :  { %v2476_v35 = vpop.f32.mrb[28].mxu0 }
0x11a0   :  { %v2477_v40 = vadd.f32 %v5365_v24, %v2476_v35  ;;  %v4195_v44 = vpop.f32.mrb[29].mxu0 }
0x11a2   :  { %v4766_v46 = vpop.eup %4765  ;;  %4767 = vtanh.f32 %v2477_v40  ;;  %v3631_v2 = vmul.f32 -1.442695, %v2477_v40 }
0x11a3   :  { %2383 = vrot.lane.b32.xlu1 %v4766_v46, %s4958_s6  ;;  %4769 = vpow2.f32 %v3625_v57 }
0x11a4   :  { %4771 = vpow2.f32 %v3627_v59 }
0x11a5   :  { %4773 = vpow2.f32 %v3629_v61 }
0x11ac   :  { %v4768_v50 = vpop.eup %4767 }
0x11ad   :  { %2489 = vrot.lane.b32.xlu0 %v4768_v50, %s4958_s6  ;;  %v4770_v62 = vpop.eup %4769 }
0x11ae   :  { %v2173_v7 = vadd.f32 1.0, %v4770_v62  ;;  %v4772_v11 = vpop.eup %4771 }
0x11af   :  { %v2276_v24 = vadd.f32 1.0, %v4772_v11  ;;  %v4774_v53 = vpop.eup %4773 }
0x11b0   :  { %4775 = vrcp.f32 %v2173_v7  ;;  %v2377_v17 = vadd.f32 1.0, %v4774_v53 }
0x11b1   :  { %4777 = vpow2.f32 %v3631_v2 }
0x11b2   :  { %4779 = vrcp.f32 %v2276_v24 }
0x11b3   :  { %4781 = vrcp.f32 %v2377_v17 }
0x11ba   :  { %v4776_v6 = vpop.eup %4775 }
0x11bb   :  { %v4778_v60 = vpop.eup %4777  ;;  %v2177_v19 = vmul.f32 %v4776_v6, %v5538_v27 }
0x11bc   :  { %v4780_v13 = vpop.eup %4779  ;;  %v2483_v16 = vadd.f32 1.0, %v4778_v60 }
0x11bd   :  { %v4782_v20 = vpop.eup %4781  ;;  %v2280_v22 = vmul.f32 %v4780_v13, %v5542_v58 }
0x11be   :  { %4783 = vrcp.f32 %v2483_v16  ;;  %v2381_v30 = vmul.f32 %v4782_v20, %v5546_v63 }
0x11c8   :  { %v4784_v54 = vpop.eup %4783 }
0x11c9   :  { %v2487_v58 = vmul.f32 %v4784_v54, %v5552_v3 }
0x1209   :  { %v2180_v9 = vpop.permute.xlu1 %2179 }
0x120a   :  { %v2182_v52 = vmul.f32 %v4776_v6, %v2180_v9 }
0x120c   :  { %2184 = vrot.lane.b32.xlu1 %v2182_v52, %s4955_s17 }
0x120f   :  { %v2283_v14 = vpop.permute.xlu0 %2282 }
0x1210   :  { %v2285_v4 = vmul.f32 %v4780_v13, %v2283_v14 }
0x1212   :  { %2287 = vrot.lane.b32.xlu0 %v2285_v4, %s4955_s17 }
0x1215   :  { %v2384_v23 = vpop.permute.xlu1 %2383 }
0x1216   :  { %v2386_v18 = vmul.f32 %v4782_v20, %v2384_v23 }
0x1218   :  { %2388 = vrot.lane.b32.xlu1 %v2386_v18, %s4959_s13 }
0x121f   :  { %v2490_v8 = vpop.permute.xlu0 %2489 }
0x1220   :  { %v2492_v51 = vmul.f32 %v4784_v54, %v2490_v8 }
0x1222   :  { %2494 = vrot.lane.b32.xlu0 %v2492_v51, %s4959_s13 }
0x127e   :  { %v2185_v12 = vpop.permute.xlu1 %2184 }
0x127f   :  { %v5623_v21 = vadd.f32 %v2185_v12, %v2177_v19 }
0x1281   :  { %4785 = vtanh.f32 %v5623_v21 }
0x1284   :  { %v2288_v26 = vpop.permute.xlu0 %2287 }
0x1285   :  { %v5627_v32 = vadd.f32 %v2288_v26, %v2280_v22 }
0x1287   :  { %4787 = vtanh.f32 %v5627_v32 }
0x128a   :  { %v2389_v31 = vpop.permute.xlu1 %2388 }
0x128b   :  { %v4786_v36 = vpop.eup %4785  ;;  %v5631_v41 = vadd.f32 %v2389_v31, %v2381_v30 }
0x128c   :  { %2190 = vrot.lane.b32.xlu1 %v4786_v36, %s4955_s17 }
0x128d   :  { %4789 = vtanh.f32 %v5631_v41 }
0x1291   :  { %v4788_v27 = vpop.eup %4787 }
0x1292   :  { %2293 = vrot.lane.b32.xlu0 %v4788_v27, %s4955_s17 }
0x1294   :  { %v2495_v56 = vpop.permute.xlu0 %2494 }
0x1295   :  { %v5637_v34 = vadd.f32 %v2495_v56, %v2487_v58 }
0x1297   :  { %v4790_v47 = vpop.eup %4789  ;;  %4791 = vtanh.f32 %v5637_v34 }
0x1298   :  { %2394 = vrot.lane.b32.xlu1 %v4790_v47, %s4959_s13 }
0x12a1   :  { %v4792_v63 = vpop.eup %4791 }
0x12a2   :  { %2500 = vrot.lane.b32.xlu0 %v4792_v63, %s4959_s13 }
0x12fe   :  { %v2191_v35 = vpop.permute.xlu1 %2190 }
0x12ff   :  { %v2193_v40 = vmul.f32 %v4776_v6, %v2191_v35 }
0x1301   :  { %2505 = vrot.lane.b32.xlu1 %v2193_v40, %s4956_s0 }
0x1304   :  { %v2294_v44 = vpop.permute.xlu0 %2293 }
0x1305   :  { %v2296_v46 = vmul.f32 %v4780_v13, %v2294_v44 }
0x1307   :  { %2707 = vrot.lane.b32.xlu1 %v2296_v46, %s4956_s0  ;;  %2606 = vrot.lane.b32.xlu0 %v2296_v46, %s4957_s23 }
0x130a   :  { %v2395_v3 = vpop.permute.xlu1 %2394 }
0x130b   :  { %v2397_v50 = vmul.f32 %v4782_v20, %v2395_v3  ;;  %v5698_v20 = vld [vmem:[%s5834_s9] ss:$0 sm:$0xff]  ;;  %s4961_s9 = smov 48  }
0x130d   :  { %2809 = vrot.lane.b32.xlu0 %v2397_v50, %s4957_s23 }
0x1314   :  { %v2501_v57 = vpop.permute.xlu0 %2500 }
0x1315   :  { %v5646_v59 = vmul.f32 %v4784_v54, %v2501_v57 }
0x1317   :  { %2813 = vrot.lane.b32.xlu1 %v5646_v59, %s4960_s24 }
0x1373   :  { %v2506_v61 = vpop.permute.xlu1 %2505 }
0x1374   :  { %4205 = vmatmul.mubr.msk.f32.vlgmr.msra.gmra.mrb[22].mxu1 %vm246_vm2, %v2506_v61 }
0x1375   :  { %4541 = vmatpush3.bf16.msra.mxu1 %v5229_v37  ;;  %4238 = vmatprep.mubr.msk.f32.mxu1 %vm4953_vm0, %v4954_v1 }
0x1376   :  { %4542 = vmatprep.subr.bf16.mxu1 %v4952_v0 }
0x1379   :  { %4544 = vmatpush3.bf16.msra.mxu1 %v5240_v45  ;;  %v2607_v62 = vpop.permute.xlu0 %2606  ;;  %v2708_v11 = vpop.permute.xlu1 %2707 }
0x137a   :  { %4545 = vmatprep.subr.bf16.mxu1 %v4952_v0  ;;  %v2609_v7 = vsel %vm246_vm2, %v2506_v61, %v2607_v62  ;;  %v2710_v2 = vsel %vm246_vm2, %v2708_v11, %v2397_v50 }
0x137b   :  { %4224 = vmatmul.mubr.msk.f32.vlgmr.msra.gmra.mrb[30].mxu0 %vm453_vm3, %v2609_v7 }
0x137c   :  { %4556 = vmatpush3.bf16.msra.mxu0 %v5109_v33  ;;  %4268 = vmatprep.mubr.msk.f32.mxu0 %vm4953_vm0, %v4954_v1 }
0x137d   :  { %4547 = vmatpush3.bf16.msra.mxu1 %v5257_v49  ;;  %4557 = vmatprep.subr.bf16.mxu0 %v4952_v0 }
0x137e   :  { %4548 = vmatprep.subr.bf16.mxu1 %v4952_v0 }
0x137f   :  { %v2810_v33 = vpop.permute.xlu0 %2809 }
0x1380   :  { %4239 = vmatmul.mubr.msk.f32.vlgmr.msra.gmra.mrb[24].mxu1 %vm764_vm4, %v2710_v2  ;;  %4559 = vmatpush3.bf16.msra.mxu0 %v5126_v38  ;;  %v218_v38 = vadd.f32 %v5522_v42, %v5176_v55 }
0x1381   :  { %4550 = vmatpush3.bf16.msra.mxu1 %v5314_v5  ;;  %4249 = vmatprep.mubr.msk.f32.mxu1 %vm4953_vm0, %v4954_v1 }
0x1382   :  { %4551 = vmatprep.subr.bf16.mxu1 %v4952_v0  ;;  %4560 = vmatprep.subr.bf16.mxu0 %v4952_v0 }
0x1384   :  { %4562 = vmatpush3.bf16.msra.mxu0 %v5144_v43 }
0x1385   :  { %4553 = vmatpush3.bf16.msra.mxu1 %v5329_v10  ;;  %4563 = vmatprep.subr.bf16.mxu0 %v4952_v0 }
0x1386   :  { %4566 = vmatprep.subr.bf16.mxu1 %v4952_v0 }
0x1388   :  { %4565 = vmatpush3.bf16.msra.mxu0 %v5160_v48 }
0x1389   :  { %v2814_v24 = vpop.permute.xlu1 %2813  ;;  %4575 = vmatprep.subr.bf16.mxu0 %v4952_v0 }
0x138a   :  { %v2816_v53 = vsel %vm91_vm1, %v2810_v33, %v2814_v24 }
0x138b   :  { %4250 = vmatmul.mubr.msk.f32.vlgmr.msra.gmra.mrb[26].mxu1 %vm246_vm2, %v2816_v53 }
0x138c   :  { %4568 = vmatpush3.bf16.msra.mxu1 %v5229_v37  ;;  %4283 = vmatprep.mubr.msk.f32.mxu1 %vm4953_vm0, %v4954_v1 }
0x138d   :  { %4569 = vmatprep.subr.bf16.mxu1 %v4952_v0 }
0x1390   :  { %4571 = vmatpush3.bf16.msra.mxu1 %v5240_v45 }
0x1391   :  { %4572 = vmatprep.subr.bf16.mxu1 %v4952_v0 }
0x1394   :  { %4574 = vmatpush3.bf16.msra.mxu1 %v5257_v49 }
0x1395   :  { %4581 = vmatprep.subr.bf16.mxu1 %v4952_v0 }
0x1447   :  { %v2575_v43 = vpop.f32.mrb[22].mxu1 }
0x1448   :  { %v2579_v48 = vadd.f32 %v2575_v43, %v218_v38  ;;  %v4206_v17 = vpop.f32.mrb[23].mxu1 }
0x144a   :  { %4793 = vtanh.f32 %v2579_v48  ;;  %v3633_v8 = vmul.f32 -1.442695, %v2579_v48 }
0x144e   :  { %v2679_v6 = vpop.f32.mrb[30].mxu0 }
0x144f   :  { %v2680_v9 = vadd.f32 %v5607_v28, %v2679_v6  ;;  %v4225_v52 = vpop.f32.mrb[31].mxu0 }
0x1451   :  { %4795 = vtanh.f32 %v2680_v9  ;;  %v3635_v51 = vmul.f32 -1.442695, %v2680_v9 }
0x1453   :  { %v2780_v60 = vpop.f32.mrb[24].mxu1 }
0x1454   :  { %v4794_v13 = vpop.eup %4793  ;;  %v2781_v14 = vadd.f32 %v5610_v29, %v2780_v60  ;;  %v4240_v4 = vpop.f32.mrb[25].mxu1 }
0x1455   :  { %2589 = vrot.lane.b32.xlu0 %v4794_v13, %s4955_s17 }
0x1456   :  { %4797 = vtanh.f32 %v2781_v14  ;;  %v3637_v19 = vmul.f32 -1.442695, %v2781_v14 }
0x145b   :  { %v4796_v16 = vpop.eup %4795 }
0x145c   :  { %2692 = vrot.lane.b32.xlu1 %v4796_v16, %s4955_s17 }
0x145e   :  { %v2886_v55 = vpop.f32.mrb[26].mxu1 }
0x145f   :  { %v2887_v23 = vadd.f32 %v5698_v20, %v2886_v55  ;;  %v4251_v18 = vpop.f32.mrb[27].mxu1 }
0x1460   :  { %v4798_v42 = vpop.eup %4797 }
0x1461   :  { %2793 = vrot.lane.b32.xlu0 %v4798_v42, %s4958_s6  ;;  %4799 = vtanh.f32 %v2887_v23  ;;  %v3639_v30 = vmul.f32 -1.442695, %v2887_v23 }
0x1462   :  { %4801 = vpow2.f32 %v3633_v8 }
0x1463   :  { %4803 = vpow2.f32 %v3635_v51 }
0x1464   :  { %4805 = vpow2.f32 %v3637_v19 }
0x146b   :  { %v4800_v54 = vpop.eup %4799 }
0x146c   :  { %2899 = vrot.lane.b32.xlu1 %v4800_v54, %s4958_s6  ;;  %v4802_v12 = vpop.eup %4801 }
0x146d   :  { %v2583_v22 = vadd.f32 1.0, %v4802_v12  ;;  %v4804_v26 = vpop.eup %4803 }
0x146e   :  { %v2686_v31 = vadd.f32 1.0, %v4804_v26  ;;  %v4806_v36 = vpop.eup %4805 }
0x146f   :  { %4807 = vrcp.f32 %v2583_v22  ;;  %v2787_v27 = vadd.f32 1.0, %v4806_v36 }
0x1470   :  { %4809 = vpow2.f32 %v3639_v30 }
0x1471   :  { %4811 = vrcp.f32 %v2686_v31 }
0x1472   :  { %4813 = vrcp.f32 %v2787_v27 }
0x1479   :  { %v4808_v58 = vpop.eup %4807 }
0x147a   :  { %v4810_v63 = vpop.eup %4809  ;;  %v2587_v11 = vmul.f32 %v4808_v58, %v5623_v21 }
0x147b   :  { %v4812_v35 = vpop.eup %4811  ;;  %v2893_v46 = vadd.f32 1.0, %v4810_v63 }
0x147c   :  { %v4814_v3 = vpop.eup %4813  ;;  %v2690_v24 = vmul.f32 %v4812_v35, %v5627_v32 }
0x147d   :  { %4815 = vrcp.f32 %v2893_v46  ;;  %v2791_v43 = vmul.f32 %v4814_v3, %v5631_v41 }
0x1487   :  { %v4816_v61 = vpop.eup %4815 }
0x1488   :  { %v2897_v32 = vmul.f32 %v4816_v61, %v5637_v34 }
0x14c7   :  { %v2590_v56 = vpop.permute.xlu0 %2589 }
0x14c8   :  { %v2592_v47 = vmul.f32 %v4808_v58, %v2590_v56 }
0x14ca   :  { %2594 = vrot.lane.b32.xlu0 %v2592_v47, %s4955_s17 }
0x14ce   :  { %v2693_v40 = vpop.permute.xlu1 %2692 }
0x14cf   :  { %v2695_v44 = vmul.f32 %v4812_v35, %v2693_v40 }
0x14d1   :  { %2697 = vrot.lane.b32.xlu1 %v2695_v44, %s4955_s17 }
0x14d3   :  { %v2794_v50 = vpop.permute.xlu0 %2793 }
0x14d4   :  { %v2796_v57 = vmul.f32 %v4814_v3, %v2794_v50 }
0x14d6   :  { %2798 = vrot.lane.b32.xlu0 %v2796_v57, %s4959_s13 }
0x14de   :  { %v2900_v62 = vpop.permute.xlu1 %2899 }
0x14df   :  { %v2902_v7 = vmul.f32 %v4816_v61, %v2900_v62 }
0x14e1   :  { %2904 = vrot.lane.b32.xlu1 %v2902_v7, %s4959_s13 }
0x153c   :  { %v2595_v2 = vpop.permute.xlu0 %2594 }
0x153d   :  { %v2597_v33 = vadd.f32 %v2595_v2, %v2587_v11 }
0x153f   :  { %4817 = vtanh.f32 %v2597_v33 }
0x1543   :  { %v2698_v53 = vpop.permute.xlu1 %2697 }
0x1544   :  { %v5709_v38 = vadd.f32 %v2698_v53, %v2690_v24 }
0x1546   :  { %4819 = vtanh.f32 %v5709_v38 }
0x1548   :  { %v2799_v48 = vpop.permute.xlu0 %2798 }
0x1549   :  { %v4818_v17 = vpop.eup %4817  ;;  %v5713_v6 = vadd.f32 %v2799_v48, %v2791_v43 }
0x154a   :  { %2600 = vrot.lane.b32.xlu0 %v4818_v17, %s4955_s17 }
0x154b   :  { %4821 = vtanh.f32 %v5713_v6 }
0x1550   :  { %v4820_v21 = vpop.eup %4819 }
0x1551   :  { %2703 = vrot.lane.b32.xlu1 %v4820_v21, %s4955_s17 }
0x1553   :  { %v2905_v9 = vpop.permute.xlu1 %2904 }
0x1554   :  { %v5719_v60 = vadd.f32 %v2905_v9, %v2897_v32 }
0x1555   :  { %v4822_v52 = vpop.eup %4821 }
0x1556   :  { %2804 = vrot.lane.b32.xlu0 %v4822_v52, %s4959_s13  ;;  %4823 = vtanh.f32 %v5719_v60 }
0x1560   :  { %v4824_v41 = vpop.eup %4823 }
0x1561   :  { %2910 = vrot.lane.b32.xlu1 %v4824_v41, %s4959_s13 }
0x15bc   :  { %v2601_v13 = vpop.permute.xlu0 %2600 }
0x15bd   :  { %v2603_v14 = vmul.f32 %v4808_v58, %v2601_v13 }
0x15bf   :  { %2915 = vrot.lane.b32.xlu0 %v2603_v14, %s4956_s0 }
0x15c3   :  { %v2704_v4 = vpop.permute.xlu1 %2703 }
0x15c4   :  { %v2706_v16 = vmul.f32 %v4812_v35, %v2704_v4 }
0x15c6   :  { %3020 = vrot.lane.b32.xlu0 %v2706_v16, %s4956_s0  ;;  %2919 = vrot.lane.b32.xlu1 %v2706_v16, %s4957_s23 }
0x15c8   :  { %v2805_v34 = vpop.permute.xlu0 %2804 }
0x15c9   :  { %v2807_v55 = vmul.f32 %v4814_v3, %v2805_v34 }
0x15cb   :  { %3122 = vrot.lane.b32.xlu1 %v2807_v55, %s4957_s23 }
0x15d3   :  { %v2911_v42 = vpop.permute.xlu1 %2910 }
0x15d4   :  { %v5728_v23 = vmul.f32 %v4816_v61, %v2911_v42 }
0x15d6   :  { %3126 = vrot.lane.b32.xlu0 %v5728_v23, %s4960_s24 }
0x1631   :  { %v2916_v18 = vpop.permute.xlu0 %2915 }
0x1638   :  { %v3021_v54 = vpop.permute.xlu0 %3020  ;;  %v2920_v8 = vpop.permute.xlu1 %2919 }
0x1639   :  { %v3023_v51 = vsel %vm246_vm2, %v3021_v54, %v2807_v55  ;;  %v2922_v19 = vsel %vm246_vm2, %v2916_v18, %v2920_v8 }
0x163a   :  { %4269 = vmatmul.mubr.msk.f32.vlgmr.msra.gmra.mrb[32].mxu0 %vm453_vm3, %v2922_v19  ;;  %4284 = vmatmul.mubr.msk.f32.vlgmr.msra.gmra.mrb[28].mxu1 %vm764_vm4, %v3023_v51 }
0x163b   :  { %4577 = vmatpush3.bf16.msra.mxu0 %v5314_v5  ;;  %4294 = vmatprep.mubr.msk.f32.mxu0 %vm4953_vm0, %v4954_v1 }
0x163c   :  { %4578 = vmatprep.subr.bf16.mxu0 %v4952_v0  ;;  %4583 = vmatpush3.bf16.msra.mxu1 %v5229_v37 }
0x163d   :  { %4584 = vmatprep.subr.bf16.mxu1 %v4952_v0  ;;  %4309 = vmatprep.mubr.msk.f32.mxu1 %vm4953_vm0, %v4954_v1  ;;  %v3123_v12 = vpop.permute.xlu1 %3122 }
0x163f   :  { %4580 = vmatpush3.bf16.msra.mxu0 %v5329_v10 }
0x1640   :  { %4586 = vmatpush3.bf16.msra.mxu1 %v5240_v45  ;;  %4590 = vmatprep.subr.bf16.mxu0 %v4952_v0 }
0x1641   :  { %4587 = vmatprep.subr.bf16.mxu1 %v4952_v0 }
0x1644   :  { %4589 = vmatpush3.bf16.msra.mxu1 %v5257_v49 }
0x1645   :  { %4596 = vmatprep.subr.bf16.mxu1 %v4952_v0 }
0x1648   :  { %v3127_v22 = vpop.permute.xlu0 %3126 }
0x1649   :  { %v3129_v37 = vsel %vm91_vm1, %v3123_v12, %v3127_v22 }
0x164a   :  { %4295 = vmatmul.mubr.msk.f32.vlgmr.msra.gmra.mrb[34].mxu0 %vm246_vm2, %v3129_v37 }
0x164b   :  { %4592 = vmatpush3.bf16.msra.mxu0 %v5314_v5  ;;  %4320 = vmatprep.mubr.msk.f32.mxu0 %vm4953_vm0, %v4954_v1 }
0x164c   :  { %4593 = vmatprep.subr.bf16.mxu0 %v4952_v0 }
0x164f   :  { %4595 = vmatpush3.bf16.msra.mxu0 %v5329_v10 }
0x170d   :  { %v2992_v45 = vpop.f32.mrb[32].mxu0  ;;  %v3093_v26 = vpop.f32.mrb[28].mxu1 }
0x170e   :  { %v2993_v49 = vadd.f32 %v5607_v28, %v2992_v45  ;;  %v3094_v30 = vadd.f32 %v5610_v29, %v3093_v26  ;;  %v4270_v31 = vpop.f32.mrb[33].mxu0  ;;  %v4285_v36 = vpop.f32.mrb[29].mxu1 }
0x1710   :  { %4825 = vtanh.f32 %v2993_v49  ;;  %v3641_v28 = vmul.f32 -1.442695, %v2993_v49  ;;  %v3643_v40 = vmul.f32 -1.442695, %v3094_v30 }
0x1711   :  { %4827 = vtanh.f32 %v3094_v30 }
0x171a   :  { %v4826_v27 = vpop.eup %4825 }
0x171b   :  { %v4828_v58 = vpop.eup %4827  ;;  %3005 = vrot.lane.b32.xlu1 %v4826_v27, %s4955_s17 }
0x171c   :  { %3106 = vrot.lane.b32.xlu0 %v4828_v58, %s4958_s6 }
0x171d   :  { %v3199_v56 = vpop.f32.mrb[34].mxu0 }
0x171e   :  { %v3200_v47 = vadd.f32 %v5698_v20, %v3199_v56  ;;  %v4296_v63 = vpop.f32.mrb[35].mxu0 }
0x1720   :  { %4829 = vtanh.f32 %v3200_v47  ;;  %v3645_v50 = vmul.f32 -1.442695, %v3200_v47 }
0x1721   :  { %4831 = vpow2.f32 %v3641_v28 }
0x1722   :  { %4833 = vpow2.f32 %v3643_v40 }
0x172a   :  { %v4830_v35 = vpop.eup %4829 }
0x172b   :  { %3212 = vrot.lane.b32.xlu1 %v4830_v35, %s4958_s6  ;;  %v4832_v44 = vpop.eup %4831 }
0x172c   :  { %v4834_v46 = vpop.eup %4833  ;;  %v2999_v3 = vadd.f32 1.0, %v4832_v44 }
0x172d   :  { %v3100_v57 = vadd.f32 1.0, %v4834_v46 }
0x172e   :  { %4835 = vrcp.f32 %v2999_v3 }
0x172f   :  { %4837 = vpow2.f32 %v3645_v50 }
0x1730   :  { %4839 = vrcp.f32 %v3100_v57 }
0x1738   :  { %v4836_v61 = vpop.eup %4835 }
0x1739   :  { %v4838_v62 = vpop.eup %4837  ;;  %v3003_v21 = vmul.f32 %v4836_v61, %v5709_v38 }
0x173a   :  { %v4840_v11 = vpop.eup %4839  ;;  %v3206_v53 = vadd.f32 1.0, %v4838_v62 }
0x173b   :  { %v3104_v9 = vmul.f32 %v4840_v11, %v5713_v6 }
0x173c   :  { %4841 = vrcp.f32 %v3206_v53 }
0x1746   :  { %v4842_v43 = vpop.eup %4841 }
0x1747   :  { %v3210_v16 = vmul.f32 %v4842_v43, %v5719_v60 }
0x178d   :  { %v3006_v7 = vpop.permute.xlu1 %3005 }
0x178e   :  { %v3107_v2 = vpop.permute.xlu0 %3106  ;;  %v3008_v33 = vmul.f32 %v4836_v61, %v3006_v7 }
0x178f   :  { %v3109_v24 = vmul.f32 %v4840_v11, %v3107_v2 }
0x1790   :  { %3010 = vrot.lane.b32.xlu0 %v3008_v33, %s4955_s17 }
0x1791   :  { %3111 = vrot.lane.b32.xlu1 %v3109_v24, %s4959_s13 }
0x179d   :  { %v3213_v48 = vpop.permute.xlu1 %3212 }
0x179e   :  { %v3215_v17 = vmul.f32 %v4842_v43, %v3213_v48 }
0x17a0   :  { %3217 = vrot.lane.b32.xlu0 %v3215_v17, %s4959_s13 }
0x1802   :  { %v3011_v32 = vpop.permute.xlu0 %3010 }
0x1803   :  { %v3013_v52 = vadd.f32 %v3011_v32, %v3003_v21  ;;  %v3112_v41 = vpop.permute.xlu1 %3111 }
0x1804   :  { %v5768_v13 = vadd.f32 %v3112_v41, %v3104_v9 }
0x1805   :  { %4843 = vtanh.f32 %v3013_v52 }
0x1806   :  { %4845 = vtanh.f32 %v5768_v13 }
0x180f   :  { %v4844_v14 = vpop.eup %4843 }
0x1810   :  { %v4846_v4 = vpop.eup %4845  ;;  %3016 = vrot.lane.b32.xlu1 %v4844_v14, %s4955_s17 }
0x1811   :  { %3117 = vrot.lane.b32.xlu0 %v4846_v4, %s4959_s13 }
0x1812   :  { %v3218_v34 = vpop.permute.xlu0 %3217 }
0x1813   :  { %v3220_v38 = vadd.f32 %v3218_v34, %v3210_v16 }
0x1815   :  { %4847 = vtanh.f32 %v3220_v38 }
0x181f   :  { %v4848_v55 = vpop.eup %4847 }
0x1820   :  { %3223 = vrot.lane.b32.xlu1 %v4848_v55, %s4959_s13 }
0x1882   :  { %v3017_v6 = vpop.permute.xlu1 %3016 }
0x1883   :  { %v3019_v42 = vmul.f32 %v4836_v61, %v3017_v6  ;;  %v3118_v18 = vpop.permute.xlu0 %3117 }
0x1884   :  { %v3120_v54 = vmul.f32 %v4840_v11, %v3118_v18 }
0x1885   :  { %3228 = vrot.lane.b32.xlu0 %v3019_v42, %s4956_s0 }
0x1886   :  { %3330 = vrot.lane.b32.xlu1 %v3120_v54, %s4957_s23 }
0x1892   :  { %v3224_v8 = vpop.permute.xlu1 %3223 }
0x1893   :  { %v5777_v51 = vmul.f32 %v4842_v43, %v3224_v8 }
0x1895   :  { %3334 = vrot.lane.b32.xlu0 %v5777_v51, %s4960_s24 }
0x18f7   :  { %v3229_v60 = vpop.permute.xlu0 %3228 }
0x18f8   :  { %v3231_v19 = vsel %vm246_vm2, %v3229_v60, %v3120_v54  ;;  %v3331_v12 = vpop.permute.xlu1 %3330 }
0x18f9   :  { %4310 = vmatmul.mubr.msk.f32.vlgmr.msra.gmra.mrb[30].mxu1 %vm764_vm4, %v3231_v19 }
0x18fa   :  { %4598 = vmatpush3.bf16.msra.mxu1 %v5314_v5  ;;  %4331 = vmatprep.mubr.msk.f32.mxu1 %vm4953_vm0, %v4954_v1 }
0x18fb   :  { %4599 = vmatprep.subr.bf16.mxu1 %v4952_v0 }
0x18fe   :  { %4601 = vmatpush3.bf16.msra.mxu1 %v5329_v10 }
0x1907   :  { %v3335_v22 = vpop.permute.xlu0 %3334 }
0x1908   :  { %v3337_v37 = vsel %vm91_vm1, %v3331_v12, %v3335_v22 }
0x1909   :  { %4321 = vmatmul.mubr.msk.f32.vlgmr.msra.gmra.mrb[36].mxu0 %vm246_vm2, %v3337_v37 }
0x19cc   :  { %v3301_v45 = vpop.f32.mrb[30].mxu1 }
0x19cd   :  { %v3302_v26 = vadd.f32 %v5610_v29, %v3301_v45  ;;  %v4311_v49 = vpop.f32.mrb[31].mxu1 }
0x19cf   :  { %4849 = vtanh.f32 %v3302_v26  ;;  %v3647_v31 = vmul.f32 -1.442695, %v3302_v26 }
0x19d9   :  { %v4850_v30 = vpop.eup %4849 }
0x19da   :  { %3314 = vrot.lane.b32.xlu1 %v4850_v30, %s4958_s6 }
0x19dc   :  { %v3407_v5 = vpop.f32.mrb[36].mxu0 }
0x19dd   :  { %v3408_v1 = vadd.f32 %v5698_v20, %v3407_v5  ;;  %v4322_v0 = vpop.f32.mrb[37].mxu0 }
0x19df   :  { %4851 = vtanh.f32 %v3408_v1  ;;  %v3649_v58 = vmul.f32 -1.442695, %v3408_v1 }
0x19e0   :  { %4853 = vpow2.f32 %v3647_v31 }
0x19e9   :  { %v4852_v10 = vpop.eup %4851 }
0x19ea   :  { %3420 = vrot.lane.b32.xlu0 %v4852_v10, %s4958_s6  ;;  %v4854_v36 = vpop.eup %4853 }
0x19eb   :  { %v3308_v27 = vadd.f32 1.0, %v4854_v36 }
0x19ed   :  { %4855 = vrcp.f32 %v3308_v27 }
0x19ee   :  { %4857 = vpow2.f32 %v3649_v58 }
0x19f7   :  { %v4856_v29 = vpop.eup %4855 }
0x19f8   :  { %v4858_v56 = vpop.eup %4857  ;;  %v3312_v46 = vmul.f32 %v4856_v29, %v5768_v13 }
0x19f9   :  { %v3414_v35 = vadd.f32 1.0, %v4858_v56 }
0x19fb   :  { %4859 = vrcp.f32 %v3414_v35 }
0x1a05   :  { %v4860_v28 = vpop.eup %4859 }
0x1a06   :  { %v3418_v61 = vmul.f32 %v4860_v28, %v3220_v38 }
0x1a4c   :  { %v3315_v47 = vpop.permute.xlu1 %3314 }
0x1a4d   :  { %v3317_v63 = vmul.f32 %v4856_v29, %v3315_v47 }
0x1a4f   :  { %3319 = vrot.lane.b32.xlu1 %v3317_v63, %s4959_s13 }
0x1a5c   :  { %v3421_v40 = vpop.permute.xlu0 %3420 }
0x1a5d   :  { %v3423_v44 = vmul.f32 %v4860_v28, %v3421_v40 }
0x1a5f   :  { %3425 = vrot.lane.b32.xlu0 %v3423_v44, %s4959_s13 }
0x1ac1   :  { %v3320_v3 = vpop.permute.xlu1 %3319 }
0x1ac2   :  { %v3322_v50 = vadd.f32 %v3320_v3, %v3312_v46 }
0x1ac4   :  { %4861 = vtanh.f32 %v3322_v50 }
0x1ace   :  { %v4862_v57 = vpop.eup %4861 }
0x1acf   :  { %3325 = vrot.lane.b32.xlu1 %v4862_v57, %s4959_s13 }
0x1ad1   :  { %v3426_v62 = vpop.permute.xlu0 %3425 }
0x1ad2   :  { %v3428_v7 = vadd.f32 %v3426_v62, %v3418_v61 }
0x1ad4   :  { %4863 = vtanh.f32 %v3428_v7 }
0x1ade   :  { %v4864_v11 = vpop.eup %4863 }
0x1adf   :  { %3431 = vrot.lane.b32.xlu0 %v4864_v11, %s4959_s13 }
0x1b41   :  { %v3326_v2 = vpop.permute.xlu1 %3325 }
0x1b42   :  { %v3328_v33 = vmul.f32 %v4856_v29, %v3326_v2 }
0x1b44   :  { %3436 = vrot.lane.b32.xlu1 %v3328_v33, %s4957_s23 }
0x1b51   :  { %v3432_v24 = vpop.permute.xlu0 %3431 }
0x1b52   :  { %v3434_v53 = vmul.f32 %v4860_v28, %v3432_v24 }
0x1b54   :  { %3440 = vrot.lane.b32.xlu0 %v3434_v53, %s4960_s24 }
0x1bb6   :  { %v3437_v43 = vpop.permute.xlu1 %3436 }
0x1bc6   :  { %v3441_v48 = vpop.permute.xlu0 %3440 }
0x1bc7   :  { %v3443_v17 = vsel %vm91_vm1, %v3437_v43, %v3441_v48 }
0x1bc8   :  { %4332 = vmatmul.mubr.msk.f32.vlgmr.msra.gmra.mrb[32].mxu1 %vm246_vm2, %v3443_v17 }
0x1c9b   :  { %v3513_v21 = vpop.f32.mrb[32].mxu1 }
0x1c9c   :  { %v3514_v32 = vadd.f32 %v5698_v20, %v3513_v21  ;;  %v4333_v9 = vpop.f32.mrb[33].mxu1 }
0x1c9e   :  { %4865 = vtanh.f32 %v3514_v32  ;;  %v3651_v41 = vmul.f32 -1.442695, %v3514_v32 }
0x1ca0   :  { %4867 = vpow2.f32 %v3651_v41 }
0x1ca8   :  { %v4866_v52 = vpop.eup %4865 }
0x1ca9   :  { %3526 = vrot.lane.b32.xlu1 %v4866_v52, %s4958_s6 }
0x1caa   :  { %v4868_v13 = vpop.eup %4867 }
0x1cab   :  { %v3520_v14 = vadd.f32 1.0, %v4868_v13 }
0x1cad   :  { %4869 = vrcp.f32 %v3520_v14 }
0x1cb7   :  { %v4870_v4 = vpop.eup %4869 }
0x1cb8   :  { %v3524_v20 = vmul.f32 %v4870_v4, %v3428_v7 }
0x1d1b   :  { %v3527_v16 = vpop.permute.xlu1 %3526 }
0x1d1c   :  { %v3529_v34 = vmul.f32 %v4870_v4, %v3527_v16 }
0x1d1e   :  { %3531 = vrot.lane.b32.xlu0 %v3529_v34, %s4959_s13 }
0x1d22   :  { %3541 = vrot.lane.b32.xlu0 %v5399_v25, %s4957_s23 }
0x1d26   :  { %3547 = vrot.lane.b32.xlu0 %v5728_v23, %s4955_s17 }
0x1d2a   :  { %3553 = vrot.lane.b32.xlu0 %v3434_v53, %s4956_s0 }
0x1d90   :  { %v3532_v38 = vpop.permute.xlu0 %3531 }
0x1d91   :  { %v3534_v55 = vadd.f32 %v3532_v38, %v3524_v20 }
0x1d93   :  { %4871 = vtanh.f32 %v3534_v55 }
0x1d94   :  { %v3542_v23 = vpop.permute.xlu0 %3541 }
0x1d95   :  { %v3560_v54 = vsel %vm91_vm1, %v3542_v23, %v5504_v39 }
0x1d96   :  { %v3561_v8 = vsel %vm246_vm2, %v3560_v54, %v5561_v15 }
0x1d98   :  { %v3548_v60 = vpop.permute.xlu0 %3547 }
0x1d9c   :  { %v3554_v22 = vpop.permute.xlu0 %3553 }
0x1d9d   :  { %v4872_v6 = vpop.eup %4871 }
0x1d9e   :  { %3537 = vrot.lane.b32.xlu1 %v4872_v6, %s4959_s13 }
0x1da2   :  { %3544 = vrot.lane.b32.xlu1 %v5646_v59, %s4959_s13 }
0x1da6   :  { %3550 = vrot.lane.b32.xlu1 %v5777_v51, %s4961_s9 }
0x1e10   :  { %v3538_v42 = vpop.permute.xlu1 %3537 }
0x1e11   :  { %v3540_v25 = vmul.f32 %v4870_v4, %v3538_v42 }
0x1e13   :  { %3557 = vrot.lane.b32.xlu1 %v3540_v25, %s4958_s6 }
0x1e14   :  { %v3545_v18 = vpop.permute.xlu1 %3544 }
0x1e15   :  { %v3562_v19 = vsel %vm764_vm4, %v3561_v8, %v3545_v18 }
0x1e16   :  { %v3563_v12 = vsel %vm453_vm3, %v3562_v19, %v3548_v60 }
0x1e18   :  { %v3551_v59 = vpop.permute.xlu1 %3550 }
0x1e19   :  { %v3565_v51 = vsel %vm3564_vm5, %v3563_v12, %v3551_v59 }
0x1e1a   :  { %v3567_v37 = vsel %vm3566_vm6, %v3565_v51, %v3554_v22 }
0x1e85   :  { %v3558_v45 = vpop.permute.xlu1 %3557 }
0x1e86   :  { %v3569_v26 = vsel %vm3568_vm7, %v3567_v37, %v3558_v45 }
0x1e87   :  { %3570 = vst [vmem:[%s5835_s10] sm:$0xff] %v3569_v26 }
0x1e88   :  { %3575 = vsyncpa [#allocation3], 1 }
0x1e89   :  { %3576 = vsyncpa [#allocation5], 1 }

</bundles_post_ra>
